<compile_context>
chip_gen: v6e
topology: v6e:2x2x1
jax: 0.10.0
libtpu: 0.0.40
codegen_flags: <defaults>
</compile_context>

<pallas_src>
import jax
import jax.numpy as jnp
from jax import lax
from jax.experimental import pallas as pl
from jax.experimental.pallas import tpu as pltpu

N_MBED = 384        # module constant
N_HEAD = 6          # module constant
BLOCK_SIZE = 256    # causal-mask capacity; we only require T <= BLOCK_SIZE
LN_EPS = 1e-5       # torch.nn.LayerNorm default


def _block_kernel(x_ref, ln1w_ref, ln1b_ref, wqkv_ref, wproj_ref, bproj_ref,
                  ln2w_ref, ln2b_ref, w1_ref, b1_ref, w2_ref, b2_ref, o_ref):
    """One batch element per grid step: full transformer block."""
    x = x_ref[0]                                    # (T, C) f32
    T, C = x.shape
    H = N_HEAD
    hs = C // H

    def layer_norm(v, w, b):
        mu = jnp.mean(v, axis=-1, keepdims=True)
        d = v - mu
        var = jnp.mean(d * d, axis=-1, keepdims=True)
        return d * lax.rsqrt(var + LN_EPS) * w + b

    # ---- LayerNorm 1 (f32) + fused QKV projection (bf16 MXU, f32 acc) ----
    xn1 = layer_norm(x, ln1w_ref[...], ln1b_ref[...])
    qkv = jnp.dot(xn1.astype(jnp.bfloat16), wqkv_ref[...],
                  preferred_element_type=jnp.float32)            # (T, 3C)

    # ---- per-head causal attention (reference: k @ q^T, scale n_mbed**-0.5) ----
    row = lax.broadcasted_iota(jnp.int32, (T, T), 0)
    col = lax.broadcasted_iota(jnp.int32, (T, T), 1)
    causal = col <= row
    scale = C ** -0.5                                # n_mbed**-0.5 (per reference)

    head_outs = []
    for h in range(H):                               # static unroll, H = 6
        qh = qkv[:, h * hs:(h + 1) * hs].astype(jnp.bfloat16)
        kh = (qkv[:, C + h * hs:C + (h + 1) * hs] * scale).astype(jnp.bfloat16)
        vh = qkv[:, 2 * C + h * hs:2 * C + (h + 1) * hs].astype(jnp.bfloat16)

        # wei = k @ q^T : contract over head dim without an explicit transpose
        wei = lax.dot_general(kh, qh, (((1,), (1,)), ((), ())),
                              preferred_element_type=jnp.float32)  # (T, T)
        wei = jnp.where(causal, wei, -jnp.inf)

        # f32 softmax over last axis
        m = jnp.max(wei, axis=-1, keepdims=True)
        e = jnp.exp(wei - m)
        p = e * pl.reciprocal(jnp.sum(e, axis=-1, keepdims=True), approx=True)
        # TODO(synk): attention-weight dropout omitted (eval-mode identity)

        head_outs.append(jnp.dot(p.astype(jnp.bfloat16), vh,
                                 preferred_element_type=jnp.float32))  # (T, hs)

    attn = jnp.concatenate(head_outs, axis=-1)       # (T, C) — concat heads

    # ---- output projection + residual ----
    sa = jnp.dot(attn.astype(jnp.bfloat16), wproj_ref[...],
                 preferred_element_type=jnp.float32) + bproj_ref[...]
    # TODO(synk): post-projection dropout omitted (eval-mode identity)
    x1 = x + sa

    # ---- LayerNorm 2 + FeedForward + residual ----
    xn2 = layer_norm(x1, ln2w_ref[...], ln2b_ref[...])
    hdn = jnp.dot(xn2.astype(jnp.bfloat16), w1_ref[...],
                  preferred_element_type=jnp.float32) + b1_ref[...]
    hdn = jnp.maximum(hdn, 0.0)
    ff = jnp.dot(hdn.astype(jnp.bfloat16), w2_ref[...],
                 preferred_element_type=jnp.float32) + b2_ref[...]
    # TODO(synk): feed-forward dropout omitted (eval-mode identity)

    o_ref[0] = x1 + ff


def transformer_block(x, ln1_w, ln1_b, wq, wk, wv, w_proj, b_proj,
                      ln2_w, ln2_b, w1, b1, w2, b2):
    B, T, C = x.shape
    H, _, hs = wq.shape
    assert H * hs == C, "num_heads * head_size must equal n_mbed"
    assert T <= BLOCK_SIZE

    def head_major(w):                  # (H, C, hs) -> (C, H*hs)
        return jnp.transpose(w, (1, 0, 2)).reshape(C, H * hs)

    # Fused QKV weight (C, 3C); bf16 operands (f32 accumulation in-kernel).
    wqkv = jnp.concatenate(
        [head_major(wq), head_major(wk), head_major(wv)], axis=-1
    ).astype(jnp.bfloat16)
    w_proj_b = w_proj.astype(jnp.bfloat16)
    w1_b = w1.astype(jnp.bfloat16)
    w2_b = w2.astype(jnp.bfloat16)

    def full2d(a):                      # whole 2-D array, same block every step
        return pl.BlockSpec(a.shape, lambda b: (0, 0))

    return pl.pallas_call(
        _block_kernel,
        out_shape=jax.ShapeDtypeStruct((B, T, C), jnp.float32),
        grid=(B,),
        in_specs=[
            pl.BlockSpec((1, T, C), lambda b: (b, 0, 0)),   # x
            full2d(ln1_w), full2d(ln1_b),
            full2d(wqkv), full2d(w_proj_b), full2d(b_proj),
            full2d(ln2_w), full2d(ln2_b),
            full2d(w1_b), full2d(b1), full2d(w2_b), full2d(b2),
        ],
        out_specs=pl.BlockSpec((1, T, C), lambda b: (b, 0, 0)),
        compiler_params=pltpu.CompilerParams(
            dimension_semantics=("parallel",)),
    )(x, ln1_w, ln1_b, wqkv, w_proj_b, b_proj, ln2_w, ln2_b,
      w1_b, b1, w2_b, b2)


def _reference(x, ln1_w, ln1_b, wq, wk, wv, w_proj, b_proj,
               ln2_w, ln2_b, w1, b1, w2, b2):
    """Pure-JAX f32 reference replicating the PyTorch Block forward (eval)."""
    B, T, C = x.shape

    def layer_norm(v, w, b):
        mu = jnp.mean(v, axis=-1, keepdims=True)
        var = jnp.mean((v - mu) ** 2, axis=-1, keepdims=True)
        return (v - mu) / jnp.sqrt(var + LN_EPS) * w + b

    xn = layer_norm(x, ln1_w, ln1_b)
    q = jnp.einsum("btc,hcs->bhts", xn, wq)
    k = jnp.einsum("btc,hcs->bhts", xn, wk)
    v = jnp.einsum("btc,hcs->bhts", xn, wv)
    wei = jnp.einsum("bhts,bhus->bhtu", k, q) * (C ** -0.5)
    mask = jnp.tril(jnp.ones((T, T), dtype=bool))
    wei = jnp.where(mask, wei, -jnp.inf)
    wei = jax.nn.softmax(wei, axis=-1)
    attn = jnp.einsum("bhtu,bhus->bhts", wei, v)            # (B, H, T, hs)
    attn = jnp.transpose(attn, (0, 2, 1, 3)).reshape(B, T, C)
    x1 = x + (attn @ w_proj + b_proj)
    xn2 = layer_norm(x1, ln2_w, ln2_b)
    ff = jnp.maximum(xn2 @ w1 + b1, 0.0) @ w2 + b2
    return x1 + ff


if __name__ == "__main__":
    key = jax.random.PRNGKey(0)
    B, T = 2, 8
    C = N_MBED                 # 384 (fixed by the module)
    H = N_HEAD                 # 6
    hs = C // H                # 64

    ks = jax.random.split(key, 14)
    s_c = C ** -0.5
    s_4c = (4 * C) ** -0.5

    x = jax.random.normal(ks[0], (B, T, C), dtype=jnp.float32)
    wq = jax.random.normal(ks[1], (H, C, hs), dtype=jnp.float32) * s_c
    wk = jax.random.normal(ks[2], (H, C, hs), dtype=jnp.float32) * s_c
    wv = jax.random.normal(ks[3], (H, C, hs), dtype=jnp.float32) * s_c
    w_proj = jax.random.normal(ks[4], (C, C), dtype=jnp.float32) * s_c
    b_proj = jax.random.normal(ks[5], (1, C), dtype=jnp.float32) * 0.01
    ln1_w = 1.0 + 0.1 * jax.random.normal(ks[6], (1, C), dtype=jnp.float32)
    ln1_b = 0.1 * jax.random.normal(ks[7], (1, C), dtype=jnp.float32)
    ln2_w = 1.0 + 0.1 * jax.random.normal(ks[8], (1, C), dtype=jnp.float32)
    ln2_b = 0.1 * jax.random.normal(ks[9], (1, C), dtype=jnp.float32)
    w1 = jax.random.normal(ks[10], (C, 4 * C), dtype=jnp.float32) * s_c
    b1 = jax.random.normal(ks[11], (1, 4 * C), dtype=jnp.float32) * 0.01
    w2 = jax.random.normal(ks[12], (4 * C, C), dtype=jnp.float32) * s_4c
    b2 = jax.random.normal(ks[13], (1, C), dtype=jnp.float32) * 0.01

    out = transformer_block(x, ln1_w, ln1_b, wq, wk, wv, w_proj, b_proj,
                            ln2_w, ln2_b, w1, b1, w2, b2)
    out = jax.block_until_ready(out)

    ref = _reference(x, ln1_w, ln1_b, wq, wk, wv, w_proj, b_proj,
                     ln2_w, ln2_b, w1, b1, w2, b2)
    assert out.shape == (B, T, C)
    max_err = float(jnp.max(jnp.abs(out - ref)))
    # bf16 MXU operands (f32 accumulation) => relaxed tolerance vs f32 reference.
    assert bool(jnp.allclose(out, ref, atol=5e-2, rtol=5e-2)), \
        f"mismatch vs reference, max abs err = {max_err}"
    print("KERNEL_OK")
</pallas_src>

<mosaic_0001>
module attributes {stable_mosaic.version = 11 : i64} {
  func.func @_block_kernel(%arg0: i32, %arg1: memref<1x8x384xf32, #tpu.memory_space<vmem>>, %arg2: memref<1x384xf32, #tpu.memory_space<vmem>>, %arg3: memref<1x384xf32, #tpu.memory_space<vmem>>, %arg4: memref<384x1152xbf16, #tpu.memory_space<vmem>>, %arg5: memref<384x384xbf16, #tpu.memory_space<vmem>>, %arg6: memref<1x384xf32, #tpu.memory_space<vmem>>, %arg7: memref<1x384xf32, #tpu.memory_space<vmem>>, %arg8: memref<1x384xf32, #tpu.memory_space<vmem>>, %arg9: memref<384x1536xbf16, #tpu.memory_space<vmem>>, %arg10: memref<1x1536xf32, #tpu.memory_space<vmem>>, %arg11: memref<1536x384xbf16, #tpu.memory_space<vmem>>, %arg12: memref<1x384xf32, #tpu.memory_space<vmem>>, %arg13: memref<1x8x384xf32, #tpu.memory_space<vmem>>) attributes {dimension_semantics = [#tpu.dimension_semantics<parallel>], iteration_bounds = array<i64: 2>, scalar_prefetch = 0 : i64, scratch_operands = 0 : i64, tpu.core_type = #tpu.core_type<tc>, window_params = [{transform_indices = @transform_0, window_bounds = array<i64: 1, 8, 384>}, {pipeline_mode = #tpu.pipeline_mode<synchronous>, transform_indices = @transform_1, window_bounds = array<i64: 1, 384>}, {pipeline_mode = #tpu.pipeline_mode<synchronous>, transform_indices = @transform_2, window_bounds = array<i64: 1, 384>}, {pipeline_mode = #tpu.pipeline_mode<synchronous>, transform_indices = @transform_3, window_bounds = array<i64: 384, 1152>}, {pipeline_mode = #tpu.pipeline_mode<synchronous>, transform_indices = @transform_4, window_bounds = array<i64: 384, 384>}, {pipeline_mode = #tpu.pipeline_mode<synchronous>, transform_indices = @transform_5, window_bounds = array<i64: 1, 384>}, {pipeline_mode = #tpu.pipeline_mode<synchronous>, transform_indices = @transform_6, window_bounds = array<i64: 1, 384>}, {pipeline_mode = #tpu.pipeline_mode<synchronous>, transform_indices = @transform_7, window_bounds = array<i64: 1, 384>}, {pipeline_mode = #tpu.pipeline_mode<synchronous>, transform_indices = @transform_8, window_bounds = array<i64: 384, 1536>}, {pipeline_mode = #tpu.pipeline_mode<synchronous>, transform_indices = @transform_9, window_bounds = array<i64: 1, 1536>}, {pipeline_mode = #tpu.pipeline_mode<synchronous>, transform_indices = @transform_10, window_bounds = array<i64: 1536, 384>}, {pipeline_mode = #tpu.pipeline_mode<synchronous>, transform_indices = @transform_11, window_bounds = array<i64: 1, 384>}, {transform_indices = @transform_12, window_bounds = array<i64: 1, 8, 384>}]} {
    %c0 = arith.constant 0 : index
    %c0_0 = arith.constant 0 : index
    %c0_1 = arith.constant 0 : index
    %0 = vector.load %arg1[%c0, %c0_0, %c0_1] : memref<1x8x384xf32, #tpu.memory_space<vmem>>, vector<1x8x384xf32>
    %1 = vector.shape_cast %0 : vector<1x8x384xf32> to vector<8x384xf32>
    %c0_2 = arith.constant 0 : index
    %c0_3 = arith.constant 0 : index
    %2 = vector.load %arg2[%c0_2, %c0_3] : memref<1x384xf32, #tpu.memory_space<vmem>>, vector<1x384xf32>
    %c0_4 = arith.constant 0 : index
    %c0_5 = arith.constant 0 : index
    %3 = vector.load %arg3[%c0_4, %c0_5] : memref<1x384xf32, #tpu.memory_space<vmem>>, vector<1x384xf32>
    %cst = arith.constant dense<0.000000e+00> : vector<8xf32>
    %4 = vector.multi_reduction <add>, %1, %cst [1] : vector<8x384xf32> to vector<8xf32>
    %5 = vector.shape_cast %4 : vector<8xf32> to vector<8x1xf32>
    %cst_6 = arith.constant 3.840000e+02 : f32
    %6 = vector.broadcast %cst_6 : f32 to vector<8x1xf32>
    %7 = arith.divf %5, %6 : vector<8x1xf32>
    %8 = vector.broadcast %7 : vector<8x1xf32> to vector<8x384xf32>
    %9 = arith.subf %1, %8 : vector<8x384xf32>
    %10 = arith.mulf %9, %9 : vector<8x384xf32>
    %cst_7 = arith.constant dense<0.000000e+00> : vector<8xf32>
    %11 = vector.multi_reduction <add>, %10, %cst_7 [1] : vector<8x384xf32> to vector<8xf32>
    %12 = vector.shape_cast %11 : vector<8xf32> to vector<8x1xf32>
    %cst_8 = arith.constant 3.840000e+02 : f32
    %13 = vector.broadcast %cst_8 : f32 to vector<8x1xf32>
    %14 = arith.divf %12, %13 : vector<8x1xf32>
    %cst_9 = arith.constant 9.99999974E-6 : f32
    %15 = vector.broadcast %cst_9 : f32 to vector<8x1xf32>
    %16 = arith.addf %14, %15 : vector<8x1xf32>
    %17 = math.rsqrt %16 : vector<8x1xf32>
    %18 = vector.broadcast %17 : vector<8x1xf32> to vector<8x384xf32>
    %19 = arith.mulf %9, %18 : vector<8x384xf32>
    %20 = vector.broadcast %2 : vector<1x384xf32> to vector<8x384xf32>
    %21 = arith.mulf %19, %20 : vector<8x384xf32>
    %22 = vector.broadcast %3 : vector<1x384xf32> to vector<8x384xf32>
    %23 = arith.addf %21, %22 : vector<8x384xf32>
    %24 = arith.truncf %23 : vector<8x384xf32> to vector<8x384xbf16>
    %c0_10 = arith.constant 0 : index
    %c0_11 = arith.constant 0 : index
    %25 = vector.load %arg4[%c0_10, %c0_11] : memref<384x1152xbf16, #tpu.memory_space<vmem>>, vector<384x1152xbf16>
    %cst_12 = arith.constant dense<0.000000e+00> : vector<8x1152xf32>
    %26 = tpu.matmul %24, %25, %cst_12 {dimension_numbers = #tpu.dot_dimension_numbers<[1], [0], [0], [1], [0, 0, 1, 1], [], []>} : vector<8x384xbf16>, vector<384x1152xbf16>, vector<8x1152xf32> -> vector<8x1152xf32>
    %27 = tpu.iota {dimensions = array<i32: 0>} : vector<8x8xi32>
    %28 = tpu.iota {dimensions = array<i32: 1>} : vector<8x8xi32>
    %29 = arith.cmpi sle, %28, %27 : vector<8x8xi32>
    %30 = vector.extract_strided_slice %26 {offsets = [0, 0], sizes = [8, 64], strides = [1, 1]} : vector<8x1152xf32> to vector<8x64xf32>
    %31 = arith.truncf %30 : vector<8x64xf32> to vector<8x64xbf16>
    %32 = vector.extract_strided_slice %26 {offsets = [0, 384], sizes = [8, 64], strides = [1, 1]} : vector<8x1152xf32> to vector<8x64xf32>
    %cst_13 = arith.constant 0.0510310382 : f32
    %33 = vector.broadcast %cst_13 : f32 to vector<8x64xf32>
    %34 = arith.mulf %32, %33 : vector<8x64xf32>
    %35 = arith.truncf %34 : vector<8x64xf32> to vector<8x64xbf16>
    %36 = vector.extract_strided_slice %26 {offsets = [0, 768], sizes = [8, 64], strides = [1, 1]} : vector<8x1152xf32> to vector<8x64xf32>
    %37 = arith.truncf %36 : vector<8x64xf32> to vector<8x64xbf16>
    %cst_14 = arith.constant dense<0.000000e+00> : vector<8x8xf32>
    %38 = tpu.matmul %35, %31, %cst_14 {dimension_numbers = #tpu.dot_dimension_numbers<[1], [1], [0], [0], [0, 0, 1, 0], [], []>} : vector<8x64xbf16>, vector<8x64xbf16>, vector<8x8xf32> -> vector<8x8xf32>
    %cst_15 = arith.constant 0xFF800000 : f32
    %39 = vector.broadcast %cst_15 : f32 to vector<8x8xf32>
    %40 = arith.select %29, %38, %39 : vector<8x8xi1>, vector<8x8xf32>
    %cst_16 = arith.constant dense<0xFF800000> : vector<8xf32>
    %41 = vector.multi_reduction <maximumf>, %40, %cst_16 [1] : vector<8x8xf32> to vector<8xf32>
    %42 = vector.shape_cast %41 : vector<8xf32> to vector<8x1xf32>
    %43 = vector.broadcast %42 : vector<8x1xf32> to vector<8x8xf32>
    %44 = arith.subf %40, %43 : vector<8x8xf32>
    %45 = math.exp %44 : vector<8x8xf32>
    %cst_17 = arith.constant dense<0.000000e+00> : vector<8xf32>
    %46 = vector.multi_reduction <add>, %45, %cst_17 [1] : vector<8x8xf32> to vector<8xf32>
    %47 = vector.shape_cast %46 : vector<8xf32> to vector<8x1xf32>
    %48 = tpu.reciprocal %47 {approx = true} : vector<8x1xf32> -> vector<8x1xf32>
    %49 = vector.broadcast %48 : vector<8x1xf32> to vector<8x8xf32>
    %50 = arith.mulf %45, %49 : vector<8x8xf32>
    %51 = arith.truncf %50 : vector<8x8xf32> to vector<8x8xbf16>
    %cst_18 = arith.constant dense<0.000000e+00> : vector<8x64xf32>
    %52 = tpu.matmul %51, %37, %cst_18 {dimension_numbers = #tpu.dot_dimension_numbers<[1], [0], [0], [1], [0, 0, 1, 1], [], []>} : vector<8x8xbf16>, vector<8x64xbf16>, vector<8x64xf32> -> vector<8x64xf32>
    %53 = vector.extract_strided_slice %26 {offsets = [0, 64], sizes = [8, 64], strides = [1, 1]} : vector<8x1152xf32> to vector<8x64xf32>
    %54 = arith.truncf %53 : vector<8x64xf32> to vector<8x64xbf16>
    %55 = vector.extract_strided_slice %26 {offsets = [0, 448], sizes = [8, 64], strides = [1, 1]} : vector<8x1152xf32> to vector<8x64xf32>
    %cst_19 = arith.constant 0.0510310382 : f32
    %56 = vector.broadcast %cst_19 : f32 to vector<8x64xf32>
    %57 = arith.mulf %55, %56 : vector<8x64xf32>
    %58 = arith.truncf %57 : vector<8x64xf32> to vector<8x64xbf16>
    %59 = vector.extract_strided_slice %26 {offsets = [0, 832], sizes = [8, 64], strides = [1, 1]} : vector<8x1152xf32> to vector<8x64xf32>
    %60 = arith.truncf %59 : vector<8x64xf32> to vector<8x64xbf16>
    %cst_20 = arith.constant dense<0.000000e+00> : vector<8x8xf32>
    %61 = tpu.matmul %58, %54, %cst_20 {dimension_numbers = #tpu.dot_dimension_numbers<[1], [1], [0], [0], [0, 0, 1, 0], [], []>} : vector<8x64xbf16>, vector<8x64xbf16>, vector<8x8xf32> -> vector<8x8xf32>
    %cst_21 = arith.constant 0xFF800000 : f32
    %62 = vector.broadcast %cst_21 : f32 to vector<8x8xf32>
    %63 = arith.select %29, %61, %62 : vector<8x8xi1>, vector<8x8xf32>
    %cst_22 = arith.constant dense<0xFF800000> : vector<8xf32>
    %64 = vector.multi_reduction <maximumf>, %63, %cst_22 [1] : vector<8x8xf32> to vector<8xf32>
    %65 = vector.shape_cast %64 : vector<8xf32> to vector<8x1xf32>
    %66 = vector.broadcast %65 : vector<8x1xf32> to vector<8x8xf32>
    %67 = arith.subf %63, %66 : vector<8x8xf32>
    %68 = math.exp %67 : vector<8x8xf32>
    %cst_23 = arith.constant dense<0.000000e+00> : vector<8xf32>
    %69 = vector.multi_reduction <add>, %68, %cst_23 [1] : vector<8x8xf32> to vector<8xf32>
    %70 = vector.shape_cast %69 : vector<8xf32> to vector<8x1xf32>
    %71 = tpu.reciprocal %70 {approx = true} : vector<8x1xf32> -> vector<8x1xf32>
    %72 = vector.broadcast %71 : vector<8x1xf32> to vector<8x8xf32>
    %73 = arith.mulf %68, %72 : vector<8x8xf32>
    %74 = arith.truncf %73 : vector<8x8xf32> to vector<8x8xbf16>
    %cst_24 = arith.constant dense<0.000000e+00> : vector<8x64xf32>
    %75 = tpu.matmul %74, %60, %cst_24 {dimension_numbers = #tpu.dot_dimension_numbers<[1], [0], [0], [1], [0, 0, 1, 1], [], []>} : vector<8x8xbf16>, vector<8x64xbf16>, vector<8x64xf32> -> vector<8x64xf32>
    %76 = vector.extract_strided_slice %26 {offsets = [0, 128], sizes = [8, 64], strides = [1, 1]} : vector<8x1152xf32> to vector<8x64xf32>
    %77 = arith.truncf %76 : vector<8x64xf32> to vector<8x64xbf16>
    %78 = vector.extract_strided_slice %26 {offsets = [0, 512], sizes = [8, 64], strides = [1, 1]} : vector<8x1152xf32> to vector<8x64xf32>
    %cst_25 = arith.constant 0.0510310382 : f32
    %79 = vector.broadcast %cst_25 : f32 to vector<8x64xf32>
    %80 = arith.mulf %78, %79 : vector<8x64xf32>
    %81 = arith.truncf %80 : vector<8x64xf32> to vector<8x64xbf16>
    %82 = vector.extract_strided_slice %26 {offsets = [0, 896], sizes = [8, 64], strides = [1, 1]} : vector<8x1152xf32> to vector<8x64xf32>
    %83 = arith.truncf %82 : vector<8x64xf32> to vector<8x64xbf16>
    %cst_26 = arith.constant dense<0.000000e+00> : vector<8x8xf32>
    %84 = tpu.matmul %81, %77, %cst_26 {dimension_numbers = #tpu.dot_dimension_numbers<[1], [1], [0], [0], [0, 0, 1, 0], [], []>} : vector<8x64xbf16>, vector<8x64xbf16>, vector<8x8xf32> -> vector<8x8xf32>
    %cst_27 = arith.constant 0xFF800000 : f32
    %85 = vector.broadcast %cst_27 : f32 to vector<8x8xf32>
    %86 = arith.select %29, %84, %85 : vector<8x8xi1>, vector<8x8xf32>
    %cst_28 = arith.constant dense<0xFF800000> : vector<8xf32>
    %87 = vector.multi_reduction <maximumf>, %86, %cst_28 [1] : vector<8x8xf32> to vector<8xf32>
    %88 = vector.shape_cast %87 : vector<8xf32> to vector<8x1xf32>
    %89 = vector.broadcast %88 : vector<8x1xf32> to vector<8x8xf32>
    %90 = arith.subf %86, %89 : vector<8x8xf32>
    %91 = math.exp %90 : vector<8x8xf32>
    %cst_29 = arith.constant dense<0.000000e+00> : vector<8xf32>
    %92 = vector.multi_reduction <add>, %91, %cst_29 [1] : vector<8x8xf32> to vector<8xf32>
    %93 = vector.shape_cast %92 : vector<8xf32> to vector<8x1xf32>
    %94 = tpu.reciprocal %93 {approx = true} : vector<8x1xf32> -> vector<8x1xf32>
    %95 = vector.broadcast %94 : vector<8x1xf32> to vector<8x8xf32>
    %96 = arith.mulf %91, %95 : vector<8x8xf32>
    %97 = arith.truncf %96 : vector<8x8xf32> to vector<8x8xbf16>
    %cst_30 = arith.constant dense<0.000000e+00> : vector<8x64xf32>
    %98 = tpu.matmul %97, %83, %cst_30 {dimension_numbers = #tpu.dot_dimension_numbers<[1], [0], [0], [1], [0, 0, 1, 1], [], []>} : vector<8x8xbf16>, vector<8x64xbf16>, vector<8x64xf32> -> vector<8x64xf32>
    %99 = vector.extract_strided_slice %26 {offsets = [0, 192], sizes = [8, 64], strides = [1, 1]} : vector<8x1152xf32> to vector<8x64xf32>
    %100 = arith.truncf %99 : vector<8x64xf32> to vector<8x64xbf16>
    %101 = vector.extract_strided_slice %26 {offsets = [0, 576], sizes = [8, 64], strides = [1, 1]} : vector<8x1152xf32> to vector<8x64xf32>
    %cst_31 = arith.constant 0.0510310382 : f32
    %102 = vector.broadcast %cst_31 : f32 to vector<8x64xf32>
    %103 = arith.mulf %101, %102 : vector<8x64xf32>
    %104 = arith.truncf %103 : vector<8x64xf32> to vector<8x64xbf16>
    %105 = vector.extract_strided_slice %26 {offsets = [0, 960], sizes = [8, 64], strides = [1, 1]} : vector<8x1152xf32> to vector<8x64xf32>
    %106 = arith.truncf %105 : vector<8x64xf32> to vector<8x64xbf16>
    %cst_32 = arith.constant dense<0.000000e+00> : vector<8x8xf32>
    %107 = tpu.matmul %104, %100, %cst_32 {dimension_numbers = #tpu.dot_dimension_numbers<[1], [1], [0], [0], [0, 0, 1, 0], [], []>} : vector<8x64xbf16>, vector<8x64xbf16>, vector<8x8xf32> -> vector<8x8xf32>
    %cst_33 = arith.constant 0xFF800000 : f32
    %108 = vector.broadcast %cst_33 : f32 to vector<8x8xf32>
    %109 = arith.select %29, %107, %108 : vector<8x8xi1>, vector<8x8xf32>
    %cst_34 = arith.constant dense<0xFF800000> : vector<8xf32>
    %110 = vector.multi_reduction <maximumf>, %109, %cst_34 [1] : vector<8x8xf32> to vector<8xf32>
    %111 = vector.shape_cast %110 : vector<8xf32> to vector<8x1xf32>
    %112 = vector.broadcast %111 : vector<8x1xf32> to vector<8x8xf32>
    %113 = arith.subf %109, %112 : vector<8x8xf32>
    %114 = math.exp %113 : vector<8x8xf32>
    %cst_35 = arith.constant dense<0.000000e+00> : vector<8xf32>
    %115 = vector.multi_reduction <add>, %114, %cst_35 [1] : vector<8x8xf32> to vector<8xf32>
    %116 = vector.shape_cast %115 : vector<8xf32> to vector<8x1xf32>
    %117 = tpu.reciprocal %116 {approx = true} : vector<8x1xf32> -> vector<8x1xf32>
    %118 = vector.broadcast %117 : vector<8x1xf32> to vector<8x8xf32>
    %119 = arith.mulf %114, %118 : vector<8x8xf32>
    %120 = arith.truncf %119 : vector<8x8xf32> to vector<8x8xbf16>
    %cst_36 = arith.constant dense<0.000000e+00> : vector<8x64xf32>
    %121 = tpu.matmul %120, %106, %cst_36 {dimension_numbers = #tpu.dot_dimension_numbers<[1], [0], [0], [1], [0, 0, 1, 1], [], []>} : vector<8x8xbf16>, vector<8x64xbf16>, vector<8x64xf32> -> vector<8x64xf32>
    %122 = vector.extract_strided_slice %26 {offsets = [0, 256], sizes = [8, 64], strides = [1, 1]} : vector<8x1152xf32> to vector<8x64xf32>
    %123 = arith.truncf %122 : vector<8x64xf32> to vector<8x64xbf16>
    %124 = vector.extract_strided_slice %26 {offsets = [0, 640], sizes = [8, 64], strides = [1, 1]} : vector<8x1152xf32> to vector<8x64xf32>
    %cst_37 = arith.constant 0.0510310382 : f32
    %125 = vector.broadcast %cst_37 : f32 to vector<8x64xf32>
    %126 = arith.mulf %124, %125 : vector<8x64xf32>
    %127 = arith.truncf %126 : vector<8x64xf32> to vector<8x64xbf16>
    %128 = vector.extract_strided_slice %26 {offsets = [0, 1024], sizes = [8, 64], strides = [1, 1]} : vector<8x1152xf32> to vector<8x64xf32>
    %129 = arith.truncf %128 : vector<8x64xf32> to vector<8x64xbf16>
    %cst_38 = arith.constant dense<0.000000e+00> : vector<8x8xf32>
    %130 = tpu.matmul %127, %123, %cst_38 {dimension_numbers = #tpu.dot_dimension_numbers<[1], [1], [0], [0], [0, 0, 1, 0], [], []>} : vector<8x64xbf16>, vector<8x64xbf16>, vector<8x8xf32> -> vector<8x8xf32>
    %cst_39 = arith.constant 0xFF800000 : f32
    %131 = vector.broadcast %cst_39 : f32 to vector<8x8xf32>
    %132 = arith.select %29, %130, %131 : vector<8x8xi1>, vector<8x8xf32>
    %cst_40 = arith.constant dense<0xFF800000> : vector<8xf32>
    %133 = vector.multi_reduction <maximumf>, %132, %cst_40 [1] : vector<8x8xf32> to vector<8xf32>
    %134 = vector.shape_cast %133 : vector<8xf32> to vector<8x1xf32>
    %135 = vector.broadcast %134 : vector<8x1xf32> to vector<8x8xf32>
    %136 = arith.subf %132, %135 : vector<8x8xf32>
    %137 = math.exp %136 : vector<8x8xf32>
    %cst_41 = arith.constant dense<0.000000e+00> : vector<8xf32>
    %138 = vector.multi_reduction <add>, %137, %cst_41 [1] : vector<8x8xf32> to vector<8xf32>
    %139 = vector.shape_cast %138 : vector<8xf32> to vector<8x1xf32>
    %140 = tpu.reciprocal %139 {approx = true} : vector<8x1xf32> -> vector<8x1xf32>
    %141 = vector.broadcast %140 : vector<8x1xf32> to vector<8x8xf32>
    %142 = arith.mulf %137, %141 : vector<8x8xf32>
    %143 = arith.truncf %142 : vector<8x8xf32> to vector<8x8xbf16>
    %cst_42 = arith.constant dense<0.000000e+00> : vector<8x64xf32>
    %144 = tpu.matmul %143, %129, %cst_42 {dimension_numbers = #tpu.dot_dimension_numbers<[1], [0], [0], [1], [0, 0, 1, 1], [], []>} : vector<8x8xbf16>, vector<8x64xbf16>, vector<8x64xf32> -> vector<8x64xf32>
    %145 = vector.extract_strided_slice %26 {offsets = [0, 320], sizes = [8, 64], strides = [1, 1]} : vector<8x1152xf32> to vector<8x64xf32>
    %146 = arith.truncf %145 : vector<8x64xf32> to vector<8x64xbf16>
    %147 = vector.extract_strided_slice %26 {offsets = [0, 704], sizes = [8, 64], strides = [1, 1]} : vector<8x1152xf32> to vector<8x64xf32>
    %cst_43 = arith.constant 0.0510310382 : f32
    %148 = vector.broadcast %cst_43 : f32 to vector<8x64xf32>
    %149 = arith.mulf %147, %148 : vector<8x64xf32>
    %150 = arith.truncf %149 : vector<8x64xf32> to vector<8x64xbf16>
    %151 = vector.extract_strided_slice %26 {offsets = [0, 1088], sizes = [8, 64], strides = [1, 1]} : vector<8x1152xf32> to vector<8x64xf32>
    %152 = arith.truncf %151 : vector<8x64xf32> to vector<8x64xbf16>
    %cst_44 = arith.constant dense<0.000000e+00> : vector<8x8xf32>
    %153 = tpu.matmul %150, %146, %cst_44 {dimension_numbers = #tpu.dot_dimension_numbers<[1], [1], [0], [0], [0, 0, 1, 0], [], []>} : vector<8x64xbf16>, vector<8x64xbf16>, vector<8x8xf32> -> vector<8x8xf32>
    %cst_45 = arith.constant 0xFF800000 : f32
    %154 = vector.broadcast %cst_45 : f32 to vector<8x8xf32>
    %155 = arith.select %29, %153, %154 : vector<8x8xi1>, vector<8x8xf32>
    %cst_46 = arith.constant dense<0xFF800000> : vector<8xf32>
    %156 = vector.multi_reduction <maximumf>, %155, %cst_46 [1] : vector<8x8xf32> to vector<8xf32>
    %157 = vector.shape_cast %156 : vector<8xf32> to vector<8x1xf32>
    %158 = vector.broadcast %157 : vector<8x1xf32> to vector<8x8xf32>
    %159 = arith.subf %155, %158 : vector<8x8xf32>
    %160 = math.exp %159 : vector<8x8xf32>
    %cst_47 = arith.constant dense<0.000000e+00> : vector<8xf32>
    %161 = vector.multi_reduction <add>, %160, %cst_47 [1] : vector<8x8xf32> to vector<8xf32>
    %162 = vector.shape_cast %161 : vector<8xf32> to vector<8x1xf32>
    %163 = tpu.reciprocal %162 {approx = true} : vector<8x1xf32> -> vector<8x1xf32>
    %164 = vector.broadcast %163 : vector<8x1xf32> to vector<8x8xf32>
    %165 = arith.mulf %160, %164 : vector<8x8xf32>
    %166 = arith.truncf %165 : vector<8x8xf32> to vector<8x8xbf16>
    %cst_48 = arith.constant dense<0.000000e+00> : vector<8x64xf32>
    %167 = tpu.matmul %166, %152, %cst_48 {dimension_numbers = #tpu.dot_dimension_numbers<[1], [0], [0], [1], [0, 0, 1, 1], [], []>} : vector<8x8xbf16>, vector<8x64xbf16>, vector<8x64xf32> -> vector<8x64xf32>
    %168 = tpu.concatenate %52, %75, %98, %121, %144, %167 in 1 : vector<8x64xf32>, vector<8x64xf32>, vector<8x64xf32>, vector<8x64xf32>, vector<8x64xf32>, vector<8x64xf32> -> vector<8x384xf32>
    %169 = arith.truncf %168 : vector<8x384xf32> to vector<8x384xbf16>
    %c0_49 = arith.constant 0 : index
    %c0_50 = arith.constant 0 : index
    %170 = vector.load %arg5[%c0_49, %c0_50] : memref<384x384xbf16, #tpu.memory_space<vmem>>, vector<384x384xbf16>
    %cst_51 = arith.constant dense<0.000000e+00> : vector<8x384xf32>
    %171 = tpu.matmul %169, %170, %cst_51 {dimension_numbers = #tpu.dot_dimension_numbers<[1], [0], [0], [1], [0, 0, 1, 1], [], []>} : vector<8x384xbf16>, vector<384x384xbf16>, vector<8x384xf32> -> vector<8x384xf32>
    %c0_52 = arith.constant 0 : index
    %c0_53 = arith.constant 0 : index
    %172 = vector.load %arg6[%c0_52, %c0_53] : memref<1x384xf32, #tpu.memory_space<vmem>>, vector<1x384xf32>
    %173 = vector.broadcast %172 : vector<1x384xf32> to vector<8x384xf32>
    %174 = arith.addf %171, %173 : vector<8x384xf32>
    %175 = arith.addf %1, %174 : vector<8x384xf32>
    %c0_54 = arith.constant 0 : index
    %c0_55 = arith.constant 0 : index
    %176 = vector.load %arg7[%c0_54, %c0_55] : memref<1x384xf32, #tpu.memory_space<vmem>>, vector<1x384xf32>
    %c0_56 = arith.constant 0 : index
    %c0_57 = arith.constant 0 : index
    %177 = vector.load %arg8[%c0_56, %c0_57] : memref<1x384xf32, #tpu.memory_space<vmem>>, vector<1x384xf32>
    %cst_58 = arith.constant dense<0.000000e+00> : vector<8xf32>
    %178 = vector.multi_reduction <add>, %175, %cst_58 [1] : vector<8x384xf32> to vector<8xf32>
    %179 = vector.shape_cast %178 : vector<8xf32> to vector<8x1xf32>
    %cst_59 = arith.constant 3.840000e+02 : f32
    %180 = vector.broadcast %cst_59 : f32 to vector<8x1xf32>
    %181 = arith.divf %179, %180 : vector<8x1xf32>
    %182 = vector.broadcast %181 : vector<8x1xf32> to vector<8x384xf32>
    %183 = arith.subf %175, %182 : vector<8x384xf32>
    %184 = arith.mulf %183, %183 : vector<8x384xf32>
    %cst_60 = arith.constant dense<0.000000e+00> : vector<8xf32>
    %185 = vector.multi_reduction <add>, %184, %cst_60 [1] : vector<8x384xf32> to vector<8xf32>
    %186 = vector.shape_cast %185 : vector<8xf32> to vector<8x1xf32>
    %cst_61 = arith.constant 3.840000e+02 : f32
    %187 = vector.broadcast %cst_61 : f32 to vector<8x1xf32>
    %188 = arith.divf %186, %187 : vector<8x1xf32>
    %cst_62 = arith.constant 9.99999974E-6 : f32
    %189 = vector.broadcast %cst_62 : f32 to vector<8x1xf32>
    %190 = arith.addf %188, %189 : vector<8x1xf32>
    %191 = math.rsqrt %190 : vector<8x1xf32>
    %192 = vector.broadcast %191 : vector<8x1xf32> to vector<8x384xf32>
    %193 = arith.mulf %183, %192 : vector<8x384xf32>
    %194 = vector.broadcast %176 : vector<1x384xf32> to vector<8x384xf32>
    %195 = arith.mulf %193, %194 : vector<8x384xf32>
    %196 = vector.broadcast %177 : vector<1x384xf32> to vector<8x384xf32>
    %197 = arith.addf %195, %196 : vector<8x384xf32>
    %198 = arith.truncf %197 : vector<8x384xf32> to vector<8x384xbf16>
    %c0_63 = arith.constant 0 : index
    %c0_64 = arith.constant 0 : index
    %199 = vector.load %arg9[%c0_63, %c0_64] : memref<384x1536xbf16, #tpu.memory_space<vmem>>, vector<384x1536xbf16>
    %cst_65 = arith.constant dense<0.000000e+00> : vector<8x1536xf32>
    %200 = tpu.matmul %198, %199, %cst_65 {dimension_numbers = #tpu.dot_dimension_numbers<[1], [0], [0], [1], [0, 0, 1, 1], [], []>} : vector<8x384xbf16>, vector<384x1536xbf16>, vector<8x1536xf32> -> vector<8x1536xf32>
    %c0_66 = arith.constant 0 : index
    %c0_67 = arith.constant 0 : index
    %201 = vector.load %arg10[%c0_66, %c0_67] : memref<1x1536xf32, #tpu.memory_space<vmem>>, vector<1x1536xf32>
    %202 = vector.broadcast %201 : vector<1x1536xf32> to vector<8x1536xf32>
    %203 = arith.addf %200, %202 : vector<8x1536xf32>
    %cst_68 = arith.constant 0.000000e+00 : f32
    %204 = vector.broadcast %cst_68 : f32 to vector<8x1536xf32>
    %205 = arith.maximumf %203, %204 : vector<8x1536xf32>
    %206 = arith.truncf %205 : vector<8x1536xf32> to vector<8x1536xbf16>
    %c0_69 = arith.constant 0 : index
    %c0_70 = arith.constant 0 : index
    %207 = vector.load %arg11[%c0_69, %c0_70] : memref<1536x384xbf16, #tpu.memory_space<vmem>>, vector<1536x384xbf16>
    %cst_71 = arith.constant dense<0.000000e+00> : vector<8x384xf32>
    %208 = tpu.matmul %206, %207, %cst_71 {dimension_numbers = #tpu.dot_dimension_numbers<[1], [0], [0], [1], [0, 0, 1, 1], [], []>} : vector<8x1536xbf16>, vector<1536x384xbf16>, vector<8x384xf32> -> vector<8x384xf32>
    %c0_72 = arith.constant 0 : index
    %c0_73 = arith.constant 0 : index
    %209 = vector.load %arg12[%c0_72, %c0_73] : memref<1x384xf32, #tpu.memory_space<vmem>>, vector<1x384xf32>
    %210 = vector.broadcast %209 : vector<1x384xf32> to vector<8x384xf32>
    %211 = arith.addf %208, %210 : vector<8x384xf32>
    %212 = arith.addf %175, %211 : vector<8x384xf32>
    %c0_74 = arith.constant 0 : index
    %c0_75 = arith.constant 0 : index
    %c0_76 = arith.constant 0 : index
    %213 = vector.load %arg13[%c0_74, %c0_75, %c0_76] : memref<1x8x384xf32, #tpu.memory_space<vmem>>, vector<1x8x384xf32>
    %214 = vector.shape_cast %213 : vector<1x8x384xf32> to vector<8x384xf32>
    %215 = vector.shape_cast %212 : vector<8x384xf32> to vector<1x8x384xf32>
    tpu.vector_store %arg13[%c0_74, %c0_75, %c0_76], %215 {strides = array<i32>} : memref<1x8x384xf32, #tpu.memory_space<vmem>>, vector<1x8x384xf32>,
    return
  }
  func.func @transform_0(%arg0: i32) -> (i32, i32, i32) {
    %c0_i32 = arith.constant 0 : i32
    %c0_i32_0 = arith.constant 0 : i32
    %c0_i32_1 = arith.constant 0 : i32
    return %arg0, %c0_i32, %c0_i32_0 : i32, i32, i32
  }
  func.func @transform_1(%arg0: i32) -> (i32, i32) {
    %c0_i32 = arith.constant 0 : i32
    %c0_i32_0 = arith.constant 0 : i32
    %c0_i32_1 = arith.constant 0 : i32
    return %c0_i32, %c0_i32_0 : i32, i32
  }
  func.func @transform_2(%arg0: i32) -> (i32, i32) {
    %c0_i32 = arith.constant 0 : i32
    %c0_i32_0 = arith.constant 0 : i32
    %c0_i32_1 = arith.constant 0 : i32
    return %c0_i32, %c0_i32_0 : i32, i32
  }
  func.func @transform_3(%arg0: i32) -> (i32, i32) {
    %c0_i32 = arith.constant 0 : i32
    %c0_i32_0 = arith.constant 0 : i32
    %c0_i32_1 = arith.constant 0 : i32
    return %c0_i32, %c0_i32_0 : i32, i32
  }
  func.func @transform_4(%arg0: i32) -> (i32, i32) {
    %c0_i32 = arith.constant 0 : i32
    %c0_i32_0 = arith.constant 0 : i32
    %c0_i32_1 = arith.constant 0 : i32
    return %c0_i32, %c0_i32_0 : i32, i32
  }
  func.func @transform_5(%arg0: i32) -> (i32, i32) {
    %c0_i32 = arith.constant 0 : i32
    %c0_i32_0 = arith.constant 0 : i32
    %c0_i32_1 = arith.constant 0 : i32
    return %c0_i32, %c0_i32_0 : i32, i32
  }
  func.func @transform_6(%arg0: i32) -> (i32, i32) {
    %c0_i32 = arith.constant 0 : i32
    %c0_i32_0 = arith.constant 0 : i32
    %c0_i32_1 = arith.constant 0 : i32
    return %c0_i32, %c0_i32_0 : i32, i32
  }
  func.func @transform_7(%arg0: i32) -> (i32, i32) {
    %c0_i32 = arith.constant 0 : i32
    %c0_i32_0 = arith.constant 0 : i32
    %c0_i32_1 = arith.constant 0 : i32
    return %c0_i32, %c0_i32_0 : i32, i32
  }
  func.func @transform_8(%arg0: i32) -> (i32, i32) {
    %c0_i32 = arith.constant 0 : i32
    %c0_i32_0 = arith.constant 0 : i32
    %c0_i32_1 = arith.constant 0 : i32
    return %c0_i32, %c0_i32_0 : i32, i32
  }
  func.func @transform_9(%arg0: i32) -> (i32, i32) {
    %c0_i32 = arith.constant 0 : i32
    %c0_i32_0 = arith.constant 0 : i32
    %c0_i32_1 = arith.constant 0 : i32
    return %c0_i32, %c0_i32_0 : i32, i32
  }
  func.func @transform_10(%arg0: i32) -> (i32, i32) {
    %c0_i32 = arith.constant 0 : i32
    %c0_i32_0 = arith.constant 0 : i32
    %c0_i32_1 = arith.constant 0 : i32
    return %c0_i32, %c0_i32_0 : i32, i32
  }
  func.func @transform_11(%arg0: i32) -> (i32, i32) {
    %c0_i32 = arith.constant 0 : i32
    %c0_i32_0 = arith.constant 0 : i32
    %c0_i32_1 = arith.constant 0 : i32
    return %c0_i32, %c0_i32_0 : i32, i32
  }
  func.func @transform_12(%arg0: i32) -> (i32, i32, i32) {
    %c0_i32 = arith.constant 0 : i32
    %c0_i32_0 = arith.constant 0 : i32
    %c0_i32_1 = arith.constant 0 : i32
    return %arg0, %c0_i32, %c0_i32_0 : i32, i32, i32
  }
}

</mosaic_0001>

<bundles_post_ra>
// kernel: tpu_custom_call.1
= control target key start
LH: loop header
LB: loop body
LE: loop exit
PB: predicated region body
PF: predicated region fallthrough
CT: control target
= control target key end

     0   :  { %s12596_s0 = inlined_call_operand.hbm [shape: f32[2,8,384], index: 0, kind: input, shape index: {}]   ;;  %s12597_s1 = inlined_call_operand.hbm [shape: f32[1,384], index: 1, kind: input, shape index: {}]   ;;  %s12598_s2 = inlined_call_operand.hbm [shape: f32[1,384], index: 2, kind: input, shape index: {}]   ;;  %s12599_s3 = inlined_call_operand.hbm [shape: bf16[384,1152], index: 3, kind: input, shape index: {}]   ;;  %s12600_s4 = inlined_call_operand.hbm [shape: bf16[384,384], index: 4, kind: input, shape index: {}]   ;;  %s12601_s5 = inlined_call_operand.hbm [shape: f32[1,384], index: 5, kind: input, shape index: {}]   ;;  %s12602_s6 = inlined_call_operand.hbm [shape: f32[1,384], index: 6, kind: input, shape index: {}]   ;;  %s12603_s7 = inlined_call_operand.hbm [shape: f32[1,384], index: 7, kind: input, shape index: {}]   ;;  %s12604_s8 = inlined_call_operand.hbm [shape: bf16[384,1536], index: 8, kind: input, shape index: {}]   ;;  %s12605_s9 = inlined_call_operand.hbm [shape: f32[1,1536], index: 9, kind: input, shape index: {}]   ;;  %s12606_s10 = inlined_call_operand.hbm [shape: bf16[1536,384], index: 10, kind: input, shape index: {}]   ;;  %s12607_s11 = inlined_call_operand.hbm [shape: f32[1,384], index: 11, kind: input, shape index: {}]   ;;  %s12608_s12 = inlined_call_operand.hbm [shape: f32[2,8,384], index: 12, kind: output, shape index: {}]  }
   0x1   :  { %12615 = sst [smem:[#allocation31_spill]] %s12597_s1 }
   0x2   :  { %12616 = sst [smem:[#allocation32_spill]] %s12598_s2 }
   0x3   :  { %12617 = sst [smem:[#allocation33_spill]] %s12599_s3 }
   0x4   :  { %12618 = sst [smem:[#allocation34_spill]] %s12600_s4 }
   0x5   :  { %12619 = sst [smem:[#allocation35_spill]] %s12601_s5 }
   0x6   :  { %12620 = sst [smem:[#allocation36_spill]] %s12602_s6 }
   0x7   :  { %12621 = sst [smem:[#allocation37_spill]] %s12603_s7 }
   0x8   :  { %17 = vsyncpa [#allocation3], 0 }
   0x9   :  { %19 = vsyncpa [#allocation3 + $0x1], 0 }
   0xa   :  { %20 = vsyncpa [#allocation6], 0 }
   0xb   :  { %21 = vsyncpa [#allocation9], 0 }
   0xc   :  { %22 = vsyncpa [#allocation12], 0 }
   0xd   :  { %23 = vsyncpa [#allocation15], 0 }
   0xe   :  { %24 = vsyncpa [#allocation18], 0 }
   0xf   :  { %25 = vsyncpa [#allocation21], 0 }
  0x10   :  { %26 = vsyncpa [#allocation4], 0 }
  0x11   :  { %28 = vsyncpa [#allocation4 + $0x1], 0  ;;  %s11904_s21 = smov 0   ;;  %s11906_s22 = smov 0  }
  0x12   :  { %s11908_s23 = smov 0   ;;  %s11910_s24 = smov 0  }
  0x13 LB: > { %s11816_s25 = smov [#allocation5]   ;;  %s11925_s27 = sadd.s32 4294967295, %s11814_s24   ;;  %s11814_s24 = sphi %s11910_s24, %s12661_s24   ;;  %s11810_s23 = sphi %s11908_s23, %s12660_s23   ;;  %s11806_s22 = sphi %s11906_s22, %s12659_s22   ;;  %s11802_s21 = sphi %s11904_s21, %s12658_s21  }
  0x14   : > { %s335_s26 = sshll.u32 %s11816_s25, 4  ;;  %p8746_p0 = scmp.ge.s32.totalorder %s11814_s24, 1  ;;  %s336_s26 = int_to_ptr.vmem [resolvable:$true] %s335_s26 }
  0x15   : > { %p12609_p1 = scmp.eq.s32.totalorder %s11925_s27, 0  ;;  %p322_p2 = scmp.lt.s32.totalorder %s11814_s24, 3 }
  0x16   : > { %s11817_s29 = smov [#allocation8]   ;;  %s11818_s14 = smov [#allocation11]  }
  0x17   : > { %p11930_p3 = pnand %p8746_p0, %p322_p2  ;;  %s356_s30 = sshll.u32 %s11817_s29, 4  ;;  %s11937_s30 = int_to_ptr.vmem [resolvable:$true] %s356_s30 }
  0x18   : > { %s383_s15 = sshll.u32 %s11818_s14, 4  ;;  %s11423_s17 = scalar_lea.vmem %s336_s26, 48  ;;  %s11945_s15 = int_to_ptr.vmem [resolvable:$true] %s383_s15 }
  0x19   : > { %s12622_s28 = scalar_select %p11930_p3, 1, 0 }
  0x1a   : > { %p10033_p5 = pneg %p11930_p3  ;;  %p11424_p8 = scmp.ne.s32.totalorder %s336_s26, %s11423_s17 }
  0x1b   : > { %s11430_s18 = scalar_lea.vmem %s336_s26, 64  ;;  %p11431_p11 = scmp.lt.s32.totalorder %s336_s26, %s336_s26 }
  0x1c   : > { %p11941_p6 = pnand %p10033_p5, %p12609_p1  ;;  %p11432_p12 = scmp.lt.s32.totalorder %s11430_s18, %s11423_s17 }
  0x1e   : > { %p11949_p7 = pneg %p11941_p6  ;;  %p11433_p13 = por %p11432_p12, %p11431_p11 }
  0x20   : > { %p11426_p9 = pnand %p11424_p8, %p11949_p7 }
  0x22   : > { %p11427_p10 = pneg %p11426_p9 }
  0x24   : > { %p11434_p0 = pnand %p11433_p13, %p11427_p10 }
  0x26   : > { %11437 = shalt.err (!%p11434_p0)
}
  0x27   : > { %s12625_s1 = sld [smem:[#allocation31_spill]]  ;;  %s11449_s25 = scalar_lea.vmem %s11937_s30, 27648 }
  0x28   : > { %p11450_p2 = scmp.ne.s32.totalorder %s11937_s30, %s11449_s25  ;;  %p11457_p9 = scmp.lt.s32.totalorder %s11937_s30, %s11937_s30 }
  0x29   : > { %p11458_p11 = scmp.lt.s32.totalorder %s11449_s25, %s11449_s25 }
  0x2a   : > { %p11452_p5 = pnand %p11450_p2, %p11949_p7 }
  0x2b   : > { %p11459_p10 = por %p11458_p11, %p11457_p9 }
  0x2c   : > { %p11453_p8 = pneg %p11452_p5 }
  0x2d   : > { %10036 = dma.hbm_to_vmem [thread:$0]  (!%p11941_p6), %s12625_s1, 48, %s336_s26, [#allocation6]  }
  0x2e   : > { %p11460_p12 = pnand %p11459_p10, %p11453_p8 }
  0x30   : > { %11463 = shalt.err (!%p11460_p12)
}
  0x31   : > { %s11819_s29 = smov 576   ;;  %s11820_s26 = smov 36  }
  0x32   : > { %s12626_s3 = sld [smem:[#allocation33_spill]]  ;;  %s11475_s18 = scalar_lea.vmem %s11945_s15, 48 }
  0x33   : > { %p11476_p13 = scmp.ne.s32.totalorder %s11945_s15, %s11475_s18  ;;  %s11482_s19 = scalar_lea.vmem %s11945_s15, 64 }
  0x34   : > { %p11483_p5 = scmp.lt.s32.totalorder %s11945_s15, %s11945_s15  ;;  %p11484_p8 = scmp.lt.s32.totalorder %s11482_s19, %s11475_s18 }
  0x35   : > { %p11478_p0 = pnand %p11476_p13, %p11949_p7 }
  0x36   : > { %p11485_p9 = por %p11484_p8, %p11483_p5 }
  0x37   : > { %p11479_p2 = pneg %p11478_p0 }
  0x38   : > { %10042 = dma.hbm_to_vmem [thread:$0]  (!%p11941_p6), %s12626_s3, 27648, %s11937_s30, [#allocation9], %s11819_s29, %s11819_s29, %s11820_s26  }
  0x39   : > { %p11486_p11 = pnand %p11485_p9, %p11479_p2 }
  0x3b   : > { %11489 = shalt.err (!%p11486_p11)
}
  0x3c   : > { %s12627_s5 = sld [smem:[#allocation35_spill]]  ;;  %s11821_s30 = smov [#allocation14]  }
  0x3d   : > { %s405_s29 = sshll.u32 %s11821_s30, 4  ;;  %s11822_s26 = smov [#allocation17]   ;;  %s406_s29 = int_to_ptr.vmem [resolvable:$true] %s405_s29 }
  0x3e   : > { %s429_s14 = sshll.u32 %s11822_s26, 4  ;;  %s11501_s17 = scalar_lea.vmem %s406_s29, 48  ;;  %s430_s14 = int_to_ptr.vmem [resolvable:$true] %s429_s14 }
  0x3f   : > { %p11502_p10 = scmp.ne.s32.totalorder %s406_s29, %s11501_s17  ;;  %s11508_s18 = scalar_lea.vmem %s406_s29, 64 }
  0x40   : > { %p11509_p0 = scmp.lt.s32.totalorder %s406_s29, %s406_s29  ;;  %p11510_p2 = scmp.lt.s32.totalorder %s11508_s18, %s11501_s17 }
  0x41   : > { %p11504_p12 = pnand %p11502_p10, %p11949_p7 }
  0x42   : > { %10048 = dma.hbm_to_vmem [thread:$0]  (!%p11941_p6), %s12627_s5, 48, %s11945_s15, [#allocation12]  }
  0x43   : > { %p11505_p13 = pneg %p11504_p12  ;;  %p11511_p5 = por %p11510_p2, %p11509_p0 }
  0x45   : > { %p11512_p8 = pnand %p11511_p5, %p11505_p13 }
  0x47   : > { %11515 = shalt.err (!%p11512_p8)
}
  0x48   : > { %s12628_s7 = sld [smem:[#allocation37_spill]]  ;;  %s11527_s20 = scalar_lea.vmem %s430_s14, 192 }
  0x49   : > { %p11528_p9 = scmp.ne.s32.totalorder %s430_s14, %s11527_s20  ;;  %p11535_p12 = scmp.lt.s32.totalorder %s430_s14, %s430_s14 }
  0x4a   : > { %p11536_p4 = scmp.lt.s32.totalorder %s11527_s20, %s11527_s20 }
  0x4b   : > { %p11530_p11 = pnand %p11528_p9, %p11949_p7 }
  0x4c   : > { %p11537_p1 = por %p11536_p4, %p11535_p12 }
  0x4d   : > { %p11531_p10 = pneg %p11530_p11 }
  0x4e   : > { %10054 = dma.hbm_to_vmem [thread:$0]  (!%p11941_p6), %s12628_s7, 48, %s406_s29, [#allocation15]  }
  0x4f   : > { %p11538_p3 = pnand %p11537_p1, %p11531_p10 }
  0x51   : > { %11541 = shalt.err (!%p11538_p3)
}
  0x52   : > { %10060 = dma.hbm_to_vmem [thread:$0]  (!%p11941_p6), %s12605_s9, 192, %s430_s14, [#allocation18]  }
  0x53   : > { %s11823_s26 = smov [#allocation7]   ;;  %s11824_s17 = smov [#allocation10]  }
  0x54   : > { %s346_s29 = sshll.u32 %s11823_s26, 4  ;;  %s369_s18 = sshll.u32 %s11824_s17, 4  ;;  %s347_s29 = int_to_ptr.vmem [resolvable:$true] %s346_s29  ;;  %s370_s18 = int_to_ptr.vmem [resolvable:$true] %s369_s18 }
  0x55   : > { %s11553_s19 = scalar_lea.vmem %s347_s29, 48  ;;  %s11560_s15 = scalar_lea.vmem %s347_s29, 64 }
  0x56   : > { %p11554_p13 = scmp.ne.s32.totalorder %s347_s29, %s11553_s19  ;;  %p11561_p1 = scmp.lt.s32.totalorder %s347_s29, %s347_s29 }
  0x57   : > { %p11562_p3 = scmp.lt.s32.totalorder %s11560_s15, %s11553_s19 }
  0x58   : > { %p11556_p0 = pnand %p11554_p13, %p11949_p7 }
  0x59   : > { %p11563_p4 = por %p11562_p3, %p11561_p1 }
  0x5a   : > { %p11557_p2 = pneg %p11556_p0 }
  0x5c   : > { %p11564_p5 = pnand %p11563_p4, %p11557_p2 }
  0x5e   : > { %11567 = shalt.err (!%p11564_p5)
}
  0x5f   : > { %s12629_s2 = sld [smem:[#allocation32_spill]]  ;;  %s11579_s25 = scalar_lea.vmem %s370_s18, 9216 }
  0x60   : > { %p11580_p8 = scmp.ne.s32.totalorder %s370_s18, %s11579_s25  ;;  %p11587_p10 = scmp.lt.s32.totalorder %s370_s18, %s370_s18 }
  0x61   : > { %p11588_p12 = scmp.lt.s32.totalorder %s11579_s25, %s11579_s25 }
  0x62   : > { %p11582_p9 = pnand %p11580_p8, %p11949_p7 }
  0x63   : > { %p11589_p13 = por %p11588_p12, %p11587_p10 }
  0x64   : > { %p11583_p11 = pneg %p11582_p9 }
  0x65   : > { %10039 = dma.hbm_to_vmem [thread:$0]  (!%p11941_p6), %s12629_s2, 48, %s347_s29, [#allocation6]  }
  0x66   : > { %p11590_p0 = pnand %p11589_p13, %p11583_p11 }
  0x68   : > { %11593 = shalt.err (!%p11590_p0)
}
  0x69   : > { %s12611_s30 = smov 192   ;;  %s12612_s26 = smov 12  }
  0x6a   : > { %s12630_s4 = sld [smem:[#allocation34_spill]]  ;;  %s11827_s19 = smov [#allocation13]  }
  0x6b   : > { %s394_s15 = sshll.u32 %s11827_s19, 4  ;;  %s11828_s20 = smov [#allocation16]   ;;  %s395_s15 = int_to_ptr.vmem [resolvable:$true] %s394_s15 }
  0x6c   : > { %s415_s14 = sshll.u32 %s11828_s20, 4  ;;  %s11605_s25 = scalar_lea.vmem %s395_s15, 48  ;;  %s416_s14 = int_to_ptr.vmem [resolvable:$true] %s415_s14 }
  0x6d   : > { %p11606_p2 = scmp.ne.s32.totalorder %s395_s15, %s11605_s25  ;;  %s11612_s1 = scalar_lea.vmem %s395_s15, 64 }
  0x6e   : > { %p11613_p4 = scmp.lt.s32.totalorder %s395_s15, %s395_s15  ;;  %p11614_p5 = scmp.lt.s32.totalorder %s11612_s1, %s11605_s25 }
  0x6f   : > { %p11608_p1 = pnand %p11606_p2, %p11949_p7 }
  0x70   : > { %10045 = dma.hbm_to_vmem [thread:$0]  (!%p11941_p6), %s12630_s4, 9216, %s370_s18, [#allocation9], %s12611_s30, %s12611_s30, %s12612_s26  }
  0x71   : > { %p11609_p3 = pneg %p11608_p1  ;;  %p11615_p8 = por %p11614_p5, %p11613_p4 }
  0x73   : > { %p11616_p9 = pnand %p11615_p8, %p11609_p3 }
  0x75   : > { %11619 = shalt.err (!%p11616_p9)
}
  0x76   : > { %s12631_s6 = sld [smem:[#allocation36_spill]]  ;;  %s11631_s17 = scalar_lea.vmem %s416_s14, 36864 }
  0x77   : > { %p11632_p11 = scmp.ne.s32.totalorder %s416_s14, %s11631_s17  ;;  %p11639_p13 = scmp.lt.s32.totalorder %s416_s14, %s416_s14 }
  0x78   : > { %p11640_p0 = scmp.lt.s32.totalorder %s11631_s17, %s11631_s17 }
  0x79   : > { %p11634_p10 = pnand %p11632_p11, %p11949_p7 }
  0x7a   : > { %p11641_p2 = por %p11640_p0, %p11639_p13 }
  0x7b   : > { %p11635_p12 = pneg %p11634_p10 }
  0x7c   : > { %10051 = dma.hbm_to_vmem [thread:$0]  (!%p11941_p6), %s12631_s6, 48, %s395_s15, [#allocation12]  }
  0x7d   : > { %p11642_p1 = pnand %p11641_p2, %p11635_p12 }
  0x7f   : > { %11645 = shalt.err (!%p11642_p1)
}
  0x80   : > { %s11829_s1 = smov 768   ;;  %s11830_s19 = smov 48  }
  0x81   : > { %10057 = dma.hbm_to_vmem [thread:$0]  (!%p11941_p6), %s12604_s8, 36864, %s416_s14, [#allocation15], %s11829_s1, %s11829_s1, %s11830_s19  }
  0x82   : > { %s11831_s15 = smov [#allocation19]   ;;  %s11832_s18 = smov [#allocation20]  }
  0x83   : > { %s439_s29 = sshll.u32 %s11831_s15, 4  ;;  %s453_s30 = sshll.u32 %s11832_s18, 4  ;;  %s440_s29 = int_to_ptr.vmem [resolvable:$true] %s439_s29  ;;  %s454_s30 = int_to_ptr.vmem [resolvable:$true] %s453_s30 }
  0x84   : > { %s11657_s26 = scalar_lea.vmem %s440_s29, 36864  ;;  %p11665_p8 = scmp.lt.s32.totalorder %s440_s29, %s440_s29 }
  0x85   : > { %p11658_p3 = scmp.ne.s32.totalorder %s440_s29, %s11657_s26  ;;  %p11666_p9 = scmp.lt.s32.totalorder %s11657_s26, %s11657_s26 }
  0x87   : > { %p11660_p4 = pnand %p11658_p3, %p11949_p7  ;;  %p11667_p11 = por %p11666_p9, %p11665_p8 }
  0x89   : > { %p11661_p5 = pneg %p11660_p4 }
  0x8b   : > { %p11668_p10 = pnand %p11667_p11, %p11661_p5 }
  0x8d   : > { %11671 = shalt.err (!%p11668_p10)
}
  0x8e   : > { %s12632_s17 = smov 12   ;;  %s12633_s20 = smov 192  }
  0x8f   : > { %10063 = dma.hbm_to_vmem [thread:$0]  (!%p11941_p6), %s12606_s10, 36864, %s440_s29, [#allocation18], %s12633_s20, %s12633_s20, %s12632_s17  }
  0x90   : > { %s11683_s19 = scalar_lea.vmem %s454_s30, 48  ;;  %s11690_s26 = scalar_lea.vmem %s454_s30, 64 }
  0x91   : > { %p11684_p12 = scmp.ne.s32.totalorder %s454_s30, %s11683_s19  ;;  %p11691_p2 = scmp.lt.s32.totalorder %s454_s30, %s454_s30 }
  0x92   : > { %p11692_p1 = scmp.lt.s32.totalorder %s11690_s26, %s11683_s19 }
  0x93   : > { %p11686_p13 = pnand %p11684_p12, %p11949_p7 }
  0x94   : > { %p11693_p3 = por %p11692_p1, %p11691_p2 }
  0x95   : > { %p11687_p0 = pneg %p11686_p13 }
  0x97   : > { %p11694_p4 = pnand %p11693_p3, %p11687_p0 }
  0x99   : > { %11697 = shalt.err (!%p11694_p4)
}
  0x9a   : > { %10066 = dma.hbm_to_vmem [thread:$0]  (!%p11941_p6), %s12607_s11, 48, %s454_s30, [#allocation21]  }
  0x9b   : > { %s8745_s16 = sadd.s32 4294967294, %s11814_s24   ;;  %s12049_s13 = sadd.s32 1, %s11814_s24  }
  0x9c   : > { %s41_s29 = sadd.s32 1, %s11810_s23  ;;  %s38_s18 = ssub.s32 %s11814_s24, %s12049_s13 }
  0x9d   : > { %p48_p7 = scmp.ne.s32.totalorder %s11810_s23, %s11806_s22  ;;  %p39_p5 = scmp.eq.s32.totalorder %s38_s18, 0 }
  0x9e   : > { %p49_p8 = scmp.eq.s32.totalorder %s11814_s24, 0  ;;  %p54_p9 = scmp.ne.s32.totalorder %s11806_s22, %s11802_s21 }
  0x9f   : > { %p309_p11 = scmp.eq.s32.totalorder %s11925_s27, 1  ;;  %p12634_p12 = scmp.eq.s32.totalorder %s11925_s27, 0 }
  0xa0   : > { %s12061_s17 = scalar_select %p39_p5, %s11810_s23, %s41_s29  }
  0xa1   : > { %p50_p10 = por %p49_p8, %p48_p7  ;;  %p12065_p13 = por %p12634_p12, %p54_p9 }
  0xa2   : > { %p12069_p6 = por %p309_p11, %p48_p7  ;;  %p315_p0 = scmp.eq.s32.totalorder %s8745_s16, 1 }
  0xa3   : > { %s12635_s20 = scalar_select %p12065_p13, 1, 0 }
  0xa4   : > { %s12636_s30 = scalar_select %p12069_p6, 1, 0 }
  0xa5   : > { %p10086_p2 = scmp.lt.s32.totalorder %s11814_s24, 2  ;;  %s464_s14 = sand.u32 1, %s11810_s23  }
  0xa6   : > { %p12075_p1 = por %p315_p0, %p54_p9  ;;  %s9981_s19 = smul.u32 24, %s464_s14 }
  0xa7   : > { %p12079_p3 = pnand %p10086_p2, %p50_p10  ;;  %s9982_s25 = smul.u32 384, %s11814_s24 }
  0xa8   : > { %s12637_s1 = scalar_select %p12075_p1, 1, 0 }
  0xa9   : > { %s12087_s18 = scalar_lea.hbm %s12596_s0, %s9982_s25  ;;  %s468_s16 = scalar_lea.vmem [#allocation2], %s9981_s19 }
  0xaa   : > { %s476_s2 = sshll.u32 %s468_s16, 4  ;;  %s465_s3 = scalar_lea.sflag [#allocation3], %s464_s14  ;;  %s477_s2 = int_to_ptr.vmem [resolvable:$true] %s476_s2 }
  0xab   : > { %s11698_s4 = scalar_lea.hbm %s12087_s18, 384  ;;  %p11700_p7 = pneg %p12079_p3 }
  0xac   : > { %p11699_p4 = scmp.ne.s32.totalorder %s12087_s18, %s11698_s4  ;;  %s11703_s7 = scalar_lea.hbm %s12596_s0, 768 }
  0xad   : > { %p11704_p9 = scmp.lt.s32.totalorder %s12087_s18, %s12596_s0  ;;  %p11705_p11 = scmp.lt.s32.totalorder %s11703_s7, %s11698_s4 }
  0xae   : > { %p11701_p5 = pnand %p11700_p7, %p11699_p4 }
  0xaf   : > { %p11706_p10 = por %p11705_p11, %p11704_p9 }
  0xb0   : > { %p11702_p8 = pneg %p11701_p5 }
  0xb2   : > { %p11707_p12 = pnand %p11706_p10, %p11702_p8 }
  0xb4   : > { %11710 = shalt.err (!%p11707_p12)
}
  0xb5   : > { %s11711_s19 = scalar_lea.vmem %s477_s2, 384  ;;  %s11833_s14 = smov [#allocation2]  }
  0xb6   : > { %p11712_p0 = scmp.ne.s32.totalorder %s477_s2, %s11711_s19  ;;  %s11716_s29 = sshll.u32 %s11833_s14, 4  ;;  %s11717_s29 = int_to_ptr.vmem [resolvable:$false] %s11716_s29 }
  0xb7   : > { %s11718_s16 = scalar_lea.vmem %s11717_s29, 768  ;;  %p11719_p4 = scmp.lt.s32.totalorder %s477_s2, %s11717_s29 }
  0xb8   : > { %p11714_p2 = pnand %p11712_p0, %p11700_p7  ;;  %p11720_p5 = scmp.lt.s32.totalorder %s11718_s16, %s11711_s19 }
  0xba   : > { %p11715_p1 = pneg %p11714_p2  ;;  %p11721_p6 = por %p11720_p5, %p11719_p4 }
  0xbc   : > { %p11722_p13 = pnand %p11721_p6, %p11715_p1 }
  0xbe   : > { %11725 = shalt.err (!%p11722_p13)
}
  0xbf   : > { %10070 = dma.hbm_to_vmem [thread:$0]  (!%p12079_p3), %s12087_s18, 384, %s477_s2, %s465_s3  }
  0xc0   : > { %p12639_p8 = scmp.ne.s32.totalorder %s12622_s28, 0 }
  0xc1   : > { %s12106_s4 = sand.u32 (!%p12639_p8), 1, %s11806_s22   ;;  %p12640_p13 = scmp.ne.s32.totalorder (!%p12639_p8), %s12635_s20, 0 }
  0xc2   : > { %485 = sbr.rel (%p12639_p8) target bundleno = 3496 (0xda8), region = 68  ;;  %s488_s6 = scalar_lea.sflag (!%p12639_p8), [#allocation3], %s12106_s4 }
  0xc3   : > { %s9983_s5 = smul.u32 (!%p12639_p8), 24, %s12106_s4 }
  0xc5   : > { %s12112_s7 = scalar_lea.vmem (!%p12639_p8), [#allocation2], %s9983_s5 }
  0xc7   : > { %11769 = dma.done.wait (%p12640_p13), %s488_s6, 384  }
  0xc8   : > { %11771 = vsyncadd (%p12640_p13), %s488_s6, 4294966912  ;;  %p12641_p6 = scmp.eq.s32.totalorder %s11925_s27, 0 }
  0xca   : > { %11773 = dma.done.wait (%p12641_p6), [#allocation6], 96   ;;  %p12642_p1 = pmov %p12641_p6 }
  0xcc   : > { %11775 = vsyncadd (%p12642_p1), [#allocation6], 4294967200  ;;  %p12643_p3 = pmov %p12642_p1 }
  0xcd   : > { %p12644_p7 = pmov %p12642_p1 }
  0xce   : > { %11777 = dma.done.wait (%p12643_p3), [#allocation9], 36864  }
  0xcf   : > { %11779 = vsyncadd (%p12644_p7), [#allocation9], 4294930432  ;;  %p12645_p9 = pmov %p12642_p1 }
  0xd0   : > { %p12646_p11 = pmov %p12642_p1 }
  0xd1   : > { %11781 = dma.done.wait (%p12645_p9), [#allocation12], 96  }
  0xd2   : > { %11783 = vsyncadd (%p12646_p11), [#allocation12], 4294967200  ;;  %p12647_p10 = pmov %p12642_p1 }
  0xd3   : > { %p12648_p12 = pmov %p12642_p1 }
  0xd4   : > { %11785 = dma.done.wait (%p12647_p10), [#allocation15], 36912  }
  0xd5   : > { %11787 = vsyncadd (%p12648_p12), [#allocation15], 4294930384  ;;  %p12649_p0 = pmov %p12642_p1 }
  0xd7   : > { %11789 = dma.done.wait (%p12649_p0), [#allocation18], 37056   ;;  %p12650_p2 = pmov %p12649_p0 }
  0xd8   : > { %p12651_p4 = pmov %p12649_p0 }
  0xd9   : > { %11791 = vsyncadd (%p12650_p2), [#allocation18], 4294930240 }
  0xda   : > { %11793 = dma.done.wait (%p12651_p4), [#allocation21], 48   ;;  %p12652_p5 = pmov %p12649_p0 }
  0xdb   : > { %v577_v0 = vld [vmem:[%s12112_s7] sm:$0xff]  ;;  %v578_v1 = vld [vmem:[%s12112_s7 + $0x8] sm:$0xff]  ;;  %v579_v2 = vld [vmem:[%s12112_s7 + $0x10] sm:$0xff]  ;;  %v11834_v58 = vmov 0   ;;  %vm11836_vm0 = vmmov 0   ;;  %vm2406_vm1 = vcmask 523264  }
  0xdc   : > { %11795 = vsyncadd (%p12652_p5), [#allocation21], 4294967248  ;;  %v582_v3 = vadd.f32 %v578_v1, %v577_v0  ;;  %v10157_v5 = vld [vmem:[#allocation8 + $0x1fc] ss:$36 sps:$4 sm:$0xff]   ;;  %v10160_v7 = vld [vmem:[#allocation8 + $0x1b4] ss:$36 sps:$4 sm:$0xff]   ;;  %2062 = vmatprep.mubr.bf16.mxu1 %v11834_v58 }
  0xdd   : > { %v10159_v6 = vld [vmem:[#allocation8 + $0x1f8] ss:$36 sps:$4 sm:$0xff]   ;;  %1989 = vmatprep.subr.bf16.mxu0 %v10157_v5  ;;  %v10162_v8 = vld [vmem:[#allocation8 + $0x1b0] ss:$36 sps:$4 sm:$0xff]   ;;  %v10165_v13 = vld [vmem:[#allocation8 + $0x168] ss:$36 sps:$4 sm:$0xff]   ;;  %v605_v5 = vlaneseq }
  0xde   : > { %v583_v4 = vadd.f32 %v582_v3, %v579_v2  ;;  %1990 = vmatpush1.bf16.msra.mxu0 %v10159_v6  ;;  %v10163_v9 = vld [vmem:[#allocation8 + $0x16c] ss:$36 sps:$4 sm:$0xff]   ;;  %v10181_v10 = vld [vmem:[#allocation8 + $0x67c] ss:$36 sps:$4 sm:$0xff]   ;;  %v10187_v12 = vld [vmem:[#allocation8 + $0x634] ss:$36 sps:$4 sm:$0xff]  }
  0xdf   : > { %1991 = vmatprep.subr.bf16.mxu0 %v10160_v7  ;;  %v10185_v11 = vld [vmem:[#allocation8 + $0x678] ss:$36 sps:$4 sm:$0xff]   ;;  %v10166_v14 = vld [vmem:[#allocation8 + $0x124] ss:$36 sps:$4 sm:$0xff]   ;;  %2030 = vmatprep.subr.bf16.mxu1 %v10181_v10  ;;  %v10191_v15 = vld [vmem:[#allocation8 + $0x630] ss:$36 sps:$4 sm:$0xff]  }
  0xe0   : > { %584 = vadd.xlane.f32.xlu0 %v583_v4  ;;  %2031 = vmatpush1.bf16.msra.mxu1 %v10185_v11  ;;  %v10168_v16 = vld [vmem:[#allocation8 + $0x120] ss:$36 sps:$4 sm:$0xff]   ;;  %v10171_v18 = vld [vmem:[#allocation8 + $0xd8] ss:$36 sps:$4 sm:$0xff]   ;;  %v10174_v20 = vld [vmem:[#allocation8 + $0x90] ss:$36 sps:$4 sm:$0xff]  }
  0xe1   : > { %2032 = vmatprep.subr.bf16.mxu1 %v10187_v12  ;;  %v10169_v17 = vld [vmem:[#allocation8 + $0xdc] ss:$36 sps:$4 sm:$0xff]   ;;  %v10172_v19 = vld [vmem:[#allocation8 + $0x94] ss:$36 sps:$4 sm:$0xff]   ;;  %v10175_v21 = vld [vmem:[#allocation8 + $0x4c] ss:$36 sps:$4 sm:$0xff]  }
  0xe2   : > { %1992 = vmatpush1.bf16.msra.mxu0 %v10162_v8  ;;  %v10177_v22 = vld [vmem:[#allocation8 + $0x48] ss:$36 sps:$4 sm:$0xff]   ;;  %v10180_v24 = vld [vmem:[#allocation8] ss:$36 sps:$4 sm:$0xff]   ;;  %v10186_v26 = vld [vmem:[#allocation8 + $0x438] ss:$36 sps:$4 sm:$0xff]  }
  0xe3   : > { %1993 = vmatprep.subr.bf16.mxu0 %v10163_v9  ;;  %v10178_v23 = vld [vmem:[#allocation8 + $0x4] ss:$36 sps:$4 sm:$0xff]   ;;  %v10183_v25 = vld [vmem:[#allocation8 + $0x43c] ss:$36 sps:$4 sm:$0xff]   ;;  %v10189_v27 = vld [vmem:[#allocation8 + $0x3f4] ss:$36 sps:$4 sm:$0xff]  }
  0xe4   : > { %2033 = vmatpush1.bf16.msra.mxu1 %v10191_v15  ;;  %v10192_v28 = vld [vmem:[#allocation8 + $0x3f0] ss:$36 sps:$4 sm:$0xff]   ;;  %v10197_v41 = vld [vmem:[#allocation8 + $0x5e8] ss:$36 sps:$4 sm:$0xff]   ;;  %v10203_v45 = vld [vmem:[#allocation8 + $0x5a0] ss:$36 sps:$4 sm:$0xff]  }
  0xe5   : > { %v10193_v39 = vld [vmem:[#allocation8 + $0x5ec] ss:$36 sps:$4 sm:$0xff]   ;;  %v10199_v43 = vld [vmem:[#allocation8 + $0x5a4] ss:$36 sps:$4 sm:$0xff]   ;;  %v10205_v47 = vld [vmem:[#allocation8 + $0x55c] ss:$36 sps:$4 sm:$0xff]  }
  0xe6   : > { %1994 = vmatpush1.bf16.msra.mxu0 %v10165_v13  ;;  %v10195_v40 = vld [vmem:[#allocation8 + $0x3ac] ss:$36 sps:$4 sm:$0xff]   ;;  %2034 = vmatprep.subr.bf16.mxu1 %v10193_v39  ;;  %v10201_v44 = vld [vmem:[#allocation8 + $0x364] ss:$36 sps:$4 sm:$0xff]   ;;  %v10207_v48 = vld [vmem:[#allocation8 + $0x31c] ss:$36 sps:$4 sm:$0xff]  }
  0xe7   : > { %1995 = vmatprep.subr.bf16.mxu0 %v10166_v14  ;;  %v10198_v42 = vld [vmem:[#allocation8 + $0x3a8] ss:$36 sps:$4 sm:$0xff]   ;;  %v10204_v46 = vld [vmem:[#allocation8 + $0x360] ss:$36 sps:$4 sm:$0xff]   ;;  %v10209_v49 = vld [vmem:[#allocation8 + $0x558] ss:$36 sps:$4 sm:$0xff]  }
  0xe8   : > { %2035 = vmatpush1.bf16.msra.mxu1 %v10197_v41  ;;  %v10210_v50 = vld [vmem:[#allocation8 + $0x318] ss:$36 sps:$4 sm:$0xff]   ;;  %v10215_v53 = vld [vmem:[#allocation8 + $0x510] ss:$36 sps:$4 sm:$0xff]   ;;  %v10221_v57 = vld [vmem:[#allocation8 + $0x4c8] ss:$36 sps:$4 sm:$0xff]  }
  0xe9   : > { %2036 = vmatprep.subr.bf16.mxu1 %v10199_v43  ;;  %v10211_v51 = vld [vmem:[#allocation8 + $0x514] ss:$36 sps:$4 sm:$0xff]   ;;  %v10217_v55 = vld [vmem:[#allocation8 + $0x4cc] ss:$36 sps:$4 sm:$0xff]   ;;  %v10223_v60 = vld [vmem:[#allocation8 + $0x484] ss:$36 sps:$4 sm:$0xff]  }
  0xea   : > { %1996 = vmatpush1.bf16.msra.mxu0 %v10168_v16  ;;  %v10213_v52 = vld [vmem:[#allocation8 + $0x2d4] ss:$36 sps:$4 sm:$0xff]   ;;  %v10219_v56 = vld [vmem:[#allocation8 + $0x28c] ss:$36 sps:$4 sm:$0xff]   ;;  %v10225_v61 = vld [vmem:[#allocation8 + $0x244] ss:$36 sps:$4 sm:$0xff]  }
  0xeb   : > { %1997 = vmatprep.subr.bf16.mxu0 %v10169_v17  ;;  %v10216_v54 = vld [vmem:[#allocation8 + $0x2d0] ss:$36 sps:$4 sm:$0xff]   ;;  %v10222_v59 = vld [vmem:[#allocation8 + $0x288] ss:$36 sps:$4 sm:$0xff]   ;;  %v10227_v62 = vld [vmem:[#allocation8 + $0x480] ss:$36 sps:$4 sm:$0xff]  }
  0xec   : > { %2037 = vmatpush1.bf16.msra.mxu1 %v10203_v45  ;;  %v10228_v63 = vld [vmem:[#allocation8 + $0x240] ss:$36 sps:$4 sm:$0xff]   ;;  %v12159_v6 = vshrl.u32 %v605_v5, 7  ;;  %v580_v7 = vld [vmem:[#allocation5] sm:$0x7]  ;;  %s11837_s2 = smov 64  }
  0xed   : > { %2038 = vmatprep.subr.bf16.mxu1 %v10205_v47  ;;  %v581_v11 = vld [vmem:[#allocation7] sm:$0x7]  ;;  %v10241_v39 = vld [vmem:[#allocation8 + $0x170] ss:$36 sps:$4 sm:$0xff]   ;;  %v10247_v43 = vld [vmem:[#allocation8 + $0x128] ss:$36 sps:$4 sm:$0xff]  }
  0xee   : > { %1998 = vmatpush1.bf16.msra.mxu0 %v10171_v18  ;;  %v12162_v8 = vsub.s32 1, %v12159_v6  ;;  %v12165_v9 = vsub.s32 2, %v12159_v6  ;;  %v12168_v10 = vsub.s32 0, %v12159_v6  ;;  %v10249_v41 = vld [vmem:[#allocation8 + $0x12c] ss:$36 sps:$4 sm:$0xff]   ;;  %vm2470_vm2 = vcmask 1043456  }
  0xef   : > { %1999 = vmatprep.subr.bf16.mxu0 %v10172_v19  ;;  %v10255_v45 = vld [vmem:[#allocation8 + $0xe4] ss:$36 sps:$4 sm:$0xff]   ;;  %vm2454_vm4 = vcmask 64512   ;;  %s12551_s3 = scalar_lea.vmem [#allocation22], %s9983_s5  ;;  %s9984_s28 = smul.u32 384, %s11925_s27 }
  0xf0   : > { %2039 = vmatpush1.bf16.msra.mxu1 %v10209_v49  ;;  %v612_v12 = vrot.slane %v580_v7, %v12162_v8  ;;  %v616_v13 = vrot.slane %v580_v7, %v12165_v9  ;;  %v608_v14 = vrot.slane %v580_v7, %v12168_v10  ;;  %v631_v16 = vrot.slane %v581_v11, %v12162_v8  ;;  %v10253_v47 = vld [vmem:[#allocation8 + $0xe0] ss:$36 sps:$4 sm:$0xff]   ;;  %s8570_s20 = sshll.u32 %s12551_s3, 4  ;;  %s8556_s25 = scalar_lea.sflag [#allocation4], %s12106_s4  ;;  %s8571_s20 = int_to_ptr.vmem [resolvable:$true] %s8570_s20 }
  0xf1   : > { %2040 = vmatprep.subr.bf16.mxu1 %v10211_v51  ;;  %v635_v17 = vrot.slane %v581_v11, %v12165_v9  ;;  %v10261_v49 = vld [vmem:[#allocation8 + $0x9c] ss:$36 sps:$4 sm:$0xff]   ;;  %s8568_s15 = scalar_lea.hbm %s12608_s12, %s9984_s28  ;;  %s11726_s19 = scalar_lea.vmem %s8571_s20, 384 }
  0xf2   : > { %2000 = vmatpush1.bf16.msra.mxu0 %v10174_v20  ;;  %v10259_v51 = vld [vmem:[#allocation8 + $0x98] ss:$36 sps:$4 sm:$0xff]   ;;  %v10286_v7 = vld [vmem:[#allocation8 + $0x1c0] ss:$36 sps:$4 sm:$0xff]   ;;  %p11727_p8 = scmp.ne.s32.totalorder %s8571_s20, %s11726_s19  ;;  %p12655_p13 = scmp.ne.s32.totalorder %s12636_s30, 0 }
  0xf3   : > { %2001 = vmatprep.subr.bf16.mxu0 %v10175_v21  ;;  %v627_v21 = vrot.slane %v581_v11, %v12168_v10  ;;  %v10291_v11 = vld [vmem:[#allocation8 + $0x3b4] ss:$36 sps:$4 sm:$0xff]   ;;  %s11838_s14 = smov [#allocation22]  }
  0xf4   : > { %2041 = vmatpush1.bf16.msra.mxu1 %v10215_v53  ;;  %v10267_v53 = vld [vmem:[#allocation8 + $0x54] ss:$36 sps:$4 sm:$0xff]   ;;  %p11728_p6 = pnand %p11727_p8, %p12655_p13  ;;  %s11730_s27 = sshll.u32 %s11838_s14, 4  ;;  %s11731_s27 = int_to_ptr.vmem [resolvable:$false] %s11730_s27 }
  0xf5   : > { %2042 = vmatprep.subr.bf16.mxu1 %v10217_v55  ;;  %v10265_v55 = vld [vmem:[#allocation8 + $0x50] ss:$36 sps:$4 sm:$0xff]   ;;  %s11732_s29 = scalar_lea.vmem %s11731_s27, 768  ;;  %p11733_p3 = scmp.lt.s32.totalorder %s8571_s20, %s11731_s27 }
  0xf6   : > { %2002 = vmatpush1.bf16.msra.mxu0 %v10177_v22  ;;  %p11729_p1 = pneg %p11728_p6  ;;  %p11734_p7 = scmp.lt.s32.totalorder %s11732_s29, %s11726_s19 }
  0xf7   : > { %2003 = vmatprep.subr.bf16.mxu0 %v10178_v23 }
  0xf8   : > { %2043 = vmatpush1.bf16.msra.mxu1 %v10221_v57  ;;  %v10273_v57 = vld [vmem:[#allocation8 + $0xc] ss:$36 sps:$4 sm:$0xff]   ;;  %p11735_p9 = por %p11734_p7, %p11733_p3 }
  0xf9   : > { %2044 = vmatprep.subr.bf16.mxu1 %v10223_v60  ;;  %v10271_v60 = vld [vmem:[#allocation8 + $0x8] ss:$36 sps:$4 sm:$0xff]  }
  0xfa   : > { %2004 = vmatpush1.bf16.msra.mxu0 %v10180_v24  ;;  %p11736_p11 = pnand %p11735_p9, %p11729_p1 }
  0xfb   : > { %2005 = vmatprep.subr.bf16.mxu0 %v10183_v25  ;;  %v10229_v25 = vld [vmem:[#allocation8 + $0x200] ss:$36 sps:$4 sm:$0xff]  }
  0xfc   : > { %2045 = vmatpush1.bf16.msra.mxu1 %v10227_v62  ;;  %v10279_v62 = vld [vmem:[#allocation8 + $0x444] ss:$36 sps:$4 sm:$0xff]  }
  0xfe   : > { %2006 = vmatpush2.bf16.msra.mxu0 %v10186_v26 }
  0xff   : > { %2007 = vmatprep.subr.bf16.mxu0 %v10189_v27 }
 0x102   : > { %2008 = vmatpush2.bf16.msra.mxu0 %v10192_v28 }
 0x103   : > { %2009 = vmatprep.subr.bf16.mxu0 %v10195_v40  ;;  %v10244_v40 = vld [vmem:[#allocation8 + $0x5f0] ss:$36 sps:$4 sm:$0xff]  }
 0x106   : > { %2010 = vmatpush2.bf16.msra.mxu0 %v10198_v42  ;;  %v10252_v42 = vld [vmem:[#allocation8 + $0x5ac] ss:$36 sps:$4 sm:$0xff]  }
 0x107   : > { %2011 = vmatprep.subr.bf16.mxu0 %v10201_v44  ;;  %v10250_v44 = vld [vmem:[#allocation8 + $0x5a8] ss:$36 sps:$4 sm:$0xff]  }
 0x10a   : > { %2012 = vmatpush2.bf16.msra.mxu0 %v10204_v46  ;;  %v10258_v46 = vld [vmem:[#allocation8 + $0x564] ss:$36 sps:$4 sm:$0xff]  }
 0x10b   : > { %2013 = vmatprep.subr.bf16.mxu0 %v10207_v48  ;;  %v10256_v48 = vld [vmem:[#allocation8 + $0x560] ss:$36 sps:$4 sm:$0xff]  }
 0x10e   : > { %2014 = vmatpush2.bf16.msra.mxu0 %v10210_v50  ;;  %v10264_v50 = vld [vmem:[#allocation8 + $0x51c] ss:$36 sps:$4 sm:$0xff]  }
 0x10f   : > { %2015 = vmatprep.subr.bf16.mxu0 %v10213_v52  ;;  %v10262_v52 = vld [vmem:[#allocation8 + $0x518] ss:$36 sps:$4 sm:$0xff]  }
 0x112   : > { %2016 = vmatpush2.bf16.msra.mxu0 %v10216_v54  ;;  %v10270_v54 = vld [vmem:[#allocation8 + $0x4d4] ss:$36 sps:$4 sm:$0xff]  }
 0x113   : > { %2017 = vmatprep.subr.bf16.mxu0 %v10219_v56  ;;  %v10268_v56 = vld [vmem:[#allocation8 + $0x4d0] ss:$36 sps:$4 sm:$0xff]  }
 0x116   : > { %2018 = vmatpush2.bf16.msra.mxu0 %v10222_v59  ;;  %v10276_v59 = vld [vmem:[#allocation8 + $0x48c] ss:$36 sps:$4 sm:$0xff]  }
 0x117   : > { %2019 = vmatprep.subr.bf16.mxu0 %v10225_v61  ;;  %v10274_v61 = vld [vmem:[#allocation8 + $0x488] ss:$36 sps:$4 sm:$0xff]  }
 0x11a   : > { %2020 = vmatpush2.bf16.msra.mxu0 %v10228_v63  ;;  %v10282_v63 = vld [vmem:[#allocation8 + $0x20c] ss:$36 sps:$4 sm:$0xff]  }
 0x169   : > { %v585_v29 = vpop.xlane.xlu0 %584 }
 0x16a   : > { %v587_v30 = vmul.f32 0.0026041667, %v585_v29  ;;  %v10232_v29 = vld [vmem:[#allocation8 + $0x680] ss:$36 sps:$4 sm:$0xff]  }
 0x16c   : > { %v12145_v31 = vsub.f32 %v577_v0, %v587_v30  ;;  %v12147_v32 = vsub.f32 %v578_v1, %v587_v30  ;;  %v12149_v33 = vsub.f32 %v579_v2, %v587_v30  ;;  %v10231_v0 = vld [vmem:[#allocation8 + $0x204] ss:$36 sps:$4 sm:$0xff]  }
 0x16d   : > { %2071 = vmatprep.subr.bf16.mxu1 %v10231_v0  ;;  %v10234_v1 = vld [vmem:[#allocation8 + $0x684] ss:$36 sps:$4 sm:$0xff]  }
 0x16e   : > { %v591_v34 = vmul.f32 %v12145_v31, %v12145_v31  ;;  %v592_v35 = vmul.f32 %v12147_v32, %v12147_v32  ;;  %v593_v36 = vmul.f32 %v12149_v33, %v12149_v33  ;;  %2112 = vmatprep.subr.bf16.mxu0 %v10234_v1  ;;  %v10277_v0 = vld [vmem:[#allocation8 + $0x440] ss:$36 sps:$4 sm:$0xff]   ;;  %v10280_v1 = vld [vmem:[#allocation8 + $0x208] ss:$36 sps:$4 sm:$0xff]  }
 0x170   : > { %v594_v37 = vadd.f32 %v592_v35, %v591_v34 }
 0x172   : > { %v595_v38 = vadd.f32 %v594_v37, %v593_v36  ;;  %v10238_v36 = vld [vmem:[#allocation8 + $0x638] ss:$36 sps:$4 sm:$0xff]  }
 0x173   : > { %v10243_v37 = vld [vmem:[#allocation8 + $0x174] ss:$36 sps:$4 sm:$0xff]  }
 0x174   : > { %596 = vadd.xlane.f32.xlu0 %v595_v38  ;;  %v10246_v38 = vld [vmem:[#allocation8 + $0x5f4] ss:$36 sps:$4 sm:$0xff]  }
 0x1fd   : > { %v597_v2 = vpop.xlane.xlu0 %596 }
 0x1fe   : > { %v598_v3 = vmul.f32 0.0026041667, %v597_v2  ;;  %v10285_v2 = vld [vmem:[#allocation8 + $0x3fc] ss:$36 sps:$4 sm:$0xff]  }
 0x200   : > { %v599_v4 = vadd.f32 1e-05, %v598_v3  ;;  %v10288_v3 = vld [vmem:[#allocation8 + $0x1c4] ss:$36 sps:$4 sm:$0xff]  }
 0x202   : > { %11381 = vrsqrt.f32 %v599_v4  ;;  %v10283_v4 = vld [vmem:[#allocation8 + $0x3f8] ss:$36 sps:$4 sm:$0xff]  }
 0x20f   : > { %v11382_v15 = vpop.eup %11381 }
 0x210   : > { %v602_v18 = vmul.f32 %v11382_v15, %v12147_v32  ;;  %v603_v19 = vmul.f32 %v11382_v15, %v12149_v33  ;;  %v601_v20 = vmul.f32 %v11382_v15, %v12145_v31  ;;  %v10237_v32 = vld [vmem:[#allocation8 + $0x1bc] ss:$36 sps:$4 sm:$0xff]   ;;  %v10297_v15 = vld [vmem:[#allocation8 + $0x36c] ss:$36 sps:$4 sm:$0xff]  }
 0x211   : > { %v10240_v33 = vld [vmem:[#allocation8 + $0x63c] ss:$36 sps:$4 sm:$0xff]  }
 0x212   : > { %v621_v22 = vmul.f32 %v612_v12, %v602_v18  ;;  %v622_v23 = vmul.f32 %v616_v13, %v603_v19  ;;  %v620_v24 = vmul.f32 %v608_v14, %v601_v20  ;;  %v10235_v31 = vld [vmem:[#allocation8 + $0x1b8] ss:$36 sps:$4 sm:$0xff]   ;;  %v10289_v13 = vld [vmem:[#allocation8 + $0x3b0] ss:$36 sps:$4 sm:$0xff]   ;;  %v10303_v19 = vld [vmem:[#allocation8 + $0x324] ss:$36 sps:$4 sm:$0xff]  }
 0x213   : > { %v10294_v12 = vld [vmem:[#allocation8 + $0x17c] ss:$36 sps:$4 sm:$0xff]   ;;  %v10298_v18 = vld [vmem:[#allocation8 + $0x130] ss:$36 sps:$4 sm:$0xff]  }
 0x214   : > { %v640_v26 = vadd.f32 %v631_v16, %v621_v22  ;;  %v641_v27 = vadd.f32 %v635_v17, %v622_v23  ;;  %v639_v28 = vadd.f32 %v627_v21, %v620_v24  ;;  %v10292_v14 = vld [vmem:[#allocation8 + $0x178] ss:$36 sps:$4 sm:$0xff]   ;;  %v10295_v17 = vld [vmem:[#allocation8 + $0x368] ss:$36 sps:$4 sm:$0xff]   ;;  %v10301_v21 = vld [vmem:[#allocation8 + $0x320] ss:$36 sps:$4 sm:$0xff]  }
 0x215   : > { %v10300_v16 = vld [vmem:[#allocation8 + $0x134] ss:$36 sps:$4 sm:$0xff]   ;;  %v10306_v20 = vld [vmem:[#allocation8 + $0xec] ss:$36 sps:$4 sm:$0xff]   ;;  %v10309_v23 = vld [vmem:[#allocation8 + $0x2dc] ss:$36 sps:$4 sm:$0xff]  }
 0x216   : > { %v12179_v30 = vpack.c.bf16 %v640_v26, %v640_v26  ;;  %v12181_v34 = vpack.c.bf16 %v641_v27, %v641_v27  ;;  %v12183_v35 = vpack.c.bf16 %v639_v28, %v639_v28  ;;  %v10304_v22 = vld [vmem:[#allocation8 + $0xe8] ss:$36 sps:$4 sm:$0xff]   ;;  %v10310_v26 = vld [vmem:[#allocation8 + $0xa0] ss:$36 sps:$4 sm:$0xff]   ;;  %v10315_v27 = vld [vmem:[#allocation8 + $0x294] ss:$36 sps:$4 sm:$0xff]  }
 0x217   : > { %v10312_v24 = vld [vmem:[#allocation8 + $0xa4] ss:$36 sps:$4 sm:$0xff]   ;;  %v10318_v28 = vld [vmem:[#allocation8 + $0x5c] ss:$36 sps:$4 sm:$0xff]  }
 0x218   : > { %2021 = vmatprep.mubr.bf16.mxu0 %v12179_v30  ;;  %2063 = vmatmul.mubr.bf16.vlgmr.msra.gmra.mxu1 %v12181_v34 }
 0x219   : > { %2072 = vmatpush1.bf16.msra.mxu1 %v10229_v25  ;;  %2022 = vmatmul.mubr.bf16.vlgmr.msra.gmra.mxu0 %v12183_v35  ;;  %v10307_v25 = vld [vmem:[#allocation8 + $0x2d8] ss:$36 sps:$4 sm:$0xff]  }
 0x21a   : > { %2103 = vmatprep.mubr.bf16.mxu1 %v12179_v30  ;;  %2113 = vmatpush1.bf16.msra.mxu0 %v10232_v29  ;;  %v10313_v29 = vld [vmem:[#allocation8 + $0x290] ss:$36 sps:$4 sm:$0xff]  }
 0x21b   : > { %2073 = vmatprep.subr.bf16.mxu1 %v10237_v32  ;;  %2114 = vmatprep.subr.bf16.mxu0 %v10240_v33  ;;  %v10316_v32 = vld [vmem:[#allocation8 + $0x58] ss:$36 sps:$4 sm:$0xff]   ;;  %v10321_v33 = vld [vmem:[#allocation8 + $0x24c] ss:$36 sps:$4 sm:$0xff]  }
 0x21c   : > { %2144 = vmatprep.mubr.bf16.mxu0 %v11834_v58 }
 0x21d   : > { %2074 = vmatpush1.bf16.msra.mxu1 %v10235_v31  ;;  %v10324_v31 = vld [vmem:[#allocation8 + $0x14] ss:$36 sps:$4 sm:$0xff]  }
 0x21e   : > { %2115 = vmatpush1.bf16.msra.mxu0 %v10238_v36  ;;  %2075 = vmatprep.subr.bf16.mxu1 %v10243_v37  ;;  %v10319_v36 = vld [vmem:[#allocation8 + $0x248] ss:$36 sps:$4 sm:$0xff]   ;;  %v10322_v37 = vld [vmem:[#allocation8 + $0x10] ss:$36 sps:$4 sm:$0xff]  }
 0x21f   : > { %2116 = vmatprep.subr.bf16.mxu0 %v10246_v38  ;;  %v10327_v38 = vld [vmem:[#allocation8 + $0x68c] ss:$36 sps:$4 sm:$0xff]  }
 0x221   : > { %2076 = vmatpush1.bf16.msra.mxu1 %v10241_v39  ;;  %v10330_v39 = vld [vmem:[#allocation8 + $0x44c] ss:$36 sps:$4 sm:$0xff]  }
 0x222   : > { %2117 = vmatpush1.bf16.msra.mxu0 %v10244_v40  ;;  %2077 = vmatprep.subr.bf16.mxu1 %v10249_v41  ;;  %v10325_v40 = vld [vmem:[#allocation8 + $0x688] ss:$36 sps:$4 sm:$0xff]  }
 0x223   : > { %2118 = vmatprep.subr.bf16.mxu0 %v10252_v42  ;;  %v10328_v41 = vld [vmem:[#allocation8 + $0x448] ss:$36 sps:$4 sm:$0xff]  }
 0x224   : > { %v10333_v42 = vld [vmem:[#allocation8 + $0x644] ss:$36 sps:$4 sm:$0xff]  }
 0x225   : > { %2078 = vmatpush1.bf16.msra.mxu1 %v10247_v43  ;;  %v10336_v43 = vld [vmem:[#allocation8 + $0x404] ss:$36 sps:$4 sm:$0xff]  }
 0x226   : > { %2119 = vmatpush1.bf16.msra.mxu0 %v10250_v44  ;;  %2079 = vmatprep.subr.bf16.mxu1 %v10255_v45  ;;  %v10331_v44 = vld [vmem:[#allocation8 + $0x640] ss:$36 sps:$4 sm:$0xff]  }
 0x227   : > { %2120 = vmatprep.subr.bf16.mxu0 %v10258_v46  ;;  %v10334_v45 = vld [vmem:[#allocation8 + $0x400] ss:$36 sps:$4 sm:$0xff]  }
 0x228   : > { %v10339_v46 = vld [vmem:[#allocation8 + $0x5fc] ss:$36 sps:$4 sm:$0xff]  }
 0x229   : > { %2080 = vmatpush1.bf16.msra.mxu1 %v10253_v47  ;;  %v10342_v47 = vld [vmem:[#allocation8 + $0x3bc] ss:$36 sps:$4 sm:$0xff]  }
 0x22a   : > { %2121 = vmatpush1.bf16.msra.mxu0 %v10256_v48  ;;  %2081 = vmatprep.subr.bf16.mxu1 %v10261_v49  ;;  %v10337_v48 = vld [vmem:[#allocation8 + $0x5f8] ss:$36 sps:$4 sm:$0xff]  }
 0x22b   : > { %2122 = vmatprep.subr.bf16.mxu0 %v10264_v50  ;;  %v10340_v49 = vld [vmem:[#allocation8 + $0x3b8] ss:$36 sps:$4 sm:$0xff]  }
 0x22c   : > { %v10345_v50 = vld [vmem:[#allocation8 + $0x5b4] ss:$36 sps:$4 sm:$0xff]  }
 0x22d   : > { %2082 = vmatpush1.bf16.msra.mxu1 %v10259_v51  ;;  %v10343_v51 = vld [vmem:[#allocation8 + $0x5b0] ss:$36 sps:$4 sm:$0xff]  }
 0x22e   : > { %2123 = vmatpush1.bf16.msra.mxu0 %v10262_v52  ;;  %2083 = vmatprep.subr.bf16.mxu1 %v10267_v53  ;;  %v10348_v52 = vld [vmem:[#allocation8 + $0x374] ss:$36 sps:$4 sm:$0xff]  }
 0x22f   : > { %2124 = vmatprep.subr.bf16.mxu0 %v10270_v54  ;;  %v10346_v53 = vld [vmem:[#allocation8 + $0x370] ss:$36 sps:$4 sm:$0xff]  }
 0x230   : > { %v10351_v54 = vld [vmem:[#allocation8 + $0x56c] ss:$36 sps:$4 sm:$0xff]  }
 0x231   : > { %2084 = vmatpush1.bf16.msra.mxu1 %v10265_v55  ;;  %v10354_v55 = vld [vmem:[#allocation8 + $0x32c] ss:$36 sps:$4 sm:$0xff]  }
 0x232   : > { %2125 = vmatpush1.bf16.msra.mxu0 %v10268_v56  ;;  %2085 = vmatprep.subr.bf16.mxu1 %v10273_v57  ;;  %v10349_v56 = vld [vmem:[#allocation8 + $0x568] ss:$36 sps:$4 sm:$0xff]  }
 0x233   : > { %2126 = vmatprep.subr.bf16.mxu0 %v10276_v59  ;;  %v10352_v57 = vld [vmem:[#allocation8 + $0x328] ss:$36 sps:$4 sm:$0xff]  }
 0x234   : > { %v10357_v59 = vld [vmem:[#allocation8 + $0x524] ss:$36 sps:$4 sm:$0xff]  }
 0x235   : > { %2086 = vmatpush1.bf16.msra.mxu1 %v10271_v60  ;;  %v10360_v60 = vld [vmem:[#allocation8 + $0x2e4] ss:$36 sps:$4 sm:$0xff]  }
 0x236   : > { %2127 = vmatpush1.bf16.msra.mxu0 %v10274_v61  ;;  %2087 = vmatprep.subr.bf16.mxu1 %v10279_v62  ;;  %v10355_v61 = vld [vmem:[#allocation8 + $0x520] ss:$36 sps:$4 sm:$0xff]  }
 0x237   : > { %2153 = vmatprep.subr.bf16.mxu0 %v10282_v63  ;;  %v10358_v62 = vld [vmem:[#allocation8 + $0x2e0] ss:$36 sps:$4 sm:$0xff]  }
 0x238   : > { %v10363_v63 = vld [vmem:[#allocation8 + $0x4dc] ss:$36 sps:$4 sm:$0xff]  }
 0x239   : > { %2088 = vmatpush2.bf16.msra.mxu1 %v10277_v0  ;;  %2145 = vmatmul.mubr.bf16.vlgmr.msra.gmra.mxu0 %v12181_v34  ;;  %v10366_v0 = vld [vmem:[#allocation8 + $0x29c] ss:$36 sps:$4 sm:$0xff]  }
 0x23a   : > { %2154 = vmatpush1.bf16.msra.mxu0 %v10280_v1  ;;  %2185 = vmatprep.mubr.bf16.mxu0 %v12179_v30  ;;  %v10361_v1 = vld [vmem:[#allocation8 + $0x4d8] ss:$36 sps:$4 sm:$0xff]  }
 0x23b   : > { %2089 = vmatprep.subr.bf16.mxu1 %v10285_v2  ;;  %2155 = vmatprep.subr.bf16.mxu0 %v10288_v3  ;;  %v10364_v2 = vld [vmem:[#allocation8 + $0x298] ss:$36 sps:$4 sm:$0xff]  }
 0x23c   : > { %v10369_v3 = vld [vmem:[#allocation8 + $0x494] ss:$36 sps:$4 sm:$0xff]  }
 0x23d   : > { %2090 = vmatpush2.bf16.msra.mxu1 %v10283_v4  ;;  %v10372_v4 = vld [vmem:[#allocation8 + $0x254] ss:$36 sps:$4 sm:$0xff]  }
 0x23e   : > { %2156 = vmatpush1.bf16.msra.mxu0 %v10286_v7  ;;  %2091 = vmatprep.subr.bf16.mxu1 %v10291_v11  ;;  %v10367_v7 = vld [vmem:[#allocation8 + $0x490] ss:$36 sps:$4 sm:$0xff]  }
 0x23f   : > { %2157 = vmatprep.subr.bf16.mxu0 %v10294_v12  ;;  %v10370_v11 = vld [vmem:[#allocation8 + $0x250] ss:$36 sps:$4 sm:$0xff]  }
 0x240   : > { %v10375_v12 = vld [vmem:[#allocation8 + $0x214] ss:$36 sps:$4 sm:$0xff]  }
 0x241   : > { %2092 = vmatpush2.bf16.msra.mxu1 %v10289_v13  ;;  %v10378_v13 = vld [vmem:[#allocation8 + $0x694] ss:$36 sps:$4 sm:$0xff]  }
 0x242   : > { %2158 = vmatpush1.bf16.msra.mxu0 %v10292_v14  ;;  %2093 = vmatprep.subr.bf16.mxu1 %v10297_v15  ;;  %v10373_v14 = vld [vmem:[#allocation8 + $0x210] ss:$36 sps:$4 sm:$0xff]  }
 0x243   : > { %2159 = vmatprep.subr.bf16.mxu0 %v10300_v16  ;;  %v10376_v15 = vld [vmem:[#allocation8 + $0x690] ss:$36 sps:$4 sm:$0xff]  }
 0x244   : > { %v10381_v16 = vld [vmem:[#allocation8 + $0x1cc] ss:$36 sps:$4 sm:$0xff]  }
 0x245   : > { %2094 = vmatpush2.bf16.msra.mxu1 %v10295_v17  ;;  %v10384_v17 = vld [vmem:[#allocation8 + $0x64c] ss:$36 sps:$4 sm:$0xff]  }
 0x246   : > { %2160 = vmatpush1.bf16.msra.mxu0 %v10298_v18  ;;  %2095 = vmatprep.subr.bf16.mxu1 %v10303_v19  ;;  %v10379_v18 = vld [vmem:[#allocation8 + $0x1c8] ss:$36 sps:$4 sm:$0xff]  }
 0x247   : > { %2161 = vmatprep.subr.bf16.mxu0 %v10306_v20  ;;  %v10382_v19 = vld [vmem:[#allocation8 + $0x648] ss:$36 sps:$4 sm:$0xff]  }
 0x248   : > { %v10387_v20 = vld [vmem:[#allocation8 + $0x184] ss:$36 sps:$4 sm:$0xff]  }
 0x249   : > { %2096 = vmatpush2.bf16.msra.mxu1 %v10301_v21  ;;  %v10390_v21 = vld [vmem:[#allocation8 + $0x604] ss:$36 sps:$4 sm:$0xff]  }
 0x24a   : > { %2162 = vmatpush1.bf16.msra.mxu0 %v10304_v22  ;;  %2097 = vmatprep.subr.bf16.mxu1 %v10309_v23  ;;  %v10385_v22 = vld [vmem:[#allocation8 + $0x180] ss:$36 sps:$4 sm:$0xff]  }
 0x24b   : > { %2163 = vmatprep.subr.bf16.mxu0 %v10312_v24  ;;  %v10388_v23 = vld [vmem:[#allocation8 + $0x600] ss:$36 sps:$4 sm:$0xff]  }
 0x24c   : > { %v10393_v24 = vld [vmem:[#allocation8 + $0x13c] ss:$36 sps:$4 sm:$0xff]  }
 0x24d   : > { %2098 = vmatpush2.bf16.msra.mxu1 %v10307_v25  ;;  %v10396_v25 = vld [vmem:[#allocation8 + $0x5bc] ss:$36 sps:$4 sm:$0xff]  }
 0x24e   : > { %2164 = vmatpush1.bf16.msra.mxu0 %v10310_v26  ;;  %2099 = vmatprep.subr.bf16.mxu1 %v10315_v27  ;;  %v10391_v26 = vld [vmem:[#allocation8 + $0x138] ss:$36 sps:$4 sm:$0xff]  }
 0x24f   : > { %2165 = vmatprep.subr.bf16.mxu0 %v10318_v28  ;;  %v10394_v27 = vld [vmem:[#allocation8 + $0x5b8] ss:$36 sps:$4 sm:$0xff]  }
 0x250   : > { %v10399_v28 = vld [vmem:[#allocation8 + $0xf4] ss:$36 sps:$4 sm:$0xff]  }
 0x251   : > { %2100 = vmatpush2.bf16.msra.mxu1 %v10313_v29  ;;  %v10402_v29 = vld [vmem:[#allocation8 + $0x574] ss:$36 sps:$4 sm:$0xff]  }
 0x252   : > { %2166 = vmatpush1.bf16.msra.mxu0 %v10316_v32  ;;  %2101 = vmatprep.subr.bf16.mxu1 %v10321_v33  ;;  %v10397_v32 = vld [vmem:[#allocation8 + $0xf0] ss:$36 sps:$4 sm:$0xff]  }
 0x253   : > { %2167 = vmatprep.subr.bf16.mxu0 %v10324_v31  ;;  %v10400_v33 = vld [vmem:[#allocation8 + $0x570] ss:$36 sps:$4 sm:$0xff]  }
 0x254   : > { %v10405_v31 = vld [vmem:[#allocation8 + $0xac] ss:$36 sps:$4 sm:$0xff]  }
 0x255   : > { %2102 = vmatpush2.bf16.msra.mxu1 %v10319_v36  ;;  %v10408_v36 = vld [vmem:[#allocation8 + $0x52c] ss:$36 sps:$4 sm:$0xff]  }
 0x256   : > { %2168 = vmatpush1.bf16.msra.mxu0 %v10322_v37  ;;  %2194 = vmatprep.subr.bf16.mxu1 %v10327_v38  ;;  %v10403_v37 = vld [vmem:[#allocation8 + $0xa8] ss:$36 sps:$4 sm:$0xff]  }
 0x257   : > { %2169 = vmatprep.subr.bf16.mxu0 %v10330_v39  ;;  %v10406_v38 = vld [vmem:[#allocation8 + $0x528] ss:$36 sps:$4 sm:$0xff]  }
 0x258   : > { %2104 = vmatmul.mubr.bf16.vlgmr.msra.gmra.mxu1 %v12183_v35  ;;  %v10411_v39 = vld [vmem:[#allocation8 + $0x64] ss:$36 sps:$4 sm:$0xff]  }
 0x259   : > { %2195 = vmatpush1.bf16.msra.mxu1 %v10325_v40  ;;  %2226 = vmatprep.mubr.bf16.mxu1 %v11834_v58  ;;  %v10414_v40 = vld [vmem:[#allocation8 + $0x4e4] ss:$36 sps:$4 sm:$0xff]  }
 0x25a   : > { %2170 = vmatpush2.bf16.msra.mxu0 %v10328_v41  ;;  %2196 = vmatprep.subr.bf16.mxu1 %v10333_v42  ;;  %v10409_v41 = vld [vmem:[#allocation8 + $0x60] ss:$36 sps:$4 sm:$0xff]  }
 0x25b   : > { %2171 = vmatprep.subr.bf16.mxu0 %v10336_v43  ;;  %v10412_v42 = vld [vmem:[#allocation8 + $0x4e0] ss:$36 sps:$4 sm:$0xff]  }
 0x25c   : > { %v10417_v43 = vld [vmem:[#allocation8 + $0x1c] ss:$36 sps:$4 sm:$0xff]  }
 0x25d   : > { %2197 = vmatpush1.bf16.msra.mxu1 %v10331_v44  ;;  %v10420_v44 = vld [vmem:[#allocation8 + $0x49c] ss:$36 sps:$4 sm:$0xff]  }
 0x25e   : > { %2172 = vmatpush2.bf16.msra.mxu0 %v10334_v45  ;;  %2198 = vmatprep.subr.bf16.mxu1 %v10339_v46  ;;  %v10415_v45 = vld [vmem:[#allocation8 + $0x18] ss:$36 sps:$4 sm:$0xff]  }
 0x25f   : > { %2173 = vmatprep.subr.bf16.mxu0 %v10342_v47  ;;  %v10418_v46 = vld [vmem:[#allocation8 + $0x498] ss:$36 sps:$4 sm:$0xff]  }
 0x260   : > { %v10423_v47 = vld [vmem:[#allocation8 + $0x454] ss:$36 sps:$4 sm:$0xff]  }
 0x261   : > { %2199 = vmatpush1.bf16.msra.mxu1 %v10337_v48  ;;  %v10424_v48 = vld [vmem:[#allocation8 + $0x458] ss:$36 sps:$4 sm:$0xff]  }
 0x262   : > { %2174 = vmatpush2.bf16.msra.mxu0 %v10340_v49  ;;  %2200 = vmatprep.subr.bf16.mxu1 %v10345_v50  ;;  %v10421_v49 = vld [vmem:[#allocation8 + $0x450] ss:$36 sps:$4 sm:$0xff]   ;;  %v10425_v50 = vld [vmem:[#allocation8 + $0x218] ss:$36 sps:$4 sm:$0xff]  }
 0x263   : > { %2175 = vmatprep.subr.bf16.mxu0 %v10348_v52  ;;  %v10429_v52 = vld [vmem:[#allocation8 + $0x410] ss:$36 sps:$4 sm:$0xff]  }
 0x265   : > { %2201 = vmatpush1.bf16.msra.mxu1 %v10343_v51  ;;  %v10428_v51 = vld [vmem:[#allocation8 + $0x40c] ss:$36 sps:$4 sm:$0xff]  }
 0x266   : > { %2176 = vmatpush2.bf16.msra.mxu0 %v10346_v53  ;;  %2202 = vmatprep.subr.bf16.mxu1 %v10351_v54  ;;  %v10426_v53 = vld [vmem:[#allocation8 + $0x408] ss:$36 sps:$4 sm:$0xff]   ;;  %v10430_v54 = vld [vmem:[#allocation8 + $0x1d0] ss:$36 sps:$4 sm:$0xff]  }
 0x267   : > { %2177 = vmatprep.subr.bf16.mxu0 %v10354_v55  ;;  %v10433_v55 = vld [vmem:[#allocation8 + $0x3c4] ss:$36 sps:$4 sm:$0xff]  }
 0x269   : > { %2203 = vmatpush1.bf16.msra.mxu1 %v10349_v56  ;;  %v10434_v56 = vld [vmem:[#allocation8 + $0x3c8] ss:$36 sps:$4 sm:$0xff]  }
 0x26a   : > { %2178 = vmatpush2.bf16.msra.mxu0 %v10352_v57  ;;  %2204 = vmatprep.subr.bf16.mxu1 %v10357_v59  ;;  %v10431_v57 = vld [vmem:[#allocation8 + $0x3c0] ss:$36 sps:$4 sm:$0xff]   ;;  %v10435_v59 = vld [vmem:[#allocation8 + $0x188] ss:$36 sps:$4 sm:$0xff]  }
 0x26b   : > { %2179 = vmatprep.subr.bf16.mxu0 %v10360_v60  ;;  %v10438_v60 = vld [vmem:[#allocation8 + $0x37c] ss:$36 sps:$4 sm:$0xff]  }
 0x26d   : > { %2205 = vmatpush1.bf16.msra.mxu1 %v10355_v61  ;;  %v10439_v61 = vld [vmem:[#allocation8 + $0x380] ss:$36 sps:$4 sm:$0xff]  }
 0x26e   : > { %2180 = vmatpush2.bf16.msra.mxu0 %v10358_v62  ;;  %2206 = vmatprep.subr.bf16.mxu1 %v10363_v63  ;;  %v10436_v62 = vld [vmem:[#allocation8 + $0x378] ss:$36 sps:$4 sm:$0xff]   ;;  %v10440_v63 = vld [vmem:[#allocation8 + $0x140] ss:$36 sps:$4 sm:$0xff]  }
 0x26f   : > { %2181 = vmatprep.subr.bf16.mxu0 %v10366_v0  ;;  %v10443_v0 = vld [vmem:[#allocation8 + $0x334] ss:$36 sps:$4 sm:$0xff]  }
 0x271   : > { %2207 = vmatpush1.bf16.msra.mxu1 %v10361_v1  ;;  %v10441_v1 = vld [vmem:[#allocation8 + $0x330] ss:$36 sps:$4 sm:$0xff]  }
 0x272   : > { %2182 = vmatpush2.bf16.msra.mxu0 %v10364_v2  ;;  %2208 = vmatprep.subr.bf16.mxu1 %v10369_v3  ;;  %v10445_v2 = vld [vmem:[#allocation8 + $0xf8] ss:$36 sps:$4 sm:$0xff]   ;;  %v10448_v3 = vld [vmem:[#allocation8 + $0x2ec] ss:$36 sps:$4 sm:$0xff]  }
 0x273   : > { %2183 = vmatprep.subr.bf16.mxu0 %v10372_v4  ;;  %v10449_v4 = vld [vmem:[#allocation8 + $0x2f0] ss:$36 sps:$4 sm:$0xff]  }
 0x275   : > { %2209 = vmatpush1.bf16.msra.mxu1 %v10367_v7  ;;  %v10446_v7 = vld [vmem:[#allocation8 + $0x2e8] ss:$36 sps:$4 sm:$0xff]  }
 0x276   : > { %2184 = vmatpush2.bf16.msra.mxu0 %v10370_v11  ;;  %2235 = vmatprep.subr.bf16.mxu1 %v10375_v12  ;;  %v10450_v11 = vld [vmem:[#allocation8 + $0xb0] ss:$36 sps:$4 sm:$0xff]   ;;  %v10453_v12 = vld [vmem:[#allocation8 + $0x2a4] ss:$36 sps:$4 sm:$0xff]  }
 0x277   : > { %2276 = vmatprep.subr.bf16.mxu0 %v10378_v13  ;;  %v10454_v13 = vld [vmem:[#allocation8 + $0x2a8] ss:$36 sps:$4 sm:$0xff]  }
 0x278   : > { %2227 = vmatmul.mubr.bf16.vlgmr.msra.gmra.mxu1 %v12181_v34 }
 0x279   : > { %2186 = vmatmul.mubr.bf16.vlgmr.msra.gmra.mxu0 %v12183_v35  ;;  %2236 = vmatpush1.bf16.msra.mxu1 %v10373_v14  ;;  %v10451_v14 = vld [vmem:[#allocation8 + $0x2a0] ss:$36 sps:$4 sm:$0xff]  }
 0x27a   : > { %2267 = vmatprep.mubr.bf16.mxu1 %v12179_v30  ;;  %2277 = vmatpush1.bf16.msra.mxu0 %v10376_v15  ;;  %v10455_v15 = vld [vmem:[#allocation8 + $0x68] ss:$36 sps:$4 sm:$0xff]  }
 0x27b   : > { %2237 = vmatprep.subr.bf16.mxu1 %v10381_v16  ;;  %2278 = vmatprep.subr.bf16.mxu0 %v10384_v17  ;;  %v10458_v16 = vld [vmem:[#allocation8 + $0x25c] ss:$36 sps:$4 sm:$0xff]  }
 0x27c   : > { %2308 = vmatprep.mubr.bf16.mxu0 %v11834_v58  ;;  %v10459_v17 = vld [vmem:[#allocation8 + $0x260] ss:$36 sps:$4 sm:$0xff]  }
 0x27d   : > { %2238 = vmatpush1.bf16.msra.mxu1 %v10379_v18  ;;  %v10456_v18 = vld [vmem:[#allocation8 + $0x258] ss:$36 sps:$4 sm:$0xff]  }
 0x27e   : > { %2279 = vmatpush1.bf16.msra.mxu0 %v10382_v19  ;;  %2239 = vmatprep.subr.bf16.mxu1 %v10387_v20  ;;  %v10460_v19 = vld [vmem:[#allocation8 + $0x20] ss:$36 sps:$4 sm:$0xff]   ;;  %v10461_v20 = vld [vmem:[#allocation8 + $0x698] ss:$36 sps:$4 sm:$0xff]  }
 0x27f   : > { %2280 = vmatprep.subr.bf16.mxu0 %v10390_v21  ;;  %v11835_v21 = vmov 0.0  }
 0x281   : > { %2240 = vmatpush1.bf16.msra.mxu1 %v10385_v22  ;;  %v10462_v22 = vld [vmem:[#allocation8 + $0x650] ss:$36 sps:$4 sm:$0xff]  }
 0x282   : > { %2281 = vmatpush1.bf16.msra.mxu0 %v10388_v23  ;;  %2241 = vmatprep.subr.bf16.mxu1 %v10393_v24  ;;  %v10463_v23 = vld [vmem:[#allocation8 + $0x608] ss:$36 sps:$4 sm:$0xff]   ;;  %v10464_v24 = vld [vmem:[#allocation8 + $0x5c0] ss:$36 sps:$4 sm:$0xff]  }
 0x283   : > { %2282 = vmatprep.subr.bf16.mxu0 %v10396_v25  ;;  %v10466_v25 = vld [vmem:[#allocation8 + $0x530] ss:$36 sps:$4 sm:$0xff]  }
 0x285   : > { %2242 = vmatpush1.bf16.msra.mxu1 %v10391_v26  ;;  %v10467_v26 = vld [vmem:[#allocation8 + $0x4e8] ss:$36 sps:$4 sm:$0xff]  }
 0x286   : > { %2283 = vmatpush1.bf16.msra.mxu0 %v10394_v27  ;;  %2243 = vmatprep.subr.bf16.mxu1 %v10399_v28  ;;  %v10468_v27 = vld [vmem:[#allocation8 + $0x4a0] ss:$36 sps:$4 sm:$0xff]  }
 0x287   : > { %2284 = vmatprep.subr.bf16.mxu0 %v10402_v29 }
 0x289   : > { %2244 = vmatpush1.bf16.msra.mxu1 %v10397_v32 }
 0x28a   : > { %2285 = vmatpush1.bf16.msra.mxu0 %v10400_v33  ;;  %2245 = vmatprep.subr.bf16.mxu1 %v10405_v31 }
 0x28b   : > { %2286 = vmatprep.subr.bf16.mxu0 %v10408_v36 }
 0x28d   : > { %2246 = vmatpush1.bf16.msra.mxu1 %v10403_v37 }
 0x28e   : > { %2287 = vmatpush1.bf16.msra.mxu0 %v10406_v38  ;;  %2247 = vmatprep.subr.bf16.mxu1 %v10411_v39 }
 0x28f   : > { %2288 = vmatprep.subr.bf16.mxu0 %v10414_v40 }
 0x291   : > { %2248 = vmatpush1.bf16.msra.mxu1 %v10409_v41 }
 0x292   : > { %2289 = vmatpush1.bf16.msra.mxu0 %v10412_v42  ;;  %2249 = vmatprep.subr.bf16.mxu1 %v10417_v43 }
 0x293   : > { %2290 = vmatprep.subr.bf16.mxu0 %v10420_v44 }
 0x295   : > { %2250 = vmatpush1.bf16.msra.mxu1 %v10415_v45 }
 0x296   : > { %2291 = vmatpush1.bf16.msra.mxu0 %v10418_v46  ;;  %2251 = vmatprep.subr.bf16.mxu1 %v10423_v47 }
 0x297   : > { %9651 = vmatprep.subr.bf16.mxu0 %v10424_v48 }
 0x299   : > { %2252 = vmatpush2.bf16.msra.mxu1 %v10421_v49  ;;  %2309 = vmatmul.mubr.bf16.vlgmr.msra.gmra.mxu0 %v12181_v34 }
 0x29a   : > { %9652 = vmatpush3.bf16.msra.mxu0 %v10425_v50  ;;  %2349 = vmatprep.mubr.bf16.mxu0 %v12179_v30  ;;  %v10444_v30 = vld [vmem:[#allocation8 + $0x338] ss:$36 sps:$4 sm:$0xff]  }
 0x29b   : > { %2253 = vmatprep.subr.bf16.mxu1 %v10428_v51  ;;  %9653 = vmatprep.subr.bf16.mxu0 %v10429_v52 }
 0x29d   : > { %2254 = vmatpush2.bf16.msra.mxu1 %v10426_v53 }
 0x29e   : > { %9654 = vmatpush3.bf16.msra.mxu0 %v10430_v54  ;;  %2255 = vmatprep.subr.bf16.mxu1 %v10433_v55 }
 0x29f   : > { %9655 = vmatprep.subr.bf16.mxu0 %v10434_v56 }
 0x2a1   : > { %2256 = vmatpush2.bf16.msra.mxu1 %v10431_v57 }
 0x2a2   : > { %9656 = vmatpush3.bf16.msra.mxu0 %v10435_v59  ;;  %2257 = vmatprep.subr.bf16.mxu1 %v10438_v60 }
 0x2a3   : > { %9657 = vmatprep.subr.bf16.mxu0 %v10439_v61 }
 0x2a5   : > { %2258 = vmatpush2.bf16.msra.mxu1 %v10436_v62 }
 0x2a6   : > { %9658 = vmatpush3.bf16.msra.mxu0 %v10440_v63  ;;  %2259 = vmatprep.subr.bf16.mxu1 %v10443_v0 }
 0x2a7   : > { %9659 = vmatprep.subr.bf16.mxu0 %v10444_v30 }
 0x2a9   : > { %2260 = vmatpush2.bf16.msra.mxu1 %v10441_v1 }
 0x2aa   : > { %9660 = vmatpush3.bf16.msra.mxu0 %v10445_v2  ;;  %2261 = vmatprep.subr.bf16.mxu1 %v10448_v3 }
 0x2ab   : > { %9661 = vmatprep.subr.bf16.mxu0 %v10449_v4 }
 0x2ad   : > { %2262 = vmatpush2.bf16.msra.mxu1 %v10446_v7 }
 0x2ae   : > { %9662 = vmatpush3.bf16.msra.mxu0 %v10450_v11  ;;  %2263 = vmatprep.subr.bf16.mxu1 %v10453_v12 }
 0x2af   : > { %9663 = vmatprep.subr.bf16.mxu0 %v10454_v13 }
 0x2b1   : > { %2264 = vmatpush2.bf16.msra.mxu1 %v10451_v14 }
 0x2b2   : > { %9664 = vmatpush3.bf16.msra.mxu0 %v10455_v15  ;;  %2265 = vmatprep.subr.bf16.mxu1 %v10458_v16 }
 0x2b3   : > { %9665 = vmatprep.subr.bf16.mxu0 %v10459_v17 }
 0x2b5   : > { %2266 = vmatpush2.bf16.msra.mxu1 %v10456_v18 }
 0x2b6   : > { %9666 = vmatpush3.bf16.msra.mxu0 %v10460_v19  ;;  %9869 = vmatprep.subr.bf16.mxu1 %v11835_v21 }
 0x2b7   : > { %9913 = vmatprep.subr.bf16.mxu0 %v11835_v21 }
 0x2b8   : > { %2268 = vmatmul.mubr.bf16.vlgmr.msra.gmra.mxu1 %v12183_v35 }
 0x2b9   : > { %2350 = vmatmul.mubr.bf16.vlgmr.msra.gmra.mxu0 %v12183_v35  ;;  %9870 = vmatpush3.bf16.msra.mxu1 %v10461_v20  ;;  %v10465_v35 = vld [vmem:[#allocation8 + $0x578] ss:$36 sps:$4 sm:$0xff]  }
 0x2ba   : > { %9871 = vmatprep.subr.bf16.mxu1 %v11835_v21  ;;  %9885 = vmatprep.mubr.msk.bf16.mxu1 %vm11836_vm0, %v11835_v21 }
 0x2bb   : > { %9915 = vmatprep.mubr.msk.bf16.mxu0 %vm11836_vm0, %v11835_v21 }
 0x2bd   : > { %9872 = vmatpush3.bf16.msra.mxu1 %v10462_v22 }
 0x2be   : > { %9873 = vmatprep.subr.bf16.mxu1 %v11835_v21 }
 0x2c1   : > { %9874 = vmatpush3.bf16.msra.mxu1 %v10463_v23 }
 0x2c2   : > { %9875 = vmatprep.subr.bf16.mxu1 %v11835_v21 }
 0x2c5   : > { %9876 = vmatpush3.bf16.msra.mxu1 %v10464_v24 }
 0x2c6   : > { %9877 = vmatprep.subr.bf16.mxu1 %v11835_v21 }
 0x2c9   : > { %9878 = vmatpush3.bf16.msra.mxu1 %v10465_v35 }
 0x2ca   : > { %9879 = vmatprep.subr.bf16.mxu1 %v11835_v21 }
 0x2cd   : > { %9880 = vmatpush3.bf16.msra.mxu1 %v10466_v25 }
 0x2ce   : > { %9881 = vmatprep.subr.bf16.mxu1 %v11835_v21 }
 0x2d1   : > { %9882 = vmatpush3.bf16.msra.mxu1 %v10467_v26 }
 0x2d2   : > { %9883 = vmatprep.subr.bf16.mxu1 %v11835_v21 }
 0x2d5   : > { %9884 = vmatpush3.bf16.msra.mxu1 %v10468_v27 }
 0x2d6   : > { %9889 = vmatprep.subr.bf16.mxu1 %v11835_v21 }
 0x2d8   : > { %9886 = vmatmul.mubr.bf16.vlgmr.msra.gmra.mxu1 %v12181_v34  ;;  %v2064_v28 = vpop.f32.mrf.mxu1 }
 0x2d9   : > { %v2023_v29 = vpop.f32.mrf.mxu0  ;;  %9891 = vmatprep.mubr.msk.bf16.mxu1 %vm11836_vm0, %v11835_v21 }
 0x2da   : > { %v2065_v32 = vadd.f32 %v2064_v28, %v2023_v29  ;;  %v2066_v33 = vpop.f32.mrf.mxu1 }
 0x2db   : > { %v2025_v31 = vpop.f32.mrf.mxu0 }
 0x2dc   : > { %v2402_v36 = vpack.c.bf16 %v2065_v32, %v2065_v32  ;;  %v2067_v37 = vadd.f32 %v2066_v33, %v2025_v31  ;;  %v2068_v38 = vpop.f32.mrf.mxu1  ;;  %v2400_v31 = vand.u32 127, %v605_v5 }
 0x2dd   : > { %v2027_v39 = vpop.f32.mrf.mxu0 }
 0x2de   : > { %v2411_v40 = vsel %vm2406_vm1, %v2402_v36, 0  ;;  %v12220_v41 = vpack.c.bf16 %v2067_v37, %v2067_v37  ;;  %v2069_v42 = vpop.f32.mrf.mxu1  ;;  %2518 = vrot.lane.b32.xlu0 %v2402_v36, %s11837_s2  ;;  %vm12248_vm3 = vcmp.le.s32.totalorder %v2400_v31, %v12159_v6 }
 0x2df   : > { %v2028_v34 = vpop.f32.mrf.mxu0  ;;  %9890 = vmatpush3.bf16.xpose.msra.mxu1 %v2411_v40 }
 0x2e0   : > { %v2636_v43 = vsel %vm2406_vm1, %v12220_v41, 0  ;;  %9895 = vmatprep.subr.bf16.mxu1 %v11835_v21 }
 0x2e1   : > { %9914 = vmatpush3.bf16.xpose.msra.mxu0 %v2636_v43 }
 0x2e2   : > { %9925 = vmatprep.subr.bf16.mxu0 %v11835_v21 }
 0x2f9   : > { %v2146_v44 = vpop.f32.mrf.mxu0 }
 0x2fb   : > { %v2148_v45 = vpop.f32.mrf.mxu0 }
 0x2fd   : > { %v2150_v46 = vpop.f32.mrf.mxu0 }
 0x2ff   : > { %v2151_v47 = vpop.f32.mrf.mxu0 }
 0x318   : > { %v2105_v48 = vpop.f32.mrf.mxu1 }
 0x319   : > { %v2147_v49 = vadd.f32 %v2146_v44, %v2105_v48 }
 0x31a   : > { %v2107_v50 = vpop.f32.mrf.mxu1 }
 0x31b   : > { %v12227_v51 = vpack.c.bf16 %v2147_v49, %v2147_v49  ;;  %v2149_v52 = vadd.f32 %v2148_v45, %v2107_v50 }
 0x31c   : > { %v2109_v53 = vpop.f32.mrf.mxu1 }
 0x31d   : > { %v2403_v54 = vmul.f32 0.05103104, %v2149_v52  ;;  %2964 = vrot.lane.b32.xlu0 %v12227_v51, %s11837_s2 }
 0x31e   : > { %v2110_v55 = vpop.f32.mrf.mxu1 }
 0x31f   : > { %v2404_v56 = vpack.c.bf16 %v2403_v54, %v2403_v54 }
 0x321   : > { %9892 = vmatmul.mubr.msk.bf16.vlgmr.msra.gmra.mxu1 %vm2406_vm1, %v2404_v56 }
 0x322   : > { %9897 = vmatprep.mubr.msk.bf16.mxu1 %vm11836_vm0, %v11835_v21 }
 0x338   : > { %v2228_v57 = vpop.f32.mrf.mxu1 }
 0x339   : > { %v2187_v59 = vpop.f32.mrf.mxu0 }
 0x33a   : > { %v2229_v60 = vadd.f32 %v2228_v57, %v2187_v59  ;;  %v2230_v61 = vpop.f32.mrf.mxu1 }
 0x33b   : > { %v2189_v62 = vpop.f32.mrf.mxu0 }
 0x33c   : > { %v2629_v63 = vmul.f32 0.05103104, %v2229_v60  ;;  %v2231_v0 = vadd.f32 %v2230_v61, %v2189_v62  ;;  %v2232_v30 = vpop.f32.mrf.mxu1 }
 0x33d   : > { %v2191_v1 = vpop.f32.mrf.mxu0 }
 0x33e   : > { %v2630_v2 = vpack.c.bf16 %v2629_v63, %v2629_v63  ;;  %v2233_v3 = vpop.f32.mrf.mxu1  ;;  %v2852_v52 = vmul.f32 0.05103104, %v2231_v0  ;;  %v2859_v0 = vsel %vm2406_vm1, %v12227_v51, 0 }
 0x33f   : > { %v2192_v4 = vpop.f32.mrf.mxu0 }
 0x340   : > { %9916 = vmatmul.mubr.msk.bf16.vlgmr.msra.gmra.mxu0 %vm2406_vm1, %v2630_v2  ;;  %v2853_v53 = vpack.c.bf16 %v2852_v52, %v2852_v52 }
 0x341   : > { %9927 = vmatprep.mubr.msk.bf16.mxu0 %vm11836_vm0, %v11835_v21 }
 0x350   : > { %v2519_v62 = vpop.permute.xlu0 %2518 }
 0x351   : > { %v2524_v1 = vsel %vm2406_vm1, %v2519_v62, 0 }
 0x359   : > { %v2310_v7 = vpop.f32.mrf.mxu0 }
 0x35b   : > { %v2312_v11 = vpop.f32.mrf.mxu0 }
 0x35d   : > { %v2314_v12 = vpop.f32.mrf.mxu0 }
 0x35f   : > { %v2315_v13 = vpop.f32.mrf.mxu0 }
 0x378   : > { %v2269_v14 = vpop.f32.mrf.mxu1 }
 0x379   : > { %v2311_v15 = vadd.f32 %v2310_v7, %v2269_v14  ;;  %v9667_v16 = vpop.f32.mrf.mxu0 }
 0x37a   : > { %v2271_v17 = vpop.f32.mrf.mxu1 }
 0x37b   : > { %v12237_v18 = vpack.c.bf16 %v2311_v15, %v2311_v15  ;;  %v12239_v19 = vadd.f32 %v2312_v11, %v2271_v17  ;;  %v9668_v20 = vpop.f32.mrf.mxu0 }
 0x37c   : > { %v9669_v22 = vadd.f32 %v9668_v20, %v9667_v16  ;;  %v2273_v23 = vpop.f32.mrf.mxu1 }
 0x37d   : > { %v2472_v24 = vsel %vm2470_vm2, %v12237_v18, 0  ;;  %v9670_v35 = vpop.f32.mrf.mxu0 }
 0x37e   : > { %v2274_v25 = vpop.f32.mrf.mxu1  ;;  %9896 = vmatpush3.bf16.msra.mxu1 %v2472_v24 }
 0x37f   : > { %v9671_v26 = vpop.f32.mrf.mxu0  ;;  %9901 = vmatprep.subr.bf16.mxu1 %v11835_v21 }
 0x38f   : > { %v2965_v51 = vpop.permute.xlu0 %2964 }
 0x398   : > { %v2391_v27 = vpop.f32.mrf.mxu1 }
 0x399   : > { %v12244_v28 = vadd.f32 %v9669_v22, %v2391_v27 }
 0x39a   : > { %v9887_v29 = vpop.f32.mrf.mxu1 }
 0x39c   : > { %v2394_v32 = vpop.f32.mrf.mxu1 }
 0x39e   : > { %v9888_v33 = vpop.f32.mrf.mxu1 }
 0x3e1   : > { %v2447_v37 = vpop.f32.mrf.mxu1 }
 0x3e2   : > { %v2453_v38 = vsel %vm12248_vm3, %v2447_v37, -inf }
 0x3e3   : > { %v9893_v39 = vpop.f32.mrf.mxu1  ;;  %v2455_v40 = vsel %vm2454_vm4, %v2453_v38, -inf }
 0x3e4   : > { %2456 = vmax.xlane.f32.xlu1 %v2455_v40 }
 0x3e5   : > { %v2450_v42 = vpop.f32.mrf.mxu1 }
 0x3e7   : > { %v9894_v34 = vpop.f32.mrf.mxu1 }
 0x400   : > { %v2672_v43 = vpop.f32.mrf.mxu0 }
 0x401   : > { %v2678_v54 = vsel %vm12248_vm3, %v2672_v43, -inf }
 0x402   : > { %v9917_v44 = vpop.f32.mrf.mxu0  ;;  %v2679_v55 = vsel %vm2454_vm4, %v2678_v54, -inf }
 0x404   : > { %v2675_v45 = vpop.f32.mrf.mxu0 }
 0x406   : > { %v9918_v5 = vpop.f32.mrf.mxu0 }
 0x46d   : > { %v2457_v46 = vpop.xlane.xlu1 %2456 }
 0x46e   : > { %v2458_v47 = vsub.f32 %v2453_v38, %v2457_v46 }
 0x470   : > { %v2459_v48 = vmul.f32 1.442695, %v2458_v47 }
 0x472   : > { %11383 = vpow2.f32 %v2459_v48 }
 0x47f   : > { %v11384_v49 = vpop.eup %11383 }
 0x480   : > { %v2461_v50 = vsel %vm2454_vm4, %v11384_v49, 0.0 }
 0x481   : > { %2462 = vadd.xlane.f32.xlu1 %v2461_v50 }
 0x492   : > { %2515 = vrot.lane.b32.xlu1 %v2404_v56, %s11837_s2 }
 0x496   : > { %2741 = vrot.lane.b32.xlu1 %v12220_v41, %s11837_s2 }
 0x49a   : > { %2738 = vrot.lane.b32.xlu1 %v2630_v2, %s11837_s2  ;;  %v2970_v2 = vsel %vm2406_vm1, %v2965_v51, 0 }
 0x49e   : > { %2961 = vrot.lane.b32.xlu1 %v2853_v53, %s11837_s2 }
 0x4c2   : > { %2680 = vmax.xlane.f32.xlu1 %v2679_v55 }
 0x50a   : > { %v2463_v57 = vpop.xlane.xlu1 %2462 }
 0x50b   : > { %11385 = vrcp.f32 %v2463_v57 }
 0x50e   : > { %v2516_v59 = vpop.permute.xlu1 %2515 }
 0x512   : > { %v2742_v60 = vpop.permute.xlu1 %2741 }
 0x513   : > { %v2747_v56 = vsel %vm2406_vm1, %v2742_v60, 0 }
 0x514   : > { %9926 = vmatpush3.bf16.xpose.msra.mxu0 %v2747_v56 }
 0x515   : > { %9937 = vmatprep.subr.bf16.mxu0 %v11835_v21 }
 0x516   : > { %v2739_v63 = vpop.permute.xlu1 %2738 }
 0x518   : > { %v11386_v41 = vpop.eup %11385 }
 0x519   : > { %v2465_v61 = vmul.f32 %v11386_v41, %v11384_v49 }
 0x51a   : > { %v2962_v3 = vpop.permute.xlu1 %2961 }
 0x51b   : > { %9928 = vmatmul.mubr.msk.bf16.vlgmr.msra.gmra.mxu0 %vm2406_vm1, %v2739_v63  ;;  %v2466_v30 = vpack.c.bf16 %v2465_v61, %v2465_v61 }
 0x51c   : > { %9938 = vmatpush3.bf16.xpose.msra.mxu0 %v2859_v0  ;;  %9939 = vmatprep.mubr.msk.bf16.mxu0 %vm11836_vm0, %v11835_v21 }
 0x51d   : > { %9898 = vmatmul.mubr.msk.bf16.vlgmr.msra.gmra.mxu1 %vm2454_vm4, %v2466_v30  ;;  %9949 = vmatprep.subr.bf16.mxu0 %v11835_v21 }
 0x51e   : > { %9902 = vmatpush3.bf16.xpose.msra.mxu1 %v2524_v1  ;;  %9903 = vmatprep.mubr.msk.bf16.mxu1 %vm11836_vm0, %v11835_v21 }
 0x51f   : > { %9907 = vmatprep.subr.bf16.mxu1 %v11835_v21 }
 0x523   : > { %9940 = vmatmul.mubr.msk.bf16.vlgmr.msra.gmra.mxu0 %vm2406_vm1, %v2853_v53 }
 0x524   : > { %9950 = vmatpush3.bf16.xpose.msra.mxu0 %v2970_v2  ;;  %9951 = vmatprep.mubr.msk.bf16.mxu0 %vm11836_vm0, %v11835_v21  ;;  %v2854_v2 = vpack.c.bf16 %v12244_v28, %v12244_v28 }
 0x525   : > { %9904 = vmatmul.mubr.msk.bf16.vlgmr.msra.gmra.mxu1 %vm2406_vm1, %v2516_v59 }
 0x526   : > { %9909 = vmatprep.mubr.msk.bf16.mxu1 %vm11836_vm0, %v11835_v21 }
 0x52b   : > { %9952 = vmatmul.mubr.msk.bf16.vlgmr.msra.gmra.mxu0 %vm2406_vm1, %v2962_v3  ;;  %v2631_v3 = vpack.c.bf16 %v12239_v19, %v12239_v19 }
 0x54b   : > { %v2681_v7 = vpop.xlane.xlu1 %2680 }
 0x54c   : > { %v2682_v13 = vsub.f32 %v2678_v54, %v2681_v7 }
 0x54e   : > { %v2683_v20 = vmul.f32 1.442695, %v2682_v13 }
 0x550   : > { %11387 = vpow2.f32 %v2683_v20  ;;  %v2695_v20 = vsel %vm2470_vm2, %v2631_v3, 0 }
 0x55d   : > { %v11388_v46 = vpop.eup %11387 }
 0x55e   : > { %v2685_v47 = vsel %vm2454_vm4, %v11388_v46, 0.0 }
 0x5db   : > { %v2783_v4 = vpop.f32.mrf.mxu0 }
 0x5dc   : > { %v2789_v32 = vsel %vm12248_vm3, %v2783_v4, -inf }
 0x5dd   : > { %v12285_v11 = vpop.f32.mrf.mxu1  ;;  %v9929_v12 = vpop.f32.mrf.mxu0  ;;  %v2790_v39 = vsel %vm2454_vm4, %v2789_v32, -inf }
 0x5df   : > { %v9899_v14 = vpop.f32.mrf.mxu1  ;;  %v2786_v15 = vpop.f32.mrf.mxu0 }
 0x5e1   : > { %v2511_v16 = vpop.f32.mrf.mxu1  ;;  %v9930_v17 = vpop.f32.mrf.mxu0 }
 0x5e3   : > { %v9900_v22 = vpop.f32.mrf.mxu1  ;;  %v2895_v23 = vpop.f32.mrf.mxu0 }
 0x5e4   : > { %v2901_v40 = vsel %vm12248_vm3, %v2895_v23, -inf }
 0x5e5   : > { %v2560_v24 = vpop.f32.mrf.mxu1  ;;  %v9941_v35 = vpop.f32.mrf.mxu0  ;;  %v2902_v43 = vsel %vm2454_vm4, %v2901_v40, -inf }
 0x5e6   : > { %v2566_v25 = vsel %vm12248_vm3, %v2560_v24, -inf }
 0x5e7   : > { %v9905_v26 = vpop.f32.mrf.mxu1  ;;  %v2898_v27 = vpop.f32.mrf.mxu0  ;;  %v2567_v29 = vsel %vm2454_vm4, %v2566_v25, -inf }
 0x5e8   : > { %2568 = vmax.xlane.f32.xlu0 %v2567_v29 }
 0x5e9   : > { %v2563_v33 = vpop.f32.mrf.mxu1  ;;  %v9942_v31 = vpop.f32.mrf.mxu0 }
 0x5eb   : > { %v9906_v37 = vpop.f32.mrf.mxu1  ;;  %v3006_v38 = vpop.f32.mrf.mxu0 }
 0x5ec   : > { %2791 = vmax.xlane.f32.xlu0 %v2790_v39  ;;  %v3012_v44 = vsel %vm12248_vm3, %v3006_v38, -inf }
 0x5ed   : > { %v9953_v42 = vpop.f32.mrf.mxu0  ;;  %v3013_v5 = vsel %vm2454_vm4, %v3012_v44, -inf }
 0x5ef   : > { %v3009_v34 = vpop.f32.mrf.mxu0 }
 0x5f0   : > { %2903 = vmax.xlane.f32.xlu0 %v2902_v43  ;;  %v10469_v34 = vld [vmem:[#allocation10 + $0xa8] ss:$12 sps:$4 sm:$0xff]   ;;  %v10471_v43 = vld [vmem:[#allocation10 + $0xac] ss:$12 sps:$4 sm:$0xff]  }
 0x5f1   : > { %v9954_v45 = vpop.f32.mrf.mxu0  ;;  %3589 = vmatprep.subr.bf16.mxu0 %v10471_v43 }
 0x5f2   : > { %3590 = vmatpush1.bf16.msra.mxu0 %v10469_v34  ;;  %v10472_v45 = vld [vmem:[#allocation10 + $0x90] ss:$12 sps:$4 sm:$0xff]  }
 0x5f3   : > { %v10538_v34 = vld [vmem:[#allocation10 + $0x170] ss:$12 sps:$4 sm:$0xff]  }
 0x5f4   : > { %3014 = vmax.xlane.f32.xlu0 %v3013_v5  ;;  %v10477_v5 = vld [vmem:[#allocation10 + $0x7c] ss:$12 sps:$4 sm:$0xff]  }
 0x5f8   : > { %2686 = vadd.xlane.f32.xlu0 %v2685_v47  ;;  %v10492_v47 = vld [vmem:[#allocation10 + $0x22c] ss:$12 sps:$4 sm:$0xff]  }
 0x671   : > { %v2569_v48 = vpop.xlane.xlu0 %2568 }
 0x672   : > { %v2570_v49 = vsub.f32 %v2566_v25, %v2569_v48  ;;  %v10498_v48 = vld [vmem:[#allocation10 + $0x214] ss:$12 sps:$4 sm:$0xff]  }
 0x674   : > { %v2571_v53 = vmul.f32 1.442695, %v2570_v49  ;;  %v10475_v49 = vld [vmem:[#allocation10 + $0x78] ss:$12 sps:$4 sm:$0xff]  }
 0x675   : > { %v2792_v50 = vpop.xlane.xlu0 %2791 }
 0x676   : > { %v2793_v52 = vsub.f32 %v2789_v32, %v2792_v50  ;;  %v2918_v32 = vsel %vm2470_vm2, %v2854_v2, 0  ;;  %v10480_v50 = vld [vmem:[#allocation10 + $0x64] ss:$12 sps:$4 sm:$0xff]  }
 0x678   : > { %v2794_v54 = vmul.f32 1.442695, %v2793_v52  ;;  %v10496_v52 = vld [vmem:[#allocation10 + $0x210] ss:$12 sps:$4 sm:$0xff]  }
 0x679   : > { %v2904_v55 = vpop.xlane.xlu0 %2903 }
 0x67a   : > { %11389 = vpow2.f32 %v2794_v54  ;;  %v2905_v57 = vsub.f32 %v2901_v40, %v2904_v55  ;;  %v10478_v54 = vld [vmem:[#allocation10 + $0x60] ss:$12 sps:$4 sm:$0xff]  }
 0x67b   : > { %11391 = vpow2.f32 %v2571_v53  ;;  %v10504_v53 = vld [vmem:[#allocation10 + $0x1fc] ss:$12 sps:$4 sm:$0xff]   ;;  %v10483_v55 = vld [vmem:[#allocation10 + $0x4c] ss:$12 sps:$4 sm:$0xff]  }
 0x67c   : > { %v2906_v36 = vmul.f32 1.442695, %v2905_v57  ;;  %v10502_v57 = vld [vmem:[#allocation10 + $0x1f8] ss:$12 sps:$4 sm:$0xff]  }
 0x67d   : > { %v3015_v59 = vpop.xlane.xlu0 %3014 }
 0x67e   : > { %11393 = vpow2.f32 %v2906_v36  ;;  %v3016_v60 = vsub.f32 %v3012_v44, %v3015_v59  ;;  %v10474_v44 = vld [vmem:[#allocation10 + $0x94] ss:$12 sps:$4 sm:$0xff]   ;;  %v10510_v36 = vld [vmem:[#allocation10 + $0x1e4] ss:$12 sps:$4 sm:$0xff]  }
 0x67f   : > { %3591 = vmatprep.subr.bf16.mxu0 %v10474_v44  ;;  %v10481_v59 = vld [vmem:[#allocation10 + $0x48] ss:$12 sps:$4 sm:$0xff]  }
 0x680   : > { %v3017_v56 = vmul.f32 1.442695, %v3016_v60  ;;  %3592 = vmatpush1.bf16.msra.mxu0 %v10472_v45  ;;  %v10486_v60 = vld [vmem:[#allocation10 + $0x34] ss:$12 sps:$4 sm:$0xff]   ;;  %v10542_v45 = vld [vmem:[#allocation10 + $0xc4] ss:$12 sps:$4 sm:$0xff]  }
 0x681   : > { %v2687_v12 = vpop.xlane.xlu0 %2686  ;;  %3593 = vmatprep.subr.bf16.mxu0 %v10477_v5  ;;  %v10540_v5 = vld [vmem:[#allocation10 + $0xc0] ss:$12 sps:$4 sm:$0xff]  }
 0x682   : > { %11395 = vpow2.f32 %v3017_v56  ;;  %v10508_v56 = vld [vmem:[#allocation10 + $0x1e0] ss:$12 sps:$4 sm:$0xff]  }
 0x684   : > { %3594 = vmatpush1.bf16.msra.mxu0 %v10475_v49 }
 0x685   : > { %3595 = vmatprep.subr.bf16.mxu0 %v10480_v50 }
 0x687   : > { %v11390_v41 = vpop.eup %11389 }
 0x688   : > { %v2796_v61 = vsel %vm2454_vm4, %v11390_v41, 0.0  ;;  %v11392_v62 = vpop.eup %11391  ;;  %3596 = vmatpush1.bf16.msra.mxu0 %v10478_v54 }
 0x689   : > { %2797 = vadd.xlane.f32.xlu1 %v2796_v61  ;;  %v2573_v0 = vsel %vm2454_vm4, %v11392_v62, 0.0  ;;  %3597 = vmatprep.subr.bf16.mxu0 %v10483_v55  ;;  %v10484_v61 = vld [vmem:[#allocation10 + $0x30] ss:$12 sps:$4 sm:$0xff]  }
 0x68b   : > { %v11394_v63 = vpop.eup %11393 }
 0x68c   : > { %v2908_v30 = vsel %vm2454_vm4, %v11394_v63, 0.0  ;;  %3598 = vmatpush1.bf16.msra.mxu0 %v10481_v59 }
 0x68d   : > { %2574 = vadd.xlane.f32.xlu1 %v2573_v0  ;;  %2909 = vadd.xlane.f32.xlu0 %v2908_v30  ;;  %v10522_v0 = vld [vmem:[#allocation10 + $0x1b4] ss:$12 sps:$4 sm:$0xff]   ;;  %v10487_v30 = vld [vmem:[#allocation10 + $0x18] ss:$12 sps:$4 sm:$0xff]  }
 0x68e   : > { %3599 = vmatprep.subr.bf16.mxu0 %v10486_v60  ;;  %v10543_v60 = vld [vmem:[#allocation10 + $0x158] ss:$12 sps:$4 sm:$0xff]  }
 0x68f   : > { %v11396_v1 = vpop.eup %11395 }
 0x690   : > { %v3019_v51 = vsel %vm2454_vm4, %v11396_v1, 0.0  ;;  %3600 = vmatpush1.bf16.msra.mxu0 %v10484_v61 }
 0x691   : > { %3020 = vadd.xlane.f32.xlu0 %v3019_v51  ;;  %v10520_v51 = vld [vmem:[#allocation10 + $0x1b0] ss:$12 sps:$4 sm:$0xff]  }
 0x69e   : > { %2580 = vrot.lane.b32.xlu1 %v12237_v18, %s11837_s2 }
 0x6a2   : > { %3026 = vrot.lane.b32.xlu1 %v2854_v2, %s11837_s2  ;;  %v10528_v2 = vld [vmem:[#allocation10 + $0x19c] ss:$12 sps:$4 sm:$0xff]  }
 0x6a7   : > { %2803 = vrot.lane.b32.xlu0 %v2631_v3, %s11837_s2  ;;  %v10493_v3 = vld [vmem:[#allocation10] ss:$12 sps:$4 sm:$0xff]  }
 0x712   : > { %v2798_v4 = vpop.xlane.xlu1 %2797 }
 0x716   : > { %v2575_v7 = vpop.xlane.xlu1 %2574  ;;  %v2910_v18 = vpop.xlane.xlu0 %2909 }
 0x717   : > { %11397 = vrcp.f32 %v2575_v7  ;;  %v10526_v7 = vld [vmem:[#allocation10 + $0x198] ss:$12 sps:$4 sm:$0xff]  }
 0x718   : > { %11399 = vrcp.f32 %v2687_v12  ;;  %v10534_v12 = vld [vmem:[#allocation10 + $0x184] ss:$12 sps:$4 sm:$0xff]  }
 0x719   : > { %11401 = vrcp.f32 %v2798_v4  ;;  %v10501_v4 = vld [vmem:[#allocation10 + $0x16c] ss:$12 sps:$4 sm:$0xff]  }
 0x71a   : > { %v2581_v13 = vpop.permute.xlu1 %2580  ;;  %v3021_v19 = vpop.xlane.xlu0 %3020  ;;  %11403 = vrcp.f32 %v2910_v18  ;;  %v10532_v18 = vld [vmem:[#allocation10 + $0x180] ss:$12 sps:$4 sm:$0xff]  }
 0x71b   : > { %v2586_v14 = vsel %vm2470_vm2, %v2581_v13, 0  ;;  %11405 = vrcp.f32 %v3021_v19  ;;  %v10499_v13 = vld [vmem:[#allocation10 + $0x168] ss:$12 sps:$4 sm:$0xff]   ;;  %v10517_v19 = vld [vmem:[#allocation10 + $0x120] ss:$12 sps:$4 sm:$0xff]  }
 0x71c   : > { %9908 = vmatpush3.bf16.msra.mxu1 %v2586_v14  ;;  %v10507_v14 = vld [vmem:[#allocation10 + $0x154] ss:$12 sps:$4 sm:$0xff]  }
 0x71d   : > { %9919 = vmatprep.subr.bf16.mxu1 %v11835_v21 }
 0x71e   : > { %v2804_v23 = vpop.permute.xlu0 %2803  ;;  %v3027_v31 = vpop.permute.xlu1 %3026 }
 0x71f   : > { %v2809_v25 = vsel %vm2470_vm2, %v2804_v23, 0  ;;  %v3032_v39 = vsel %vm2470_vm2, %v3027_v31, 0  ;;  %v10531_v23 = vld [vmem:[#allocation10 + $0xf4] ss:$12 sps:$4 sm:$0xff]  }
 0x724   : > { %v11398_v28 = vpop.eup %11397 }
 0x725   : > { %v2577_v15 = vmul.f32 %v11398_v28, %v11392_v62  ;;  %v11400_v17 = vpop.eup %11399  ;;  %v10489_v62 = vld [vmem:[#allocation10 + $0x1c] ss:$12 sps:$4 sm:$0xff]  }
 0x726   : > { %v2689_v22 = vmul.f32 %v11400_v17, %v11388_v46  ;;  %v11402_v35 = vpop.eup %11401  ;;  %v10490_v46 = vld [vmem:[#allocation10 + $0x228] ss:$12 sps:$4 sm:$0xff]   ;;  %3601 = vmatprep.subr.bf16.mxu0 %v10489_v62  ;;  %v10505_v28 = vld [vmem:[#allocation10 + $0x150] ss:$12 sps:$4 sm:$0xff]   ;;  %v10544_v62 = vld [vmem:[#allocation10 + $0x98] ss:$12 sps:$4 sm:$0xff]  }
 0x727   : > { %v2578_v16 = vpack.c.bf16 %v2577_v15, %v2577_v15  ;;  %v2800_v26 = vmul.f32 %v11402_v35, %v11390_v41  ;;  %v11404_v29 = vpop.eup %11403  ;;  %v10516_v41 = vld [vmem:[#allocation10 + $0x1cc] ss:$12 sps:$4 sm:$0xff]   ;;  %3602 = vmatpush1.bf16.msra.mxu0 %v10487_v30  ;;  %v10513_v15 = vld [vmem:[#allocation10 + $0x13c] ss:$12 sps:$4 sm:$0xff]   ;;  %v10519_v17 = vld [vmem:[#allocation10 + $0x124] ss:$12 sps:$4 sm:$0xff]  }
 0x728   : > { %v2690_v24 = vpack.c.bf16 %v2689_v22, %v2689_v22  ;;  %v2912_v33 = vmul.f32 %v11404_v29, %v11394_v63  ;;  %v11406_v38 = vpop.eup %11405  ;;  %v10514_v63 = vld [vmem:[#allocation10 + $0x1c8] ss:$12 sps:$4 sm:$0xff]   ;;  %v10545_v30 = vld [vmem:[#allocation10 + $0x140] ss:$12 sps:$4 sm:$0xff]  }
 0x729   : > { %9910 = vmatmul.mubr.msk.bf16.vlgmr.msra.gmra.mxu1 %vm2454_vm4, %v2578_v16  ;;  %v2801_v27 = vpack.c.bf16 %v2800_v26, %v2800_v26  ;;  %v3023_v40 = vmul.f32 %v11406_v38, %v11396_v1  ;;  %v10495_v1 = vld [vmem:[#allocation10 + $0x4] ss:$12 sps:$4 sm:$0xff]   ;;  %v10523_v22 = vld [vmem:[#allocation10 + $0x108] ss:$12 sps:$4 sm:$0xff]  }
 0x72a   : > { %9920 = vmatpush3.bf16.msra.mxu1 %v2695_v20  ;;  %9921 = vmatprep.mubr.msk.bf16.mxu1 %vm11836_vm0, %v11835_v21  ;;  %v2913_v37 = vpack.c.bf16 %v2912_v33, %v2912_v33  ;;  %v10511_v16 = vld [vmem:[#allocation10 + $0x138] ss:$12 sps:$4 sm:$0xff]  }
 0x72b   : > { %9931 = vmatprep.subr.bf16.mxu1 %v11835_v21  ;;  %v3024_v42 = vpack.c.bf16 %v3023_v40, %v3023_v40  ;;  %3603 = vmatprep.subr.bf16.mxu0 %v10495_v1  ;;  %v10525_v20 = vld [vmem:[#allocation10 + $0x10c] ss:$12 sps:$4 sm:$0xff]   ;;  %v10537_v40 = vld [vmem:[#allocation10 + $0xdc] ss:$12 sps:$4 sm:$0xff]  }
 0x72c   : > { %3604 = vmatpush1.bf16.msra.mxu0 %v10493_v3  ;;  %v10547_v3 = vld [vmem:[#allocation10 + $0x80] ss:$12 sps:$4 sm:$0xff]  }
 0x72d   : > { %3605 = vmatprep.subr.bf16.mxu0 %v10501_v4  ;;  %v10548_v4 = vld [vmem:[#allocation10 + $0x128] ss:$12 sps:$4 sm:$0xff]  }
 0x730   : > { %3606 = vmatpush2.bf16.msra.mxu0 %v10499_v13  ;;  %v10552_v13 = vld [vmem:[#allocation10 + $0x200] ss:$12 sps:$4 sm:$0xff]  }
 0x731   : > { %9922 = vmatmul.mubr.msk.bf16.vlgmr.msra.gmra.mxu1 %vm2454_vm4, %v2690_v24  ;;  %3607 = vmatprep.subr.bf16.mxu0 %v10507_v14  ;;  %v10529_v24 = vld [vmem:[#allocation10 + $0xf0] ss:$12 sps:$4 sm:$0xff]  }
 0x732   : > { %9932 = vmatpush3.bf16.msra.mxu1 %v2809_v25  ;;  %9933 = vmatprep.mubr.msk.bf16.mxu1 %vm11836_vm0, %v11835_v21  ;;  %v10553_v14 = vld [vmem:[#allocation10 + $0x50] ss:$12 sps:$4 sm:$0xff]  }
 0x733   : > { %9943 = vmatprep.subr.bf16.mxu1 %v11835_v21 }
 0x734   : > { %3608 = vmatpush2.bf16.msra.mxu0 %v10505_v28  ;;  %v10555_v28 = vld [vmem:[#allocation10 + $0x1e8] ss:$12 sps:$4 sm:$0xff]  }
 0x735   : > { %3609 = vmatprep.subr.bf16.mxu0 %v10513_v15  ;;  %v10556_v15 = vld [vmem:[#allocation10 + $0x38] ss:$12 sps:$4 sm:$0xff]  }
 0x738   : > { %3610 = vmatpush2.bf16.msra.mxu0 %v10511_v16  ;;  %v10557_v16 = vld [vmem:[#allocation10 + $0xe0] ss:$12 sps:$4 sm:$0xff]  }
 0x739   : > { %9934 = vmatmul.mubr.msk.bf16.vlgmr.msra.gmra.mxu1 %vm2454_vm4, %v2801_v27  ;;  %3611 = vmatprep.subr.bf16.mxu0 %v10519_v17  ;;  %v10558_v17 = vld [vmem:[#allocation10 + $0x1d0] ss:$12 sps:$4 sm:$0xff]  }
 0x73a   : > { %9944 = vmatpush3.bf16.msra.mxu1 %v2918_v32  ;;  %9945 = vmatprep.mubr.msk.bf16.mxu1 %vm11836_vm0, %v11835_v21 }
 0x73b   : > { %9955 = vmatprep.subr.bf16.mxu1 %v11835_v21 }
 0x73c   : > { %3612 = vmatpush2.bf16.msra.mxu0 %v10517_v19  ;;  %v10559_v19 = vld [vmem:[#allocation10 + $0x20] ss:$12 sps:$4 sm:$0xff]  }
 0x73d   : > { %3613 = vmatprep.subr.bf16.mxu0 %v10525_v20  ;;  %v10560_v20 = vld [vmem:[#allocation10 + $0xc8] ss:$12 sps:$4 sm:$0xff]  }
 0x740   : > { %3614 = vmatpush2.bf16.msra.mxu0 %v10523_v22  ;;  %v10561_v22 = vld [vmem:[#allocation10 + $0x1b8] ss:$12 sps:$4 sm:$0xff]  }
 0x741   : > { %9946 = vmatmul.mubr.msk.bf16.vlgmr.msra.gmra.mxu1 %vm2454_vm4, %v2913_v37  ;;  %3615 = vmatprep.subr.bf16.mxu0 %v10531_v23  ;;  %v10562_v23 = vld [vmem:[#allocation10 + $0x8] ss:$12 sps:$4 sm:$0xff]  }
 0x742   : > { %9956 = vmatpush3.bf16.msra.mxu1 %v3032_v39  ;;  %9957 = vmatprep.mubr.msk.bf16.mxu1 %vm11836_vm0, %v11835_v21 }
 0x743   : > { %3630 = vmatprep.subr.bf16.mxu1 %v10492_v47 }
 0x744   : > { %3616 = vmatpush2.bf16.msra.mxu0 %v10529_v24  ;;  %v10563_v24 = vld [vmem:[#allocation10 + $0x1a0] ss:$12 sps:$4 sm:$0xff]  }
 0x745   : > { %3617 = vmatprep.subr.bf16.mxu0 %v10537_v40 }
 0x749   : > { %9958 = vmatmul.mubr.msk.bf16.vlgmr.msra.gmra.mxu1 %vm2454_vm4, %v3024_v42  ;;  %v10535_v42 = vld [vmem:[#allocation10 + $0xd8] ss:$12 sps:$4 sm:$0xff]  }
 0x74a   : > { %3662 = vmatprep.mubr.bf16.mxu1 %v11834_v58  ;;  %3631 = vmatpush1.bf16.msra.mxu1 %v10490_v46 }
 0x74b   : > { %3632 = vmatprep.subr.bf16.mxu1 %v10498_v48  ;;  %3618 = vmatpush2.bf16.msra.mxu0 %v10535_v42 }
 0x74c   : > { %3619 = vmatprep.subr.bf16.mxu0 %v10542_v45 }
 0x74e   : > { %3633 = vmatpush1.bf16.msra.mxu1 %v10496_v52 }
 0x74f   : > { %3634 = vmatprep.subr.bf16.mxu1 %v10504_v53  ;;  %3620 = vmatpush2.bf16.msra.mxu0 %v10540_v5 }
 0x750   : > { %9961 = vmatprep.subr.bf16.mxu0 %v11835_v21 }
 0x752   : > { %3635 = vmatpush1.bf16.msra.mxu1 %v10502_v57 }
 0x753   : > { %3636 = vmatprep.subr.bf16.mxu1 %v10510_v36  ;;  %v10539_v36 = vld [vmem:[#allocation10 + $0xb0] ss:$12 sps:$4 sm:$0xff]  }
 0x756   : > { %3637 = vmatpush1.bf16.msra.mxu1 %v10508_v56 }
 0x757   : > { %3638 = vmatprep.subr.bf16.mxu1 %v10516_v41 }
 0x75a   : > { %3639 = vmatpush1.bf16.msra.mxu1 %v10514_v63 }
 0x75b   : > { %3640 = vmatprep.subr.bf16.mxu1 %v10522_v0 }
 0x75e   : > { %3641 = vmatpush1.bf16.msra.mxu1 %v10520_v51 }
 0x75f   : > { %3642 = vmatprep.subr.bf16.mxu1 %v10528_v2  ;;  %v10546_v2 = vld [vmem:[#allocation10 + $0x230] ss:$12 sps:$4 sm:$0xff]  }
 0x762   : > { %3643 = vmatpush1.bf16.msra.mxu1 %v10526_v7  ;;  %v10549_v7 = vld [vmem:[#allocation10 + $0x218] ss:$12 sps:$4 sm:$0xff]  }
 0x763   : > { %3644 = vmatprep.subr.bf16.mxu1 %v10534_v12  ;;  %v10551_v12 = vld [vmem:[#allocation10 + $0x110] ss:$12 sps:$4 sm:$0xff]  }
 0x766   : > { %3645 = vmatpush1.bf16.msra.mxu1 %v10532_v18  ;;  %v10554_v18 = vld [vmem:[#allocation10 + $0xf8] ss:$12 sps:$4 sm:$0xff]  }
 0x767   : > { %9706 = vmatprep.subr.bf16.mxu1 %v10538_v34 }
 0x7e9   : > { %v2622_v35 = vpop.f32.mrf.mxu1 }
 0x7eb   : > { %v9911_v25 = vpop.f32.mrf.mxu1 }
 0x7ed   : > { %v2625_v26 = vpop.f32.mrf.mxu1 }
 0x7ef   : > { %v9912_v27 = vpop.f32.mrf.mxu1 }
 0x7f1   : > { %v2731_v29 = vpop.f32.mrf.mxu1 }
 0x7f3   : > { %v9923_v32 = vpop.f32.mrf.mxu1 }
 0x7f5   : > { %v2734_v33 = vpop.f32.mrf.mxu1 }
 0x7f7   : > { %v9924_v31 = vpop.f32.mrf.mxu1 }
 0x7f9   : > { %v2845_v37 = vpop.f32.mrf.mxu1 }
 0x7fa   : > { %v10152_v52 = vpack.i.bf16 %v2622_v35, %v2845_v37  ;;  %v10564_v35 = vld [vmem:[#allocation10 + $0x188] ss:$12 sps:$4 sm:$0xff]  }
 0x7fb   : > { %v9935_v38 = vpop.f32.mrf.mxu1 }
 0x7fc   : > { %v3188_v38 = vld [vmem:[#allocation11] sm:$0x7] }
 0x7fd   : > { %v2848_v39 = vpop.f32.mrf.mxu1 }
 0x7fe   : > { %v3197_v39 = vrot.slane %v3188_v38, %v12162_v8 }
 0x7ff   : > { %v9936_v43 = vpop.f32.mrf.mxu1 }
 0x800   : > { %v3201_v43 = vrot.slane %v3188_v38, %v12165_v9 }
 0x801   : > { %v2954_v44 = vpop.f32.mrf.mxu1 }
 0x803   : > { %v9947_v46 = vpop.f32.mrf.mxu1 }
 0x805   : > { %v2957_v47 = vpop.f32.mrf.mxu1 }
 0x807   : > { %v9948_v48 = vpop.f32.mrf.mxu1 }
 0x809   : > { %v3068_v49 = vpop.f32.mrf.mxu1 }
 0x80a   : > { %3083 = vrot.lane.b32.xlu1 %v3068_v49, %s11837_s2  ;;  %v11409_v49 = vld [vmem:[%s12112_s7 + $0x8] sm:$0xff] }
 0x80b   : > { %v9959_v50 = vpop.f32.mrf.mxu1 }
 0x80d   : > { %v3071_v53 = vpop.f32.mrf.mxu1 }
 0x80e   : > { %10153 = vrot.lane.b32.xlu1 %v10152_v52, %s11837_s2 }
 0x80f   : > { %v9960_v54 = vpop.f32.mrf.mxu1 }
 0x810   : > { %v11410_v54 = vld [vmem:[%s12112_s7] sm:$0xff] }
 0x87c   : > { %v3084_v55 = vpop.permute.xlu1 %3083 }
 0x87d   : > { %v3088_v57 = vsel %vm2406_vm1, %v2954_v44, %v3084_v55 }
 0x87e   : > { %v12339_v59 = vpack.c.bf16 %v3088_v57, %v3088_v57 }
 0x880   : > { %3663 = vmatmul.mubr.bf16.vlgmr.msra.gmra.mxu1 %v12339_v59  ;;  %v10154_v56 = vpop.permute.xlu1 %10153 }
 0x881   : > { %9707 = vmatpush3.bf16.msra.mxu1 %v10539_v36  ;;  %v10156_v41 = vunpack.i.h.bf16 %v10154_v56  ;;  %v10155_v61 = vunpack.i.l.bf16 %v10154_v56 }
 0x882   : > { %9708 = vmatprep.subr.bf16.mxu1 %v10543_v60 }
 0x883   : > { %v3086_v63 = vsel %vm2406_vm1, %v12285_v11, %v10156_v41  ;;  %v3087_v0 = vsel %vm2406_vm1, %v2731_v29, %v10155_v61  ;;  %v10550_v11 = vld [vmem:[#allocation10 + $0x68] ss:$12 sps:$4 sm:$0xff]  }
 0x884   : > { %v3089_v1 = vpack.c.bf16 %v3086_v63, %v3086_v63  ;;  %v3090_v51 = vpack.c.bf16 %v3087_v0, %v3087_v0  ;;  %v10565_v63 = vld [vmem:[#allocation16 + $0x2a0] ss:$48 sps:$4 sm:$0xff]   ;;  %v10567_v0 = vld [vmem:[#allocation16 + $0x2a4] ss:$48 sps:$4 sm:$0xff]  }
 0x885   : > { %9709 = vmatpush3.bf16.msra.mxu1 %v10544_v62 }
 0x886   : > { %3621 = vmatprep.mubr.bf16.mxu0 %v3090_v51  ;;  %3703 = vmatprep.mubr.bf16.mxu1 %v3090_v51  ;;  %v10573_v51 = vld [vmem:[#allocation16 + $0x1e4] ss:$48 sps:$4 sm:$0xff]  }
 0x887   : > { %3622 = vmatmul.mubr.bf16.vlgmr.msra.gmra.mxu0 %v3089_v1  ;;  %9710 = vmatprep.subr.bf16.mxu1 %v10545_v30  ;;  %v10570_v30 = vld [vmem:[#allocation16 + $0x244] ss:$48 sps:$4 sm:$0xff]  }
 0x888   : > { %9962 = vmatpush3.bf16.msra.mxu0 %v10546_v2  ;;  %9977 = vmatprep.mubr.msk.bf16.mxu0 %vm11836_vm0, %v11835_v21  ;;  %v10589_v2 = vld [vmem:[#allocation16 + $0x8a0] ss:$48 sps:$4 sm:$0xff]  }
 0x889   : > { %9711 = vmatpush3.bf16.msra.mxu1 %v10547_v3  ;;  %9963 = vmatprep.subr.bf16.mxu0 %v11835_v21  ;;  %v10591_v3 = vld [vmem:[#allocation16 + $0x8a4] ss:$48 sps:$4 sm:$0xff]  }
 0x88a   : > { %9712 = vmatprep.subr.bf16.mxu1 %v10548_v4  ;;  %v10571_v4 = vld [vmem:[#allocation16 + $0x1e0] ss:$48 sps:$4 sm:$0xff]  }
 0x88c   : > { %9964 = vmatpush3.bf16.msra.mxu0 %v10549_v7  ;;  %v10597_v7 = vld [vmem:[#allocation16 + $0x844] ss:$48 sps:$4 sm:$0xff]  }
 0x88d   : > { %9713 = vmatpush3.bf16.msra.mxu1 %v10550_v11  ;;  %9965 = vmatprep.subr.bf16.mxu0 %v11835_v21  ;;  %v10576_v11 = vld [vmem:[#allocation16 + $0x184] ss:$48 sps:$4 sm:$0xff]  }
 0x88e   : > { %9714 = vmatprep.subr.bf16.mxu1 %v10551_v12  ;;  %v10595_v12 = vld [vmem:[#allocation16 + $0x840] ss:$48 sps:$4 sm:$0xff]  }
 0x890   : > { %9966 = vmatpush3.bf16.msra.mxu0 %v10552_v13  ;;  %v10574_v13 = vld [vmem:[#allocation16 + $0x180] ss:$48 sps:$4 sm:$0xff]  }
 0x891   : > { %9715 = vmatpush3.bf16.msra.mxu1 %v10553_v14  ;;  %9967 = vmatprep.subr.bf16.mxu0 %v11835_v21  ;;  %v10579_v14 = vld [vmem:[#allocation16 + $0x124] ss:$48 sps:$4 sm:$0xff]  }
 0x892   : > { %9716 = vmatprep.subr.bf16.mxu1 %v10554_v18  ;;  %v10577_v18 = vld [vmem:[#allocation16 + $0x120] ss:$48 sps:$4 sm:$0xff]  }
 0x894   : > { %9968 = vmatpush3.bf16.msra.mxu0 %v10555_v28  ;;  %v10582_v28 = vld [vmem:[#allocation16 + $0xc4] ss:$48 sps:$4 sm:$0xff]  }
 0x895   : > { %9717 = vmatpush3.bf16.msra.mxu1 %v10556_v15  ;;  %9969 = vmatprep.subr.bf16.mxu0 %v11835_v21  ;;  %v10580_v15 = vld [vmem:[#allocation16 + $0xc0] ss:$48 sps:$4 sm:$0xff]  }
 0x896   : > { %9718 = vmatprep.subr.bf16.mxu1 %v10557_v16  ;;  %v10585_v16 = vld [vmem:[#allocation16 + $0x64] ss:$48 sps:$4 sm:$0xff]  }
 0x898   : > { %9970 = vmatpush3.bf16.msra.mxu0 %v10558_v17  ;;  %v10583_v17 = vld [vmem:[#allocation16 + $0x60] ss:$48 sps:$4 sm:$0xff]  }
 0x899   : > { %9719 = vmatpush3.bf16.msra.mxu1 %v10559_v19  ;;  %9971 = vmatprep.subr.bf16.mxu0 %v11835_v21  ;;  %v10588_v19 = vld [vmem:[#allocation16 + $0x4] ss:$48 sps:$4 sm:$0xff]  }
 0x89a   : > { %9720 = vmatprep.subr.bf16.mxu1 %v10560_v20  ;;  %v10586_v20 = vld [vmem:[#allocation16] ss:$48 sps:$4 sm:$0xff]  }
 0x89c   : > { %9972 = vmatpush3.bf16.msra.mxu0 %v10561_v22  ;;  %v10594_v22 = vld [vmem:[#allocation16 + $0x5a4] ss:$48 sps:$4 sm:$0xff]  }
 0x89d   : > { %9721 = vmatpush3.bf16.msra.mxu1 %v10562_v23  ;;  %9973 = vmatprep.subr.bf16.mxu0 %v11835_v21  ;;  %v10592_v23 = vld [vmem:[#allocation16 + $0x5a0] ss:$48 sps:$4 sm:$0xff]  }
 0x89e   : > { %5610 = vmatprep.subr.bf16.mxu1 %v10567_v0  ;;  %v10634_v0 = vld [vmem:[#allocation16 + $0x300] ss:$48 sps:$4 sm:$0xff]  }
 0x8a0   : > { %3704 = vmatmul.mubr.bf16.vlgmr.msra.gmra.mxu1 %v3089_v1  ;;  %9974 = vmatpush3.bf16.msra.mxu0 %v10563_v24  ;;  %v10568_v1 = vld [vmem:[#allocation16 + $0x240] ss:$48 sps:$4 sm:$0xff]   ;;  %v10600_v24 = vld [vmem:[#allocation16 + $0x544] ss:$48 sps:$4 sm:$0xff]  }
 0x8a1   : > { %9975 = vmatprep.subr.bf16.mxu0 %v11835_v21  ;;  %v3193_v21 = vrot.slane %v3188_v38, %v12168_v10  ;;  %5611 = vmatpush1.bf16.msra.mxu1 %v10565_v63  ;;  %v10631_v63 = vld [vmem:[#allocation16 + $0x600] ss:$48 sps:$4 sm:$0xff]  }
 0x8a2   : > { %5612 = vmatprep.subr.bf16.mxu1 %v10570_v30  ;;  %v10639_v30 = vld [vmem:[#allocation16 + $0x2ac] ss:$48 sps:$4 sm:$0xff]  }
 0x8a4   : > { %9976 = vmatpush3.bf16.msra.mxu0 %v10564_v35  ;;  %v10598_v35 = vld [vmem:[#allocation16 + $0x540] ss:$48 sps:$4 sm:$0xff]  }
 0x8a5   : > { %5613 = vmatpush1.bf16.msra.mxu1 %v10568_v1  ;;  %5651 = vmatprep.subr.bf16.mxu0 %v10591_v3  ;;  %v10642_v1 = vld [vmem:[#allocation16 + $0x8ac] ss:$48 sps:$4 sm:$0xff]  }
 0x8a6   : > { %5614 = vmatprep.subr.bf16.mxu1 %v10573_v51 }
 0x8a7   : > { %9978 = vmatmul.mubr.bf16.vlgmr.msra.gmra.mxu0 %v12339_v59  ;;  %v11411_v59 = vld [vmem:[%s12112_s7 + $0x10] sm:$0xff] }
 0x8a8   : > { %5683 = vmatprep.mubr.bf16.mxu0 %v11834_v58  ;;  %5652 = vmatpush1.bf16.msra.mxu0 %v10589_v2 }
 0x8a9   : > { %5653 = vmatprep.subr.bf16.mxu0 %v10597_v7  ;;  %5615 = vmatpush1.bf16.msra.mxu1 %v10571_v4  ;;  %v3754_v4 = vld [vmem:[#allocation13] sm:$0x7]  ;;  %v3755_v7 = vld [vmem:[#allocation14] sm:$0x7] }
 0x8aa   : > { %5616 = vmatprep.subr.bf16.mxu1 %v10576_v11  ;;  %v3785_v11 = vrot.slane %v3754_v4, %v12162_v8 }
 0x8ac   : > { %5654 = vmatpush1.bf16.msra.mxu0 %v10595_v12  ;;  %v3789_v12 = vrot.slane %v3754_v4, %v12165_v9 }
 0x8ad   : > { %5617 = vmatpush1.bf16.msra.mxu1 %v10574_v13  ;;  %v3781_v13 = vrot.slane %v3754_v4, %v12168_v10  ;;  %v10696_v4 = vld [vmem:[#allocation16 + $0x254] ss:$48 sps:$4 sm:$0xff]  }
 0x8ae   : > { %5618 = vmatprep.subr.bf16.mxu1 %v10579_v14 }
 0x8b1   : > { %5619 = vmatpush1.bf16.msra.mxu1 %v10577_v18  ;;  %v3804_v18 = vrot.slane %v3755_v7, %v12162_v8 }
 0x8b2   : > { %5620 = vmatprep.subr.bf16.mxu1 %v10582_v28  ;;  %v3808_v28 = vrot.slane %v3755_v7, %v12165_v9 }
 0x8b5   : > { %5621 = vmatpush1.bf16.msra.mxu1 %v10580_v15 }
 0x8b6   : > { %5622 = vmatprep.subr.bf16.mxu1 %v10585_v16 }
 0x8b9   : > { %5623 = vmatpush1.bf16.msra.mxu1 %v10583_v17 }
 0x8ba   : > { %5624 = vmatprep.subr.bf16.mxu1 %v10588_v19  ;;  %v3800_v19 = vrot.slane %v3755_v7, %v12168_v10  ;;  %v10691_v7 = vld [vmem:[#allocation16 + $0x548] ss:$48 sps:$4 sm:$0xff]  }
 0x8bd   : > { %5625 = vmatpush1.bf16.msra.mxu1 %v10586_v20 }
 0x8be   : > { %5626 = vmatprep.subr.bf16.mxu1 %v10594_v22 }
 0x8c1   : > { %5627 = vmatpush2.bf16.msra.mxu1 %v10592_v23 }
 0x8c2   : > { %5628 = vmatprep.subr.bf16.mxu1 %v10600_v24 }
 0x8c5   : > { %5629 = vmatpush2.bf16.msra.mxu1 %v10598_v35 }
 0x940   : > { %v3664_v25 = vpop.f32.mrf.mxu1 }
 0x942   : > { %v3666_v26 = vpop.f32.mrf.mxu1 }
 0x944   : > { %v3668_v27 = vpop.f32.mrf.mxu1 }
 0x946   : > { %v3669_v29 = vpop.f32.mrf.mxu1 }
 0x947   : > { %v3623_v32 = vpop.f32.mrf.mxu0 }
 0x948   : > { %v3624_v42 = vadd.f32 %v3623_v32, %v3193_v21  ;;  %v10603_v21 = vld [vmem:[#allocation16 + $0x7e4] ss:$48 sps:$4 sm:$0xff]  }
 0x949   : > { %v3625_v33 = vpop.f32.mrf.mxu0  ;;  %5655 = vmatprep.subr.bf16.mxu0 %v10603_v21  ;;  %v10651_v21 = vld [vmem:[#allocation16 + $0x1ec] ss:$48 sps:$4 sm:$0xff]  }
 0x94a   : > { %v3626_v40 = vadd.f32 %v3625_v33, %v3197_v39  ;;  %v3665_v46 = vadd.f32 %v3664_v25, %v3624_v42  ;;  %v10606_v42 = vld [vmem:[#allocation16 + $0x4e4] ss:$48 sps:$4 sm:$0xff]  }
 0x94b   : > { %v3627_v31 = vpop.f32.mrf.mxu0  ;;  %5630 = vmatprep.subr.bf16.mxu1 %v10606_v42  ;;  %v10649_v42 = vld [vmem:[#allocation16 + $0x1e8] ss:$48 sps:$4 sm:$0xff]  }
 0x94c   : > { %v3667_v44 = vadd.f32 %v3666_v26, %v3626_v40  ;;  %v12363_v55 = vadd.f32 %v11410_v54, %v3665_v46  ;;  %v10601_v40 = vld [vmem:[#allocation16 + $0x7e0] ss:$48 sps:$4 sm:$0xff]   ;;  %v10615_v46 = vld [vmem:[#allocation16 + $0x724] ss:$48 sps:$4 sm:$0xff]  }
 0x94d   : > { %v3628_v37 = vpop.f32.mrf.mxu0  ;;  %5656 = vmatpush1.bf16.msra.mxu0 %v10601_v40  ;;  %v10619_v54 = vld [vmem:[#allocation16 + $0x6c0] ss:$48 sps:$4 sm:$0xff]   ;;  %v10654_v40 = vld [vmem:[#allocation16 + $0x7ec] ss:$48 sps:$4 sm:$0xff]  }
 0x94e   : > { %v12360_v50 = vadd.f32 %v11409_v49, %v3667_v44  ;;  %v10607_v44 = vld [vmem:[#allocation16 + $0x780] ss:$48 sps:$4 sm:$0xff]  }
 0x94f   : > { %v10616_v49 = vld [vmem:[#allocation16 + $0x420] ss:$48 sps:$4 sm:$0xff]  }
 0x950   : > { %v3756_v56 = vadd.f32 %v12360_v50, %v12363_v55 }
 0x960   : > { %v9722_v34 = vpop.f32.mrf.mxu1 }
 0x962   : > { %v9723_v45 = vpop.f32.mrf.mxu1 }
 0x963   : > { %v9724_v5 = vadd.f32 %v9723_v45, %v9722_v34  ;;  %v10604_v34 = vld [vmem:[#allocation16 + $0x4e0] ss:$48 sps:$4 sm:$0xff]  }
 0x964   : > { %v9725_v47 = vpop.f32.mrf.mxu1  ;;  %5631 = vmatpush2.bf16.msra.mxu1 %v10604_v34  ;;  %v10610_v45 = vld [vmem:[#allocation16 + $0x480] ss:$48 sps:$4 sm:$0xff]   ;;  %v10652_v34 = vld [vmem:[#allocation16 + $0x7e8] ss:$48 sps:$4 sm:$0xff]  }
 0x965   : > { %v3706_v48 = vadd.f32 %v9724_v5, %v3201_v43  ;;  %v10609_v43 = vld [vmem:[#allocation16 + $0x784] ss:$48 sps:$4 sm:$0xff]   ;;  %v10613_v47 = vld [vmem:[#allocation16 + $0x720] ss:$48 sps:$4 sm:$0xff]  }
 0x966   : > { %v9726_v52 = vpop.f32.mrf.mxu1  ;;  %v10612_v5 = vld [vmem:[#allocation16 + $0x484] ss:$48 sps:$4 sm:$0xff]   ;;  %5657 = vmatprep.subr.bf16.mxu0 %v10609_v43  ;;  %v10657_v43 = vld [vmem:[#allocation16 + $0x18c] ss:$48 sps:$4 sm:$0xff]  }
 0x967   : > { %v3745_v53 = vpop.f32.mrf.mxu0  ;;  %5632 = vmatprep.subr.bf16.mxu1 %v10612_v5  ;;  %5658 = vmatpush1.bf16.msra.mxu0 %v10607_v44  ;;  %v10621_v52 = vld [vmem:[#allocation16 + $0x6c4] ss:$48 sps:$4 sm:$0xff]   ;;  %v10660_v44 = vld [vmem:[#allocation16 + $0x78c] ss:$48 sps:$4 sm:$0xff]   ;;  %v10658_v5 = vld [vmem:[#allocation16 + $0x788] ss:$48 sps:$4 sm:$0xff]  }
 0x968   : > { %v3746_v57 = vadd.f32 %v3745_v53, %v3706_v48  ;;  %v10618_v48 = vld [vmem:[#allocation16 + $0x424] ss:$48 sps:$4 sm:$0xff]   ;;  %5633 = vmatpush2.bf16.msra.mxu1 %v10610_v45  ;;  %5659 = vmatprep.subr.bf16.mxu0 %v10615_v46  ;;  %v10655_v45 = vld [vmem:[#allocation16 + $0x188] ss:$48 sps:$4 sm:$0xff]   ;;  %v10663_v46 = vld [vmem:[#allocation16 + $0x12c] ss:$48 sps:$4 sm:$0xff]  }
 0x969   : > { %v9979_v36 = vpop.f32.mrf.mxu0  ;;  %5634 = vmatprep.subr.bf16.mxu1 %v10618_v48  ;;  %v10624_v53 = vld [vmem:[#allocation16 + $0x3c4] ss:$48 sps:$4 sm:$0xff]   ;;  %v10661_v48 = vld [vmem:[#allocation16 + $0x128] ss:$48 sps:$4 sm:$0xff]  }
 0x96a   : > { %v12366_v60 = vadd.f32 %v11411_v59, %v3746_v57  ;;  %v10622_v57 = vld [vmem:[#allocation16 + $0x3c0] ss:$48 sps:$4 sm:$0xff]   ;;  %v10627_v36 = vld [vmem:[#allocation16 + $0x664] ss:$48 sps:$4 sm:$0xff]  }
 0x96b   : > { %v3748_v41 = vpop.f32.mrf.mxu0  ;;  %5660 = vmatpush1.bf16.msra.mxu0 %v10613_v47  ;;  %v10630_v59 = vld [vmem:[#allocation16 + $0x364] ss:$48 sps:$4 sm:$0xff]   ;;  %v10666_v47 = vld [vmem:[#allocation16 + $0x72c] ss:$48 sps:$4 sm:$0xff]  }
 0x96c   : > { %v3757_v61 = vadd.f32 %v3756_v56, %v12366_v60  ;;  %5635 = vmatpush2.bf16.msra.mxu1 %v10616_v49  ;;  %5661 = vmatprep.subr.bf16.mxu0 %v10621_v52  ;;  %v10625_v56 = vld [vmem:[#allocation16 + $0x660] ss:$48 sps:$4 sm:$0xff]   ;;  %v10664_v49 = vld [vmem:[#allocation16 + $0x728] ss:$48 sps:$4 sm:$0xff]   ;;  %v10669_v52 = vld [vmem:[#allocation16 + $0xcc] ss:$48 sps:$4 sm:$0xff]  }
 0x96d   : > { %v9980_v62 = vpop.f32.mrf.mxu0  ;;  %5636 = vmatprep.subr.bf16.mxu1 %v10624_v53  ;;  %v10628_v41 = vld [vmem:[#allocation16 + $0x360] ss:$48 sps:$4 sm:$0xff]   ;;  %v10672_v53 = vld [vmem:[#allocation16 + $0x6cc] ss:$48 sps:$4 sm:$0xff]  }
 0x96e   : > { %3758 = vadd.xlane.f32.xlu1 %v3757_v61  ;;  %v10633_v61 = vld [vmem:[#allocation16 + $0x604] ss:$48 sps:$4 sm:$0xff]  }
 0x96f   : > { %5662 = vmatpush1.bf16.msra.mxu0 %v10619_v54  ;;  %v10636_v62 = vld [vmem:[#allocation16 + $0x304] ss:$48 sps:$4 sm:$0xff]   ;;  %v10667_v54 = vld [vmem:[#allocation16 + $0xc8] ss:$48 sps:$4 sm:$0xff]  }
 0x970   : > { %5637 = vmatpush2.bf16.msra.mxu1 %v10622_v57  ;;  %5663 = vmatprep.subr.bf16.mxu0 %v10627_v36  ;;  %v10670_v57 = vld [vmem:[#allocation16 + $0x6c8] ss:$48 sps:$4 sm:$0xff]   ;;  %v10675_v36 = vld [vmem:[#allocation16 + $0x6c] ss:$48 sps:$4 sm:$0xff]  }
 0x971   : > { %5638 = vmatprep.subr.bf16.mxu1 %v10630_v59  ;;  %v10678_v59 = vld [vmem:[#allocation16 + $0x66c] ss:$48 sps:$4 sm:$0xff]  }
 0x973   : > { %5664 = vmatpush1.bf16.msra.mxu0 %v10625_v56  ;;  %v10673_v56 = vld [vmem:[#allocation16 + $0x68] ss:$48 sps:$4 sm:$0xff]  }
 0x974   : > { %5639 = vmatpush2.bf16.msra.mxu1 %v10628_v41  ;;  %5665 = vmatprep.subr.bf16.mxu0 %v10633_v61  ;;  %v10676_v41 = vld [vmem:[#allocation16 + $0x668] ss:$48 sps:$4 sm:$0xff]   ;;  %v10681_v61 = vld [vmem:[#allocation16 + $0xc] ss:$48 sps:$4 sm:$0xff]  }
 0x975   : > { %5640 = vmatprep.subr.bf16.mxu1 %v10636_v62  ;;  %v10684_v62 = vld [vmem:[#allocation16 + $0x60c] ss:$48 sps:$4 sm:$0xff]  }
 0x977   : > { %5666 = vmatpush1.bf16.msra.mxu0 %v10631_v63  ;;  %v10679_v63 = vld [vmem:[#allocation16 + $0x8] ss:$48 sps:$4 sm:$0xff]  }
 0x978   : > { %5641 = vmatpush2.bf16.msra.mxu1 %v10634_v0  ;;  %5692 = vmatprep.subr.bf16.mxu0 %v10639_v30  ;;  %v10682_v0 = vld [vmem:[#allocation16 + $0x608] ss:$48 sps:$4 sm:$0xff]   ;;  %v10687_v30 = vld [vmem:[#allocation16 + $0x5ac] ss:$48 sps:$4 sm:$0xff]  }
 0x979   : > { %5733 = vmatprep.subr.bf16.mxu1 %v10642_v1  ;;  %v10690_v1 = vld [vmem:[#allocation16 + $0x2b4] ss:$48 sps:$4 sm:$0xff]  }
 0x9f7   : > { %v3759_v25 = vpop.xlane.xlu1 %3758 }
 0x9f8   : > { %v3760_v26 = vmul.f32 0.0026041667, %v3759_v25 }
 0x9fa   : > { %v12372_v27 = vsub.f32 %v12363_v55, %v3760_v26  ;;  %v12375_v29 = vsub.f32 %v12360_v50, %v3760_v26  ;;  %v12378_v32 = vsub.f32 %v12366_v60, %v3760_v26  ;;  %v10637_v26 = vld [vmem:[#allocation16 + $0x2a8] ss:$48 sps:$4 sm:$0xff]  }
 0x9fc   : > { %v3764_v33 = vmul.f32 %v12372_v27, %v12372_v27  ;;  %v3765_v31 = vmul.f32 %v12375_v29, %v12375_v29  ;;  %v3766_v37 = vmul.f32 %v12378_v32, %v12378_v32 }
 0x9fe   : > { %v3767_v38 = vadd.f32 %v3765_v31, %v3764_v33 }
 0xa00   : > { %v3768_v39 = vadd.f32 %v3767_v38, %v3766_v37  ;;  %v10640_v37 = vld [vmem:[#allocation16 + $0x8a8] ss:$48 sps:$4 sm:$0xff]  }
 0xa02   : > { %3769 = vadd.xlane.f32.xlu0 %v3768_v39  ;;  %v10646_v39 = vld [vmem:[#allocation16 + $0x848] ss:$48 sps:$4 sm:$0xff]  }
 0xa8b   : > { %v3770_v51 = vpop.xlane.xlu0 %3769 }
 0xa8c   : > { %v3771_v2 = vmul.f32 0.0026041667, %v3770_v51  ;;  %v10685_v51 = vld [vmem:[#allocation16 + $0x5a8] ss:$48 sps:$4 sm:$0xff]  }
 0xa8e   : > { %v3772_v3 = vadd.f32 1e-05, %v3771_v2  ;;  %v10688_v2 = vld [vmem:[#allocation16 + $0x2b0] ss:$48 sps:$4 sm:$0xff]  }
 0xa90   : > { %11407 = vrsqrt.f32 %v3772_v3  ;;  %v10693_v3 = vld [vmem:[#allocation16 + $0x54c] ss:$48 sps:$4 sm:$0xff]  }
 0xa9d   : > { %v11408_v14 = vpop.eup %11407 }
 0xa9e   : > { %v3775_v15 = vmul.f32 %v11408_v14, %v12375_v29  ;;  %v3776_v16 = vmul.f32 %v11408_v14, %v12378_v32  ;;  %v3774_v17 = vmul.f32 %v11408_v14, %v12372_v27  ;;  %v10645_v29 = vld [vmem:[#allocation16 + $0x24c] ss:$48 sps:$4 sm:$0xff]   ;;  %v10643_v27 = vld [vmem:[#allocation16 + $0x248] ss:$48 sps:$4 sm:$0xff]  }
 0xa9f   : > { %v10648_v32 = vld [vmem:[#allocation16 + $0x84c] ss:$48 sps:$4 sm:$0xff]   ;;  %v10697_v14 = vld [vmem:[#allocation16 + $0x4e8] ss:$48 sps:$4 sm:$0xff]  }
 0xaa0   : > { %v3794_v20 = vmul.f32 %v3785_v11, %v3775_v15  ;;  %v3795_v22 = vmul.f32 %v3789_v12, %v3776_v16  ;;  %v3793_v23 = vmul.f32 %v3781_v13, %v3774_v17  ;;  %v10694_v11 = vld [vmem:[#allocation16 + $0x250] ss:$48 sps:$4 sm:$0xff]   ;;  %v10699_v12 = vld [vmem:[#allocation16 + $0x4ec] ss:$48 sps:$4 sm:$0xff]   ;;  %v10702_v13 = vld [vmem:[#allocation16 + $0x1f4] ss:$48 sps:$4 sm:$0xff]  }
 0xaa1   : > { %v10708_v15 = vld [vmem:[#allocation16 + $0x194] ss:$48 sps:$4 sm:$0xff]   ;;  %v10703_v16 = vld [vmem:[#allocation16 + $0x488] ss:$48 sps:$4 sm:$0xff]   ;;  %v10706_v17 = vld [vmem:[#allocation16 + $0x190] ss:$48 sps:$4 sm:$0xff]  }
 0xaa2   : > { %v3813_v24 = vadd.f32 %v3804_v18, %v3794_v20  ;;  %v3814_v35 = vadd.f32 %v3808_v28, %v3795_v22  ;;  %v3812_v25 = vadd.f32 %v3800_v19, %v3793_v23  ;;  %v10700_v18 = vld [vmem:[#allocation16 + $0x1f0] ss:$48 sps:$4 sm:$0xff]   ;;  %v10705_v28 = vld [vmem:[#allocation16 + $0x48c] ss:$48 sps:$4 sm:$0xff]   ;;  %v10714_v20 = vld [vmem:[#allocation16 + $0x134] ss:$48 sps:$4 sm:$0xff]  }
 0xaa3   : > { %v10711_v19 = vld [vmem:[#allocation16 + $0x42c] ss:$48 sps:$4 sm:$0xff]   ;;  %v10709_v22 = vld [vmem:[#allocation16 + $0x428] ss:$48 sps:$4 sm:$0xff]   ;;  %v10712_v23 = vld [vmem:[#allocation16 + $0x130] ss:$48 sps:$4 sm:$0xff]  }
 0xaa4   : > { %v12395_v33 = vpack.c.bf16 %v3813_v24, %v3813_v24  ;;  %v12397_v31 = vpack.c.bf16 %v3814_v35, %v3814_v35  ;;  %v12399_v38 = vpack.c.bf16 %v3812_v25, %v3812_v25  ;;  %v10717_v24 = vld [vmem:[#allocation16 + $0x3cc] ss:$48 sps:$4 sm:$0xff]   ;;  %v10720_v35 = vld [vmem:[#allocation16 + $0xd4] ss:$48 sps:$4 sm:$0xff]   ;;  %v10715_v25 = vld [vmem:[#allocation16 + $0x3c8] ss:$48 sps:$4 sm:$0xff]  }
 0xaa6   : > { %5642 = vmatprep.mubr.bf16.mxu1 %v12395_v33  ;;  %5684 = vmatmul.mubr.bf16.vlgmr.msra.gmra.mxu0 %v12397_v31 }
 0xaa7   : > { %5693 = vmatpush1.bf16.msra.mxu0 %v10637_v26  ;;  %5643 = vmatmul.mubr.bf16.vlgmr.msra.gmra.mxu1 %v12399_v38  ;;  %v10718_v26 = vld [vmem:[#allocation16 + $0xd0] ss:$48 sps:$4 sm:$0xff]  }
 0xaa8   : > { %5724 = vmatprep.mubr.bf16.mxu0 %v12395_v33  ;;  %5734 = vmatpush1.bf16.msra.mxu1 %v10640_v37  ;;  %v10723_v37 = vld [vmem:[#allocation16 + $0x36c] ss:$48 sps:$4 sm:$0xff]  }
 0xaa9   : > { %5694 = vmatprep.subr.bf16.mxu0 %v10645_v29  ;;  %5735 = vmatprep.subr.bf16.mxu1 %v10648_v32  ;;  %v10726_v29 = vld [vmem:[#allocation16 + $0x74] ss:$48 sps:$4 sm:$0xff]   ;;  %v10721_v32 = vld [vmem:[#allocation16 + $0x368] ss:$48 sps:$4 sm:$0xff]  }
 0xaaa   : > { %5765 = vmatprep.mubr.bf16.mxu1 %v11834_v58 }
 0xaab   : > { %5695 = vmatpush1.bf16.msra.mxu0 %v10643_v27  ;;  %v10724_v27 = vld [vmem:[#allocation16 + $0x70] ss:$48 sps:$4 sm:$0xff]  }
 0xaac   : > { %5736 = vmatpush1.bf16.msra.mxu1 %v10646_v39  ;;  %5696 = vmatprep.subr.bf16.mxu0 %v10651_v21  ;;  %v10729_v39 = vld [vmem:[#allocation16 + $0x30c] ss:$48 sps:$4 sm:$0xff]   ;;  %v10732_v21 = vld [vmem:[#allocation16 + $0x14] ss:$48 sps:$4 sm:$0xff]  }
 0xaad   : > { %5737 = vmatprep.subr.bf16.mxu1 %v10654_v40  ;;  %v10727_v40 = vld [vmem:[#allocation16 + $0x308] ss:$48 sps:$4 sm:$0xff]  }
 0xaaf   : > { %5697 = vmatpush1.bf16.msra.mxu0 %v10649_v42  ;;  %v10730_v42 = vld [vmem:[#allocation16 + $0x10] ss:$48 sps:$4 sm:$0xff]  }
 0xab0   : > { %5738 = vmatpush1.bf16.msra.mxu1 %v10652_v34  ;;  %5698 = vmatprep.subr.bf16.mxu0 %v10657_v43  ;;  %v10735_v34 = vld [vmem:[#allocation16 + $0x8b4] ss:$48 sps:$4 sm:$0xff]  }
 0xab1   : > { %5739 = vmatprep.subr.bf16.mxu1 %v10660_v44  ;;  %v10738_v43 = vld [vmem:[#allocation16 + $0x5b4] ss:$48 sps:$4 sm:$0xff]   ;;  %v10733_v44 = vld [vmem:[#allocation16 + $0x8b0] ss:$48 sps:$4 sm:$0xff]  }
 0xab3   : > { %5699 = vmatpush1.bf16.msra.mxu0 %v10655_v45  ;;  %v10736_v45 = vld [vmem:[#allocation16 + $0x5b0] ss:$48 sps:$4 sm:$0xff]  }
 0xab4   : > { %5740 = vmatpush1.bf16.msra.mxu1 %v10658_v5  ;;  %5700 = vmatprep.subr.bf16.mxu0 %v10663_v46  ;;  %v10741_v5 = vld [vmem:[#allocation16 + $0x854] ss:$48 sps:$4 sm:$0xff]  }
 0xab5   : > { %5741 = vmatprep.subr.bf16.mxu1 %v10666_v47  ;;  %v10744_v46 = vld [vmem:[#allocation16 + $0x554] ss:$48 sps:$4 sm:$0xff]   ;;  %v10739_v47 = vld [vmem:[#allocation16 + $0x850] ss:$48 sps:$4 sm:$0xff]  }
 0xab7   : > { %5701 = vmatpush1.bf16.msra.mxu0 %v10661_v48  ;;  %v10742_v48 = vld [vmem:[#allocation16 + $0x550] ss:$48 sps:$4 sm:$0xff]  }
 0xab8   : > { %5742 = vmatpush1.bf16.msra.mxu1 %v10664_v49  ;;  %5702 = vmatprep.subr.bf16.mxu0 %v10669_v52  ;;  %v10747_v49 = vld [vmem:[#allocation16 + $0x7f4] ss:$48 sps:$4 sm:$0xff]  }
 0xab9   : > { %5743 = vmatprep.subr.bf16.mxu1 %v10672_v53  ;;  %v10750_v52 = vld [vmem:[#allocation16 + $0x4f4] ss:$48 sps:$4 sm:$0xff]   ;;  %v10745_v53 = vld [vmem:[#allocation16 + $0x7f0] ss:$48 sps:$4 sm:$0xff]  }
 0xabb   : > { %5703 = vmatpush1.bf16.msra.mxu0 %v10667_v54  ;;  %v10748_v54 = vld [vmem:[#allocation16 + $0x4f0] ss:$48 sps:$4 sm:$0xff]  }
 0xabc   : > { %5744 = vmatpush1.bf16.msra.mxu1 %v10670_v57  ;;  %5704 = vmatprep.subr.bf16.mxu0 %v10675_v36  ;;  %v10753_v57 = vld [vmem:[#allocation16 + $0x794] ss:$48 sps:$4 sm:$0xff]  }
 0xabd   : > { %5745 = vmatprep.subr.bf16.mxu1 %v10678_v59  ;;  %v10756_v36 = vld [vmem:[#allocation16 + $0x494] ss:$48 sps:$4 sm:$0xff]   ;;  %v10751_v59 = vld [vmem:[#allocation16 + $0x790] ss:$48 sps:$4 sm:$0xff]  }
 0xabf   : > { %5705 = vmatpush1.bf16.msra.mxu0 %v10673_v56  ;;  %v10754_v56 = vld [vmem:[#allocation16 + $0x490] ss:$48 sps:$4 sm:$0xff]  }
 0xac0   : > { %5746 = vmatpush1.bf16.msra.mxu1 %v10676_v41  ;;  %5706 = vmatprep.subr.bf16.mxu0 %v10681_v61  ;;  %v10759_v41 = vld [vmem:[#allocation16 + $0x734] ss:$48 sps:$4 sm:$0xff]  }
 0xac1   : > { %5747 = vmatprep.subr.bf16.mxu1 %v10684_v62  ;;  %v10762_v61 = vld [vmem:[#allocation16 + $0x434] ss:$48 sps:$4 sm:$0xff]   ;;  %v10757_v62 = vld [vmem:[#allocation16 + $0x730] ss:$48 sps:$4 sm:$0xff]  }
 0xac3   : > { %5707 = vmatpush1.bf16.msra.mxu0 %v10679_v63  ;;  %v10760_v63 = vld [vmem:[#allocation16 + $0x430] ss:$48 sps:$4 sm:$0xff]  }
 0xac4   : > { %5748 = vmatpush1.bf16.msra.mxu1 %v10682_v0  ;;  %5708 = vmatprep.subr.bf16.mxu0 %v10687_v30  ;;  %v10765_v0 = vld [vmem:[#allocation16 + $0x6d4] ss:$48 sps:$4 sm:$0xff]  }
 0xac5   : > { %5774 = vmatprep.subr.bf16.mxu1 %v10690_v1  ;;  %v10768_v30 = vld [vmem:[#allocation16 + $0x3d4] ss:$48 sps:$4 sm:$0xff]   ;;  %v10763_v1 = vld [vmem:[#allocation16 + $0x6d0] ss:$48 sps:$4 sm:$0xff]  }
 0xac7   : > { %5709 = vmatpush2.bf16.msra.mxu0 %v10685_v51  ;;  %5766 = vmatmul.mubr.bf16.vlgmr.msra.gmra.mxu1 %v12397_v31  ;;  %v10766_v51 = vld [vmem:[#allocation16 + $0x3d0] ss:$48 sps:$4 sm:$0xff]  }
 0xac8   : > { %5775 = vmatpush1.bf16.msra.mxu1 %v10688_v2  ;;  %5806 = vmatprep.mubr.bf16.mxu1 %v12395_v33  ;;  %v10771_v2 = vld [vmem:[#allocation16 + $0x674] ss:$48 sps:$4 sm:$0xff]  }
 0xac9   : > { %5710 = vmatprep.subr.bf16.mxu0 %v10693_v3  ;;  %5776 = vmatprep.subr.bf16.mxu1 %v10696_v4  ;;  %v10774_v3 = vld [vmem:[#allocation16 + $0x374] ss:$48 sps:$4 sm:$0xff]   ;;  %v10769_v4 = vld [vmem:[#allocation16 + $0x670] ss:$48 sps:$4 sm:$0xff]  }
 0xacb   : > { %5711 = vmatpush2.bf16.msra.mxu0 %v10691_v7  ;;  %v10772_v7 = vld [vmem:[#allocation16 + $0x370] ss:$48 sps:$4 sm:$0xff]  }
 0xacc   : > { %5777 = vmatpush1.bf16.msra.mxu1 %v10694_v11  ;;  %5712 = vmatprep.subr.bf16.mxu0 %v10699_v12  ;;  %v10777_v11 = vld [vmem:[#allocation16 + $0x614] ss:$48 sps:$4 sm:$0xff]  }
 0xacd   : > { %5778 = vmatprep.subr.bf16.mxu1 %v10702_v13  ;;  %v10780_v12 = vld [vmem:[#allocation16 + $0x314] ss:$48 sps:$4 sm:$0xff]   ;;  %v10775_v13 = vld [vmem:[#allocation16 + $0x610] ss:$48 sps:$4 sm:$0xff]  }
 0xacf   : > { %5713 = vmatpush2.bf16.msra.mxu0 %v10697_v14  ;;  %v10778_v14 = vld [vmem:[#allocation16 + $0x310] ss:$48 sps:$4 sm:$0xff]  }
 0xad0   : > { %5779 = vmatpush1.bf16.msra.mxu1 %v10700_v18  ;;  %5714 = vmatprep.subr.bf16.mxu0 %v10705_v28  ;;  %v10783_v18 = vld [vmem:[#allocation16 + $0x2bc] ss:$48 sps:$4 sm:$0xff]  }
 0xad1   : > { %5780 = vmatprep.subr.bf16.mxu1 %v10708_v15  ;;  %v10786_v28 = vld [vmem:[#allocation16 + $0x8bc] ss:$48 sps:$4 sm:$0xff]   ;;  %v10781_v15 = vld [vmem:[#allocation16 + $0x2b8] ss:$48 sps:$4 sm:$0xff]  }
 0xad3   : > { %5715 = vmatpush2.bf16.msra.mxu0 %v10703_v16  ;;  %v10784_v16 = vld [vmem:[#allocation16 + $0x8b8] ss:$48 sps:$4 sm:$0xff]  }
 0xad4   : > { %5781 = vmatpush1.bf16.msra.mxu1 %v10706_v17  ;;  %5716 = vmatprep.subr.bf16.mxu0 %v10711_v19  ;;  %v10789_v17 = vld [vmem:[#allocation16 + $0x25c] ss:$48 sps:$4 sm:$0xff]  }
 0xad5   : > { %5782 = vmatprep.subr.bf16.mxu1 %v10714_v20  ;;  %v10792_v19 = vld [vmem:[#allocation16 + $0x85c] ss:$48 sps:$4 sm:$0xff]   ;;  %v10787_v20 = vld [vmem:[#allocation16 + $0x258] ss:$48 sps:$4 sm:$0xff]  }
 0xad7   : > { %5717 = vmatpush2.bf16.msra.mxu0 %v10709_v22  ;;  %v10790_v22 = vld [vmem:[#allocation16 + $0x858] ss:$48 sps:$4 sm:$0xff]  }
 0xad8   : > { %5783 = vmatpush1.bf16.msra.mxu1 %v10712_v23  ;;  %5718 = vmatprep.subr.bf16.mxu0 %v10717_v24  ;;  %v10795_v23 = vld [vmem:[#allocation16 + $0x1fc] ss:$48 sps:$4 sm:$0xff]  }
 0xad9   : > { %5784 = vmatprep.subr.bf16.mxu1 %v10720_v35  ;;  %v10798_v24 = vld [vmem:[#allocation16 + $0x7fc] ss:$48 sps:$4 sm:$0xff]   ;;  %v10793_v35 = vld [vmem:[#allocation16 + $0x1f8] ss:$48 sps:$4 sm:$0xff]  }
 0xadb   : > { %5719 = vmatpush2.bf16.msra.mxu0 %v10715_v25  ;;  %v10796_v25 = vld [vmem:[#allocation16 + $0x7f8] ss:$48 sps:$4 sm:$0xff]  }
 0xadc   : > { %5785 = vmatpush1.bf16.msra.mxu1 %v10718_v26  ;;  %5720 = vmatprep.subr.bf16.mxu0 %v10723_v37  ;;  %v10801_v26 = vld [vmem:[#allocation16 + $0x19c] ss:$48 sps:$4 sm:$0xff]  }
 0xadd   : > { %5786 = vmatprep.subr.bf16.mxu1 %v10726_v29  ;;  %v10804_v37 = vld [vmem:[#allocation16 + $0x79c] ss:$48 sps:$4 sm:$0xff]   ;;  %v10799_v29 = vld [vmem:[#allocation16 + $0x198] ss:$48 sps:$4 sm:$0xff]  }
 0xadf   : > { %5721 = vmatpush2.bf16.msra.mxu0 %v10721_v32  ;;  %v10802_v32 = vld [vmem:[#allocation16 + $0x798] ss:$48 sps:$4 sm:$0xff]  }
 0xae0   : > { %5787 = vmatpush1.bf16.msra.mxu1 %v10724_v27  ;;  %5722 = vmatprep.subr.bf16.mxu0 %v10729_v39  ;;  %v10807_v27 = vld [vmem:[#allocation16 + $0x13c] ss:$48 sps:$4 sm:$0xff]  }
 0xae1   : > { %5788 = vmatprep.subr.bf16.mxu1 %v10732_v21  ;;  %v10810_v39 = vld [vmem:[#allocation16 + $0x73c] ss:$48 sps:$4 sm:$0xff]   ;;  %v10805_v21 = vld [vmem:[#allocation16 + $0x138] ss:$48 sps:$4 sm:$0xff]  }
 0xae3   : > { %5723 = vmatpush2.bf16.msra.mxu0 %v10727_v40  ;;  %v10808_v40 = vld [vmem:[#allocation16 + $0x738] ss:$48 sps:$4 sm:$0xff]  }
 0xae4   : > { %5789 = vmatpush1.bf16.msra.mxu1 %v10730_v42  ;;  %5815 = vmatprep.subr.bf16.mxu0 %v10735_v34  ;;  %v10813_v42 = vld [vmem:[#allocation16 + $0xdc] ss:$48 sps:$4 sm:$0xff]  }
 0xae5   : > { %5790 = vmatprep.subr.bf16.mxu1 %v10738_v43  ;;  %v10816_v34 = vld [vmem:[#allocation16 + $0x6dc] ss:$48 sps:$4 sm:$0xff]   ;;  %v10811_v43 = vld [vmem:[#allocation16 + $0xd8] ss:$48 sps:$4 sm:$0xff]  }
 0xae6   : > { %5725 = vmatmul.mubr.bf16.vlgmr.msra.gmra.mxu0 %v12399_v38 }
 0xae7   : > { %5816 = vmatpush1.bf16.msra.mxu0 %v10733_v44  ;;  %5847 = vmatprep.mubr.bf16.mxu0 %v11834_v58  ;;  %v10814_v44 = vld [vmem:[#allocation16 + $0x6d8] ss:$48 sps:$4 sm:$0xff]  }
 0xae8   : > { %5791 = vmatpush2.bf16.msra.mxu1 %v10736_v45  ;;  %5817 = vmatprep.subr.bf16.mxu0 %v10741_v5  ;;  %v10819_v45 = vld [vmem:[#allocation16 + $0x7c] ss:$48 sps:$4 sm:$0xff]  }
 0xae9   : > { %5792 = vmatprep.subr.bf16.mxu1 %v10744_v46  ;;  %v10822_v5 = vld [vmem:[#allocation16 + $0x67c] ss:$48 sps:$4 sm:$0xff]   ;;  %v10817_v46 = vld [vmem:[#allocation16 + $0x78] ss:$48 sps:$4 sm:$0xff]  }
 0xaeb   : > { %5818 = vmatpush1.bf16.msra.mxu0 %v10739_v47  ;;  %v10820_v47 = vld [vmem:[#allocation16 + $0x678] ss:$48 sps:$4 sm:$0xff]  }
 0xaec   : > { %5793 = vmatpush2.bf16.msra.mxu1 %v10742_v48  ;;  %5819 = vmatprep.subr.bf16.mxu0 %v10747_v49  ;;  %v10825_v48 = vld [vmem:[#allocation16 + $0x1c] ss:$48 sps:$4 sm:$0xff]  }
 0xaed   : > { %5794 = vmatprep.subr.bf16.mxu1 %v10750_v52  ;;  %v10828_v49 = vld [vmem:[#allocation16 + $0x61c] ss:$48 sps:$4 sm:$0xff]   ;;  %v10823_v52 = vld [vmem:[#allocation16 + $0x18] ss:$48 sps:$4 sm:$0xff]  }
 0xaef   : > { %5820 = vmatpush1.bf16.msra.mxu0 %v10745_v53  ;;  %v10826_v53 = vld [vmem:[#allocation16 + $0x618] ss:$48 sps:$4 sm:$0xff]  }
 0xaf0   : > { %5795 = vmatpush2.bf16.msra.mxu1 %v10748_v54  ;;  %5821 = vmatprep.subr.bf16.mxu0 %v10753_v57  ;;  %v10831_v54 = vld [vmem:[#allocation16 + $0x5bc] ss:$48 sps:$4 sm:$0xff]   ;;  %v10834_v57 = vld [vmem:[#allocation16 + $0x2c4] ss:$48 sps:$4 sm:$0xff]  }
 0xaf1   : > { %5796 = vmatprep.subr.bf16.mxu1 %v10756_v36  ;;  %v10829_v36 = vld [vmem:[#allocation16 + $0x5b8] ss:$48 sps:$4 sm:$0xff]  }
 0xaf3   : > { %5822 = vmatpush1.bf16.msra.mxu0 %v10751_v59  ;;  %v10832_v59 = vld [vmem:[#allocation16 + $0x2c0] ss:$48 sps:$4 sm:$0xff]  }
 0xaf4   : > { %5797 = vmatpush2.bf16.msra.mxu1 %v10754_v56  ;;  %5823 = vmatprep.subr.bf16.mxu0 %v10759_v41  ;;  %v10837_v56 = vld [vmem:[#allocation16 + $0x55c] ss:$48 sps:$4 sm:$0xff]   ;;  %v10840_v41 = vld [vmem:[#allocation16 + $0x264] ss:$48 sps:$4 sm:$0xff]  }
 0xaf5   : > { %5798 = vmatprep.subr.bf16.mxu1 %v10762_v61  ;;  %v10835_v61 = vld [vmem:[#allocation16 + $0x558] ss:$48 sps:$4 sm:$0xff]  }
 0xaf7   : > { %5824 = vmatpush1.bf16.msra.mxu0 %v10757_v62  ;;  %v10838_v62 = vld [vmem:[#allocation16 + $0x260] ss:$48 sps:$4 sm:$0xff]  }
 0xaf8   : > { %5799 = vmatpush2.bf16.msra.mxu1 %v10760_v63  ;;  %5825 = vmatprep.subr.bf16.mxu0 %v10765_v0  ;;  %v10843_v63 = vld [vmem:[#allocation16 + $0x4fc] ss:$48 sps:$4 sm:$0xff]   ;;  %v10846_v0 = vld [vmem:[#allocation16 + $0x204] ss:$48 sps:$4 sm:$0xff]  }
 0xaf9   : > { %5800 = vmatprep.subr.bf16.mxu1 %v10768_v30  ;;  %v10841_v30 = vld [vmem:[#allocation16 + $0x4f8] ss:$48 sps:$4 sm:$0xff]  }
 0xafb   : > { %5826 = vmatpush1.bf16.msra.mxu0 %v10763_v1  ;;  %v10844_v1 = vld [vmem:[#allocation16 + $0x200] ss:$48 sps:$4 sm:$0xff]  }
 0xafc   : > { %5801 = vmatpush2.bf16.msra.mxu1 %v10766_v51  ;;  %5827 = vmatprep.subr.bf16.mxu0 %v10771_v2  ;;  %v10849_v51 = vld [vmem:[#allocation16 + $0x49c] ss:$48 sps:$4 sm:$0xff]   ;;  %v10852_v2 = vld [vmem:[#allocation16 + $0x1a4] ss:$48 sps:$4 sm:$0xff]  }
 0xafd   : > { %5802 = vmatprep.subr.bf16.mxu1 %v10774_v3  ;;  %v10847_v3 = vld [vmem:[#allocation16 + $0x498] ss:$48 sps:$4 sm:$0xff]  }
 0xaff   : > { %5828 = vmatpush1.bf16.msra.mxu0 %v10769_v4  ;;  %v10850_v4 = vld [vmem:[#allocation16 + $0x1a0] ss:$48 sps:$4 sm:$0xff]  }
 0xb00   : > { %5803 = vmatpush2.bf16.msra.mxu1 %v10772_v7  ;;  %5829 = vmatprep.subr.bf16.mxu0 %v10777_v11  ;;  %v10855_v7 = vld [vmem:[#allocation16 + $0x43c] ss:$48 sps:$4 sm:$0xff]   ;;  %v10858_v11 = vld [vmem:[#allocation16 + $0x144] ss:$48 sps:$4 sm:$0xff]  }
 0xb01   : > { %5804 = vmatprep.subr.bf16.mxu1 %v10780_v12  ;;  %v10853_v12 = vld [vmem:[#allocation16 + $0x438] ss:$48 sps:$4 sm:$0xff]  }
 0xb03   : > { %5830 = vmatpush1.bf16.msra.mxu0 %v10775_v13  ;;  %v10856_v13 = vld [vmem:[#allocation16 + $0x140] ss:$48 sps:$4 sm:$0xff]  }
 0xb04   : > { %5805 = vmatpush2.bf16.msra.mxu1 %v10778_v14  ;;  %5856 = vmatprep.subr.bf16.mxu0 %v10783_v18  ;;  %v10861_v14 = vld [vmem:[#allocation16 + $0x3dc] ss:$48 sps:$4 sm:$0xff]   ;;  %v10864_v18 = vld [vmem:[#allocation16 + $0xe4] ss:$48 sps:$4 sm:$0xff]  }
 0xb05   : > { %5897 = vmatprep.subr.bf16.mxu1 %v10786_v28  ;;  %v10859_v28 = vld [vmem:[#allocation16 + $0x3d8] ss:$48 sps:$4 sm:$0xff]  }
 0xb06   : > { %5848 = vmatmul.mubr.bf16.vlgmr.msra.gmra.mxu0 %v12397_v31 }
 0xb07   : > { %5807 = vmatmul.mubr.bf16.vlgmr.msra.gmra.mxu1 %v12399_v38  ;;  %5857 = vmatpush1.bf16.msra.mxu0 %v10781_v15  ;;  %v10862_v15 = vld [vmem:[#allocation16 + $0xe0] ss:$48 sps:$4 sm:$0xff]  }
 0xb08   : > { %5888 = vmatprep.mubr.bf16.mxu0 %v12395_v33  ;;  %5898 = vmatpush1.bf16.msra.mxu1 %v10784_v16  ;;  %v10867_v16 = vld [vmem:[#allocation16 + $0x37c] ss:$48 sps:$4 sm:$0xff]  }
 0xb09   : > { %5858 = vmatprep.subr.bf16.mxu0 %v10789_v17  ;;  %5899 = vmatprep.subr.bf16.mxu1 %v10792_v19  ;;  %v10870_v17 = vld [vmem:[#allocation16 + $0x84] ss:$48 sps:$4 sm:$0xff]   ;;  %v10865_v19 = vld [vmem:[#allocation16 + $0x378] ss:$48 sps:$4 sm:$0xff]  }
 0xb0a   : > { %5929 = vmatprep.mubr.bf16.mxu1 %v11834_v58 }
 0xb0b   : > { %5859 = vmatpush1.bf16.msra.mxu0 %v10787_v20  ;;  %v10868_v20 = vld [vmem:[#allocation16 + $0x80] ss:$48 sps:$4 sm:$0xff]  }
 0xb0c   : > { %5900 = vmatpush1.bf16.msra.mxu1 %v10790_v22  ;;  %5860 = vmatprep.subr.bf16.mxu0 %v10795_v23  ;;  %v10873_v22 = vld [vmem:[#allocation16 + $0x31c] ss:$48 sps:$4 sm:$0xff]   ;;  %v10876_v23 = vld [vmem:[#allocation16 + $0x24] ss:$48 sps:$4 sm:$0xff]  }
 0xb0d   : > { %5901 = vmatprep.subr.bf16.mxu1 %v10798_v24  ;;  %v10871_v24 = vld [vmem:[#allocation16 + $0x318] ss:$48 sps:$4 sm:$0xff]  }
 0xb0f   : > { %5861 = vmatpush1.bf16.msra.mxu0 %v10793_v35  ;;  %v10874_v35 = vld [vmem:[#allocation16 + $0x20] ss:$48 sps:$4 sm:$0xff]  }
 0xb10   : > { %5902 = vmatpush1.bf16.msra.mxu1 %v10796_v25  ;;  %5862 = vmatprep.subr.bf16.mxu0 %v10801_v26  ;;  %v10879_v25 = vld [vmem:[#allocation16 + $0x8c4] ss:$48 sps:$4 sm:$0xff]  }
 0xb11   : > { %5903 = vmatprep.subr.bf16.mxu1 %v10804_v37  ;;  %v10882_v26 = vld [vmem:[#allocation16 + $0x5c4] ss:$48 sps:$4 sm:$0xff]   ;;  %v10877_v37 = vld [vmem:[#allocation16 + $0x8c0] ss:$48 sps:$4 sm:$0xff]  }
 0xb13   : > { %5863 = vmatpush1.bf16.msra.mxu0 %v10799_v29  ;;  %v10880_v29 = vld [vmem:[#allocation16 + $0x5c0] ss:$48 sps:$4 sm:$0xff]  }
 0xb14   : > { %5904 = vmatpush1.bf16.msra.mxu1 %v10802_v32  ;;  %5864 = vmatprep.subr.bf16.mxu0 %v10807_v27  ;;  %v10885_v32 = vld [vmem:[#allocation16 + $0x864] ss:$48 sps:$4 sm:$0xff]  }
 0xb15   : > { %5905 = vmatprep.subr.bf16.mxu1 %v10810_v39  ;;  %v10888_v27 = vld [vmem:[#allocation16 + $0x564] ss:$48 sps:$4 sm:$0xff]   ;;  %v10883_v39 = vld [vmem:[#allocation16 + $0x860] ss:$48 sps:$4 sm:$0xff]  }
 0xb17   : > { %5865 = vmatpush1.bf16.msra.mxu0 %v10805_v21  ;;  %v10886_v21 = vld [vmem:[#allocation16 + $0x560] ss:$48 sps:$4 sm:$0xff]  }
 0xb18   : > { %5906 = vmatpush1.bf16.msra.mxu1 %v10808_v40  ;;  %5866 = vmatprep.subr.bf16.mxu0 %v10813_v42  ;;  %v10891_v40 = vld [vmem:[#allocation16 + $0x804] ss:$48 sps:$4 sm:$0xff]  }
 0xb19   : > { %5907 = vmatprep.subr.bf16.mxu1 %v10816_v34  ;;  %v10894_v42 = vld [vmem:[#allocation16 + $0x504] ss:$48 sps:$4 sm:$0xff]   ;;  %v10889_v34 = vld [vmem:[#allocation16 + $0x800] ss:$48 sps:$4 sm:$0xff]  }
 0xb1b   : > { %5867 = vmatpush1.bf16.msra.mxu0 %v10811_v43  ;;  %v10892_v43 = vld [vmem:[#allocation16 + $0x500] ss:$48 sps:$4 sm:$0xff]  }
 0xb1c   : > { %5908 = vmatpush1.bf16.msra.mxu1 %v10814_v44  ;;  %5868 = vmatprep.subr.bf16.mxu0 %v10819_v45  ;;  %v10897_v44 = vld [vmem:[#allocation16 + $0x7a4] ss:$48 sps:$4 sm:$0xff]  }
 0xb1d   : > { %5909 = vmatprep.subr.bf16.mxu1 %v10822_v5  ;;  %v10900_v45 = vld [vmem:[#allocation16 + $0x4a4] ss:$48 sps:$4 sm:$0xff]   ;;  %v10895_v5 = vld [vmem:[#allocation16 + $0x7a0] ss:$48 sps:$4 sm:$0xff]  }
 0xb1f   : > { %5869 = vmatpush1.bf16.msra.mxu0 %v10817_v46  ;;  %v10898_v46 = vld [vmem:[#allocation16 + $0x4a0] ss:$48 sps:$4 sm:$0xff]  }
 0xb20   : > { %5910 = vmatpush1.bf16.msra.mxu1 %v10820_v47  ;;  %5870 = vmatprep.subr.bf16.mxu0 %v10825_v48  ;;  %v10903_v47 = vld [vmem:[#allocation16 + $0x744] ss:$48 sps:$4 sm:$0xff]  }
 0xb21   : > { %5911 = vmatprep.subr.bf16.mxu1 %v10828_v49  ;;  %v10906_v48 = vld [vmem:[#allocation16 + $0x444] ss:$48 sps:$4 sm:$0xff]   ;;  %v10901_v49 = vld [vmem:[#allocation16 + $0x740] ss:$48 sps:$4 sm:$0xff]  }
 0xb23   : > { %5871 = vmatpush1.bf16.msra.mxu0 %v10823_v52  ;;  %v10904_v52 = vld [vmem:[#allocation16 + $0x440] ss:$48 sps:$4 sm:$0xff]  }
 0xb24   : > { %5912 = vmatpush1.bf16.msra.mxu1 %v10826_v53  ;;  %5872 = vmatprep.subr.bf16.mxu0 %v10831_v54  ;;  %v10909_v53 = vld [vmem:[#allocation16 + $0x6e4] ss:$48 sps:$4 sm:$0xff]  }
 0xb25   : > { %5938 = vmatprep.subr.bf16.mxu1 %v10834_v57  ;;  %v10912_v54 = vld [vmem:[#allocation16 + $0x3e4] ss:$48 sps:$4 sm:$0xff]   ;;  %v10907_v57 = vld [vmem:[#allocation16 + $0x6e0] ss:$48 sps:$4 sm:$0xff]  }
 0xb27   : > { %5873 = vmatpush2.bf16.msra.mxu0 %v10829_v36  ;;  %5930 = vmatmul.mubr.bf16.vlgmr.msra.gmra.mxu1 %v12397_v31  ;;  %v10910_v36 = vld [vmem:[#allocation16 + $0x3e0] ss:$48 sps:$4 sm:$0xff]  }
 0xb28   : > { %5939 = vmatpush1.bf16.msra.mxu1 %v10832_v59  ;;  %5970 = vmatprep.mubr.bf16.mxu1 %v12395_v33  ;;  %v10915_v59 = vld [vmem:[#allocation16 + $0x684] ss:$48 sps:$4 sm:$0xff]  }
 0xb29   : > { %5874 = vmatprep.subr.bf16.mxu0 %v10837_v56  ;;  %5940 = vmatprep.subr.bf16.mxu1 %v10840_v41  ;;  %v10918_v56 = vld [vmem:[#allocation16 + $0x384] ss:$48 sps:$4 sm:$0xff]   ;;  %v10913_v41 = vld [vmem:[#allocation16 + $0x680] ss:$48 sps:$4 sm:$0xff]  }
 0xb2b   : > { %5875 = vmatpush2.bf16.msra.mxu0 %v10835_v61  ;;  %v10916_v61 = vld [vmem:[#allocation16 + $0x380] ss:$48 sps:$4 sm:$0xff]  }
 0xb2c   : > { %5941 = vmatpush1.bf16.msra.mxu1 %v10838_v62  ;;  %5876 = vmatprep.subr.bf16.mxu0 %v10843_v63  ;;  %v10921_v62 = vld [vmem:[#allocation16 + $0x624] ss:$48 sps:$4 sm:$0xff]  }
 0xb2d   : > { %5942 = vmatprep.subr.bf16.mxu1 %v10846_v0  ;;  %v10924_v63 = vld [vmem:[#allocation16 + $0x324] ss:$48 sps:$4 sm:$0xff]   ;;  %v10919_v0 = vld [vmem:[#allocation16 + $0x620] ss:$48 sps:$4 sm:$0xff]  }
 0xb2f   : > { %5877 = vmatpush2.bf16.msra.mxu0 %v10841_v30  ;;  %v10922_v30 = vld [vmem:[#allocation16 + $0x320] ss:$48 sps:$4 sm:$0xff]  }
 0xb30   : > { %5943 = vmatpush1.bf16.msra.mxu1 %v10844_v1  ;;  %5878 = vmatprep.subr.bf16.mxu0 %v10849_v51  ;;  %v10927_v1 = vld [vmem:[#allocation16 + $0x2cc] ss:$48 sps:$4 sm:$0xff]  }
 0xb31   : > { %5944 = vmatprep.subr.bf16.mxu1 %v10852_v2  ;;  %v10930_v51 = vld [vmem:[#allocation16 + $0x8cc] ss:$48 sps:$4 sm:$0xff]   ;;  %v12418_v2 = vld [vmem:[#allocation17] sm:$0xff] }
 0xb33   : > { %5879 = vmatpush2.bf16.msra.mxu0 %v10847_v3  ;;  %v10925_v3 = vld [vmem:[#allocation16 + $0x2c8] ss:$48 sps:$4 sm:$0xff]  }
 0xb34   : > { %5945 = vmatpush1.bf16.msra.mxu1 %v10850_v4  ;;  %5880 = vmatprep.subr.bf16.mxu0 %v10855_v7  ;;  %v10928_v4 = vld [vmem:[#allocation16 + $0x8c8] ss:$48 sps:$4 sm:$0xff]   ;;  %v4113_v7 = vrot.slane %v12418_v2, %v12168_v10 }
 0xb35   : > { %5946 = vmatprep.subr.bf16.mxu1 %v10858_v11  ;;  %v10933_v11 = vld [vmem:[#allocation16 + $0x26c] ss:$48 sps:$4 sm:$0xff]  }
 0xb37   : > { %5881 = vmatpush2.bf16.msra.mxu0 %v10853_v12  ;;  %v10936_v12 = vld [vmem:[#allocation16 + $0x86c] ss:$48 sps:$4 sm:$0xff]  }
 0xb38   : > { %5947 = vmatpush1.bf16.msra.mxu1 %v10856_v13  ;;  %5882 = vmatprep.subr.bf16.mxu0 %v10861_v14 }
 0xb39   : > { %5948 = vmatprep.subr.bf16.mxu1 %v10864_v18  ;;  %v10931_v18 = vld [vmem:[#allocation16 + $0x268] ss:$48 sps:$4 sm:$0xff]  }
 0xb3b   : > { %5883 = vmatpush2.bf16.msra.mxu0 %v10859_v28 }
 0xb3c   : > { %5949 = vmatpush1.bf16.msra.mxu1 %v10862_v15  ;;  %5884 = vmatprep.subr.bf16.mxu0 %v10867_v16  ;;  %v10934_v16 = vld [vmem:[#allocation16 + $0x868] ss:$48 sps:$4 sm:$0xff]  }
 0xb3d   : > { %5950 = vmatprep.subr.bf16.mxu1 %v10870_v17  ;;  %v10939_v17 = vld [vmem:[#allocation16 + $0x20c] ss:$48 sps:$4 sm:$0xff]  }
 0xb3f   : > { %5885 = vmatpush2.bf16.msra.mxu0 %v10865_v19 }
 0xb40   : > { %5951 = vmatpush1.bf16.msra.mxu1 %v10868_v20  ;;  %5886 = vmatprep.subr.bf16.mxu0 %v10873_v22  ;;  %v10942_v20 = vld [vmem:[#allocation16 + $0x80c] ss:$48 sps:$4 sm:$0xff]  }
 0xb41   : > { %5952 = vmatprep.subr.bf16.mxu1 %v10876_v23 }
 0xb43   : > { %5887 = vmatpush2.bf16.msra.mxu0 %v10871_v24 }
 0xb44   : > { %5953 = vmatpush1.bf16.msra.mxu1 %v10874_v35  ;;  %5979 = vmatprep.subr.bf16.mxu0 %v10879_v25  ;;  %v10937_v35 = vld [vmem:[#allocation16 + $0x208] ss:$48 sps:$4 sm:$0xff]  }
 0xb45   : > { %5954 = vmatprep.subr.bf16.mxu1 %v10882_v26  ;;  %v10945_v26 = vld [vmem:[#allocation16 + $0x1ac] ss:$48 sps:$4 sm:$0xff]  }
 0xb46   : > { %5889 = vmatmul.mubr.bf16.vlgmr.msra.gmra.mxu0 %v12399_v38 }
 0xb47   : > { %5980 = vmatpush1.bf16.msra.mxu0 %v10877_v37  ;;  %6011 = vmatprep.mubr.bf16.mxu0 %v11834_v58 }
 0xb48   : > { %5955 = vmatpush2.bf16.msra.mxu1 %v10880_v29  ;;  %5981 = vmatprep.subr.bf16.mxu0 %v10885_v32  ;;  %v10948_v29 = vld [vmem:[#allocation16 + $0x7ac] ss:$48 sps:$4 sm:$0xff]   ;;  %v10943_v32 = vld [vmem:[#allocation16 + $0x1a8] ss:$48 sps:$4 sm:$0xff]  }
 0xb49   : > { %5956 = vmatprep.subr.bf16.mxu1 %v10888_v27  ;;  %v10946_v27 = vld [vmem:[#allocation16 + $0x7a8] ss:$48 sps:$4 sm:$0xff]  }
 0xb4b   : > { %5982 = vmatpush1.bf16.msra.mxu0 %v10883_v39  ;;  %v10951_v39 = vld [vmem:[#allocation16 + $0x14c] ss:$48 sps:$4 sm:$0xff]  }
 0xb4c   : > { %5957 = vmatpush2.bf16.msra.mxu1 %v10886_v21  ;;  %5983 = vmatprep.subr.bf16.mxu0 %v10891_v40  ;;  %v10954_v21 = vld [vmem:[#allocation16 + $0x74c] ss:$48 sps:$4 sm:$0xff]   ;;  %v10952_v40 = vld [vmem:[#allocation16 + $0x748] ss:$48 sps:$4 sm:$0xff]  }
 0xb4d   : > { %5958 = vmatprep.subr.bf16.mxu1 %v10894_v42  ;;  %v10957_v42 = vld [vmem:[#allocation16 + $0xec] ss:$48 sps:$4 sm:$0xff]  }
 0xb4f   : > { %5984 = vmatpush1.bf16.msra.mxu0 %v10889_v34  ;;  %v10960_v34 = vld [vmem:[#allocation16 + $0x6ec] ss:$48 sps:$4 sm:$0xff]  }
 0xb50   : > { %5959 = vmatpush2.bf16.msra.mxu1 %v10892_v43  ;;  %5985 = vmatprep.subr.bf16.mxu0 %v10897_v44  ;;  %v4117_v43 = vrot.slane %v12418_v2, %v12162_v8  ;;  %v10955_v44 = vld [vmem:[#allocation16 + $0xe8] ss:$48 sps:$4 sm:$0xff]  }
 0xb51   : > { %5960 = vmatprep.subr.bf16.mxu1 %v10900_v45  ;;  %v10958_v45 = vld [vmem:[#allocation16 + $0x6e8] ss:$48 sps:$4 sm:$0xff]  }
 0xb53   : > { %5986 = vmatpush1.bf16.msra.mxu0 %v10895_v5  ;;  %v10963_v5 = vld [vmem:[#allocation16 + $0x8c] ss:$48 sps:$4 sm:$0xff]  }
 0xb54   : > { %5961 = vmatpush2.bf16.msra.mxu1 %v10898_v46  ;;  %5987 = vmatprep.subr.bf16.mxu0 %v10903_v47  ;;  %v10966_v46 = vld [vmem:[#allocation16 + $0x68c] ss:$48 sps:$4 sm:$0xff]  }
 0xb55   : > { %5962 = vmatprep.subr.bf16.mxu1 %v10906_v48  ;;  %v10961_v48 = vld [vmem:[#allocation16 + $0x88] ss:$48 sps:$4 sm:$0xff]  }
 0xb57   : > { %5988 = vmatpush1.bf16.msra.mxu0 %v10901_v49  ;;  %v10964_v49 = vld [vmem:[#allocation16 + $0x688] ss:$48 sps:$4 sm:$0xff]  }
 0xb58   : > { %5963 = vmatpush2.bf16.msra.mxu1 %v10904_v52  ;;  %5989 = vmatprep.subr.bf16.mxu0 %v10909_v53  ;;  %v10969_v52 = vld [vmem:[#allocation16 + $0x2c] ss:$48 sps:$4 sm:$0xff]  }
 0xb59   : > { %5964 = vmatprep.subr.bf16.mxu1 %v10912_v54  ;;  %v10972_v53 = vld [vmem:[#allocation16 + $0x62c] ss:$48 sps:$4 sm:$0xff]  }
 0xb5b   : > { %5990 = vmatpush1.bf16.msra.mxu0 %v10907_v57  ;;  %v10967_v57 = vld [vmem:[#allocation16 + $0x28] ss:$48 sps:$4 sm:$0xff]  }
 0xb5c   : > { %5965 = vmatpush2.bf16.msra.mxu1 %v10910_v36  ;;  %5991 = vmatprep.subr.bf16.mxu0 %v10915_v59  ;;  %v10970_v36 = vld [vmem:[#allocation16 + $0x628] ss:$48 sps:$4 sm:$0xff]   ;;  %v10975_v59 = vld [vmem:[#allocation16 + $0x5cc] ss:$48 sps:$4 sm:$0xff]  }
 0xb5d   : > { %5966 = vmatprep.subr.bf16.mxu1 %v10918_v56  ;;  %v10978_v56 = vld [vmem:[#allocation19 + $0xac] ss:$12 sps:$4 sm:$0xff]  }
 0xb5f   : > { %5992 = vmatpush1.bf16.msra.mxu0 %v10913_v41 }
 0xb60   : > { %5967 = vmatpush2.bf16.msra.mxu1 %v10916_v61  ;;  %5993 = vmatprep.subr.bf16.mxu0 %v10921_v62  ;;  %v10973_v61 = vld [vmem:[#allocation16 + $0x5c8] ss:$48 sps:$4 sm:$0xff]   ;;  %v10976_v62 = vld [vmem:[#allocation19 + $0xa8] ss:$12 sps:$4 sm:$0xff]  }
 0xb61   : > { %5968 = vmatprep.subr.bf16.mxu1 %v10924_v63  ;;  %v10981_v63 = vld [vmem:[#allocation16 + $0x56c] ss:$48 sps:$4 sm:$0xff]  }
 0xb63   : > { %5994 = vmatpush1.bf16.msra.mxu0 %v10919_v0  ;;  %v10984_v0 = vld [vmem:[#allocation19 + $0x94] ss:$12 sps:$4 sm:$0xff]  }
 0xb64   : > { %5969 = vmatpush2.bf16.msra.mxu1 %v10922_v30  ;;  %6020 = vmatprep.subr.bf16.mxu0 %v10927_v1 }
 0xb65   : > { %6061 = vmatprep.subr.bf16.mxu1 %v10930_v51  ;;  %v10979_v51 = vld [vmem:[#allocation16 + $0x568] ss:$48 sps:$4 sm:$0xff]  }
 0xb66   : > { %6012 = vmatmul.mubr.bf16.vlgmr.msra.gmra.mxu0 %v12397_v31  ;;  %v5685_v13 = vpop.f32.mrf.mxu0 }
 0xb67   : > { %5971 = vmatmul.mubr.bf16.vlgmr.msra.gmra.mxu1 %v12399_v38  ;;  %6021 = vmatpush1.bf16.msra.mxu0 %v10925_v3  ;;  %v5644_v14 = vpop.f32.mrf.mxu1  ;;  %v10982_v3 = vld [vmem:[#allocation19 + $0x90] ss:$12 sps:$4 sm:$0xff]  }
 0xb68   : > { %6052 = vmatprep.mubr.bf16.mxu0 %v12395_v33  ;;  %v5645_v28 = vadd.f32 %v5644_v14, %v4113_v7  ;;  %6062 = vmatpush1.bf16.msra.mxu1 %v10928_v4  ;;  %v5687_v15 = vpop.f32.mrf.mxu0  ;;  %v10940_v33 = vld [vmem:[#allocation16 + $0x808] ss:$48 sps:$4 sm:$0xff]   ;;  %v10987_v4 = vld [vmem:[#allocation16 + $0x50c] ss:$48 sps:$4 sm:$0xff]   ;;  %v10988_v14 = vld [vmem:[#allocation19 + $0x78] ss:$12 sps:$4 sm:$0xff]  }
 0xb69   : > { %v5646_v19 = vpop.f32.mrf.mxu1  ;;  %6022 = vmatprep.subr.bf16.mxu0 %v10933_v11  ;;  %6063 = vmatprep.subr.bf16.mxu1 %v10936_v12  ;;  %v10990_v11 = vld [vmem:[#allocation19 + $0x7c] ss:$12 sps:$4 sm:$0xff]  }
 0xb6a   : > { %v12425_v22 = vadd.f32 %v5685_v13, %v5645_v28  ;;  %v5689_v23 = vpop.f32.mrf.mxu0  ;;  %6093 = vmatprep.mubr.bf16.mxu1 %v11834_v58  ;;  %v10949_v58 = vld [vmem:[#allocation16 + $0x148] ss:$48 sps:$4 sm:$0xff]   ;;  %v5647_v47 = vadd.f32 %v5646_v19, %v4117_v43  ;;  %v11021_v43 = vld [vmem:[#allocation19 + $0x228] ss:$12 sps:$4 sm:$0xff]  }
 0xb6b   : > { %6023 = vmatpush1.bf16.msra.mxu0 %v10931_v18  ;;  %v5648_v24 = vpop.f32.mrf.mxu1  ;;  %v10985_v13 = vld [vmem:[#allocation16 + $0x508] ss:$48 sps:$4 sm:$0xff]   ;;  %v10993_v18 = vld [vmem:[#allocation16 + $0x4ac] ss:$48 sps:$4 sm:$0xff]   ;;  %v11000_v23 = vld [vmem:[#allocation19 + $0x48] ss:$12 sps:$4 sm:$0xff]  }
 0xb6c   : > { %6064 = vmatpush1.bf16.msra.mxu1 %v10934_v16  ;;  %v5690_v25 = vpop.f32.mrf.mxu0  ;;  %6024 = vmatprep.subr.bf16.mxu0 %v10939_v17  ;;  %v5688_v54 = vadd.f32 %v5687_v15, %v5647_v47  ;;  %v10991_v15 = vld [vmem:[#allocation16 + $0x4a8] ss:$48 sps:$4 sm:$0xff]   ;;  %v10999_v17 = vld [vmem:[#allocation16 + $0x44c] ss:$48 sps:$4 sm:$0xff]  }
 0xb6d   : > { %v5649_v37 = vpop.f32.mrf.mxu1  ;;  %6065 = vmatprep.subr.bf16.mxu1 %v10942_v20  ;;  %v10994_v16 = vld [vmem:[#allocation19 + $0x60] ss:$12 sps:$4 sm:$0xff]  }
 0xb6e   : > { %v6103_v41 = vmax.f32 %v5688_v54, 0.0  ;;  %v11002_v19 = vld [vmem:[#allocation19 + $0x4c] ss:$12 sps:$4 sm:$0xff]   ;;  %v11005_v24 = vld [vmem:[#allocation16 + $0x3ec] ss:$48 sps:$4 sm:$0xff]  }
 0xb6f   : > { %6025 = vmatpush1.bf16.msra.mxu0 %v10937_v35  ;;  %v10997_v20 = vld [vmem:[#allocation16 + $0x448] ss:$48 sps:$4 sm:$0xff]   ;;  %v11008_v35 = vld [vmem:[#allocation19 + $0x34] ss:$12 sps:$4 sm:$0xff]  }
 0xb70   : > { %6066 = vmatpush1.bf16.msra.mxu1 %v10940_v33  ;;  %6026 = vmatprep.subr.bf16.mxu0 %v10945_v26  ;;  %v12430_v30 = vpack.c.bf16 %v6103_v41, %v6103_v41  ;;  %v11003_v25 = vld [vmem:[#allocation16 + $0x3e8] ss:$48 sps:$4 sm:$0xff]   ;;  %v11011_v26 = vld [vmem:[#allocation16 + $0x38c] ss:$48 sps:$4 sm:$0xff]  }
 0xb71   : > { %6067 = vmatprep.subr.bf16.mxu1 %v10948_v29  ;;  %v11006_v33 = vld [vmem:[#allocation19 + $0x30] ss:$12 sps:$4 sm:$0xff]  }
 0xb72   : > { %v11014_v37 = vld [vmem:[#allocation19 + $0x1c] ss:$12 sps:$4 sm:$0xff]  }
 0xb73   : > { %6027 = vmatpush1.bf16.msra.mxu0 %v10943_v32  ;;  %v11009_v29 = vld [vmem:[#allocation16 + $0x388] ss:$48 sps:$4 sm:$0xff]   ;;  %v11012_v32 = vld [vmem:[#allocation19 + $0x18] ss:$12 sps:$4 sm:$0xff]  }
 0xb74   : > { %6068 = vmatpush1.bf16.msra.mxu1 %v10946_v27  ;;  %6028 = vmatprep.subr.bf16.mxu0 %v10951_v39  ;;  %v11017_v27 = vld [vmem:[#allocation16 + $0x32c] ss:$48 sps:$4 sm:$0xff]  }
 0xb75   : > { %6069 = vmatprep.subr.bf16.mxu1 %v10954_v21  ;;  %v11020_v39 = vld [vmem:[#allocation19 + $0x4] ss:$12 sps:$4 sm:$0xff]   ;;  %v11015_v21 = vld [vmem:[#allocation16 + $0x328] ss:$48 sps:$4 sm:$0xff]  }
 0xb77   : > { %6029 = vmatpush1.bf16.msra.mxu0 %v10949_v58  ;;  %v11018_v58 = vld [vmem:[#allocation19] ss:$12 sps:$4 sm:$0xff]  }
 0xb78   : > { %6070 = vmatpush1.bf16.msra.mxu1 %v10952_v40  ;;  %6030 = vmatprep.subr.bf16.mxu0 %v10957_v42  ;;  %v11023_v40 = vld [vmem:[#allocation19 + $0x22c] ss:$12 sps:$4 sm:$0xff]  }
 0xb79   : > { %6071 = vmatprep.subr.bf16.mxu1 %v10960_v34  ;;  %v11026_v42 = vld [vmem:[#allocation19 + $0x16c] ss:$12 sps:$4 sm:$0xff]   ;;  %v4124_v34 = vsub.s32 3, %v12159_v6 }
 0xb7b   : > { %6031 = vmatpush1.bf16.msra.mxu0 %v10955_v44  ;;  %v11024_v44 = vld [vmem:[#allocation19 + $0x168] ss:$12 sps:$4 sm:$0xff]  }
 0xb7c   : > { %6072 = vmatpush1.bf16.msra.mxu1 %v10958_v45  ;;  %6032 = vmatprep.subr.bf16.mxu0 %v10963_v5  ;;  %v11029_v45 = vld [vmem:[#allocation19 + $0x214] ss:$12 sps:$4 sm:$0xff]   ;;  %v4125_v5 = vrot.slane %v12418_v2, %v4124_v34 }
 0xb7d   : > { %6073 = vmatprep.subr.bf16.mxu1 %v10966_v46  ;;  %v11032_v46 = vld [vmem:[#allocation19 + $0x154] ss:$12 sps:$4 sm:$0xff]  }
 0xb7f   : > { %6033 = vmatpush1.bf16.msra.mxu0 %v10961_v48  ;;  %v11027_v48 = vld [vmem:[#allocation19 + $0x210] ss:$12 sps:$4 sm:$0xff]  }
 0xb80   : > { %6074 = vmatpush1.bf16.msra.mxu1 %v10964_v49  ;;  %6034 = vmatprep.subr.bf16.mxu0 %v10969_v52  ;;  %v11030_v52 = vld [vmem:[#allocation19 + $0x150] ss:$12 sps:$4 sm:$0xff]  }
 0xb81   : > { %6075 = vmatprep.subr.bf16.mxu1 %v10972_v53  ;;  %v11035_v53 = vld [vmem:[#allocation19 + $0x1fc] ss:$12 sps:$4 sm:$0xff]  }
 0xb83   : > { %6035 = vmatpush1.bf16.msra.mxu0 %v10967_v57  ;;  %v11038_v57 = vld [vmem:[#allocation19 + $0x13c] ss:$12 sps:$4 sm:$0xff]  }
 0xb84   : > { %6076 = vmatpush1.bf16.msra.mxu1 %v10970_v36  ;;  %6036 = vmatprep.subr.bf16.mxu0 %v10975_v59 }
 0xb85   : > { %8063 = vmatprep.subr.bf16.mxu1 %v10978_v56  ;;  %v11033_v56 = vld [vmem:[#allocation19 + $0x1f8] ss:$12 sps:$4 sm:$0xff]  }
 0xb87   : > { %v12432_v1 = vpop.f32.mrf.mxu1  ;;  %6037 = vmatpush2.bf16.msra.mxu0 %v10973_v61  ;;  %6094 = vmatmul.mubr.bf16.vlgmr.msra.gmra.mxu1 %v12397_v31  ;;  %v10996_v31 = vld [vmem:[#allocation19 + $0x64] ss:$12 sps:$4 sm:$0xff]  }
 0xb88   : > { %8064 = vmatpush1.bf16.msra.mxu1 %v10976_v62  ;;  %8095 = vmatprep.mubr.bf16.mxu1 %v12430_v30  ;;  %v11036_v61 = vld [vmem:[#allocation19 + $0x138] ss:$12 sps:$4 sm:$0xff]  }
 0xb89   : > { %v12436_v7 = vpop.f32.mrf.mxu1  ;;  %6038 = vmatprep.subr.bf16.mxu0 %v10981_v63  ;;  %8065 = vmatprep.subr.bf16.mxu1 %v10984_v0  ;;  %v11044_v63 = vld [vmem:[#allocation19 + $0x124] ss:$12 sps:$4 sm:$0xff]  }
 0xb8b   : > { %v5771_v12 = vpop.f32.mrf.mxu1  ;;  %6039 = vmatpush2.bf16.msra.mxu0 %v10979_v51  ;;  %v11039_v51 = vld [vmem:[#allocation19 + $0x1e0] ss:$12 sps:$4 sm:$0xff]  }
 0xb8c   : > { %8066 = vmatpush1.bf16.msra.mxu1 %v10982_v3  ;;  %6040 = vmatprep.subr.bf16.mxu0 %v10987_v4  ;;  %v11042_v3 = vld [vmem:[#allocation19 + $0x120] ss:$12 sps:$4 sm:$0xff]   ;;  %v11048_v12 = vld [vmem:[#allocation19 + $0x108] ss:$12 sps:$4 sm:$0xff]  }
 0xb8d   : > { %v5772_v28 = vpop.f32.mrf.mxu1  ;;  %8067 = vmatprep.subr.bf16.mxu1 %v10990_v11  ;;  %v11047_v4 = vld [vmem:[#allocation19 + $0x1cc] ss:$12 sps:$4 sm:$0xff]   ;;  %v11045_v11 = vld [vmem:[#allocation19 + $0x1c8] ss:$12 sps:$4 sm:$0xff]  }
 0xb8e   : > { %v11054_v28 = vld [vmem:[#allocation19 + $0xf0] ss:$12 sps:$4 sm:$0xff]  }
 0xb8f   : > { %6041 = vmatpush2.bf16.msra.mxu0 %v10985_v13  ;;  %v11053_v13 = vld [vmem:[#allocation19 + $0x1b4] ss:$12 sps:$4 sm:$0xff]  }
 0xb90   : > { %8068 = vmatpush1.bf16.msra.mxu1 %v10988_v14  ;;  %6042 = vmatprep.subr.bf16.mxu0 %v10993_v18  ;;  %v11056_v14 = vld [vmem:[#allocation19 + $0xf4] ss:$12 sps:$4 sm:$0xff]   ;;  %v11051_v18 = vld [vmem:[#allocation19 + $0x1b0] ss:$12 sps:$4 sm:$0xff]  }
 0xb91   : > { %8069 = vmatprep.subr.bf16.mxu1 %v10996_v31  ;;  %v11059_v31 = vld [vmem:[#allocation19 + $0x19c] ss:$12 sps:$4 sm:$0xff]  }
 0xb93   : > { %6043 = vmatpush2.bf16.msra.mxu0 %v10991_v15  ;;  %v11062_v15 = vld [vmem:[#allocation19 + $0xdc] ss:$12 sps:$4 sm:$0xff]  }
 0xb94   : > { %8070 = vmatpush1.bf16.msra.mxu1 %v10994_v16  ;;  %6044 = vmatprep.subr.bf16.mxu0 %v10999_v17  ;;  %v11057_v16 = vld [vmem:[#allocation19 + $0x198] ss:$12 sps:$4 sm:$0xff]  }
 0xb95   : > { %8071 = vmatprep.subr.bf16.mxu1 %v11002_v19  ;;  %v11060_v17 = vld [vmem:[#allocation19 + $0xd8] ss:$12 sps:$4 sm:$0xff]  }
 0xb96   : > { %v11065_v19 = vld [vmem:[#allocation19 + $0x184] ss:$12 sps:$4 sm:$0xff]  }
 0xb97   : > { %6045 = vmatpush2.bf16.msra.mxu0 %v10997_v20  ;;  %v11068_v20 = vld [vmem:[#allocation19 + $0xc4] ss:$12 sps:$4 sm:$0xff]  }
 0xb98   : > { %8072 = vmatpush1.bf16.msra.mxu1 %v11000_v23  ;;  %6046 = vmatprep.subr.bf16.mxu0 %v11005_v24  ;;  %v11063_v23 = vld [vmem:[#allocation19 + $0x180] ss:$12 sps:$4 sm:$0xff]  }
 0xb99   : > { %8073 = vmatprep.subr.bf16.mxu1 %v11008_v35  ;;  %v11066_v24 = vld [vmem:[#allocation19 + $0xc0] ss:$12 sps:$4 sm:$0xff]  }
 0xb9a   : > { %v11071_v35 = vld [vmem:[#allocation19 + $0x2ec] ss:$12 sps:$4 sm:$0xff]  }
 0xb9b   : > { %6047 = vmatpush2.bf16.msra.mxu0 %v11003_v25  ;;  %v6102_v25 = vmax.f32 %v12425_v22, 0.0  ;;  %v11075_v22 = vld [vmem:[#allocation19 + $0x2d0] ss:$12 sps:$4 sm:$0xff]  }
 0xb9c   : > { %8074 = vmatpush1.bf16.msra.mxu1 %v11006_v33  ;;  %6048 = vmatprep.subr.bf16.mxu0 %v11011_v26  ;;  %v11074_v33 = vld [vmem:[#allocation19 + $0x3ac] ss:$12 sps:$4 sm:$0xff]   ;;  %v4132_v26 = vsub.s32 5, %v12159_v6 }
 0xb9d   : > { %8075 = vmatprep.subr.bf16.mxu1 %v11014_v37  ;;  %v11069_v37 = vld [vmem:[#allocation19 + $0x2e8] ss:$12 sps:$4 sm:$0xff]  }
 0xb9f   : > { %6049 = vmatpush2.bf16.msra.mxu0 %v11009_v29  ;;  %v11072_v29 = vld [vmem:[#allocation19 + $0x3a8] ss:$12 sps:$4 sm:$0xff]  }
 0xba0   : > { %8076 = vmatpush1.bf16.msra.mxu1 %v11012_v32  ;;  %6050 = vmatprep.subr.bf16.mxu0 %v11017_v27  ;;  %v11077_v32 = vld [vmem:[#allocation19 + $0x2d4] ss:$12 sps:$4 sm:$0xff]   ;;  %v12451_v27 = vpack.c.bf16 %v6102_v25, %v6102_v25  ;;  %v11122_v25 = vld [vmem:[#allocation19 + $0x46c] ss:$12 sps:$4 sm:$0xff]  }
 0xba1   : > { %8077 = vmatprep.subr.bf16.mxu1 %v11020_v39  ;;  %v11080_v39 = vld [vmem:[#allocation19 + $0x394] ss:$12 sps:$4 sm:$0xff]  }
 0xba3   : > { %6051 = vmatpush2.bf16.msra.mxu0 %v11015_v21 }
 0xba4   : > { %8078 = vmatpush1.bf16.msra.mxu1 %v11018_v58  ;;  %8104 = vmatprep.subr.bf16.mxu0 %v11023_v40  ;;  %v4133_v58 = vrot.slane %v12418_v2, %v4132_v26 }
 0xba5   : > { %8079 = vmatprep.subr.bf16.mxu1 %v11026_v42 }
 0xba6   : > { %v12442_v47 = vpop.f32.mrf.mxu0  ;;  %6053 = vmatmul.mubr.bf16.vlgmr.msra.gmra.mxu0 %v12399_v38  ;;  %v11041_v38 = vld [vmem:[#allocation19 + $0x1e4] ss:$12 sps:$4 sm:$0xff]  }
 0xba7   : > { %8105 = vmatpush1.bf16.msra.mxu0 %v11021_v43  ;;  %v11078_v43 = vld [vmem:[#allocation19 + $0x390] ss:$12 sps:$4 sm:$0xff]  }
 0xba8   : > { %v5728_v49 = vpop.f32.mrf.mxu0  ;;  %8080 = vmatpush2.bf16.msra.mxu1 %v11024_v44  ;;  %8106 = vmatprep.subr.bf16.mxu0 %v11029_v45  ;;  %v11083_v44 = vld [vmem:[#allocation19 + $0x2bc] ss:$12 sps:$4 sm:$0xff]  }
 0xba9   : > { %v5729_v54 = vadd.f32 %v5728_v49, %v4125_v5  ;;  %8081 = vmatprep.subr.bf16.mxu1 %v11032_v46  ;;  %v11086_v5 = vld [vmem:[#allocation19 + $0x37c] ss:$12 sps:$4 sm:$0xff]  }
 0xbaa   : > { %v5730_v36 = vpop.f32.mrf.mxu0 }
 0xbab   : > { %v5770_v59 = vadd.f32 %v12436_v7, %v5729_v54  ;;  %8107 = vmatpush1.bf16.msra.mxu0 %v11027_v48  ;;  %v11050_v7 = vld [vmem:[#allocation19 + $0x10c] ss:$12 sps:$4 sm:$0xff]   ;;  %v11089_v36 = vld [vmem:[#allocation19 + $0x2a4] ss:$12 sps:$4 sm:$0xff]  }
 0xbac   : > { %v5731_v41 = vpop.f32.mrf.mxu0  ;;  %8082 = vmatpush2.bf16.msra.mxu1 %v11030_v52  ;;  %8108 = vmatprep.subr.bf16.mxu0 %v11035_v53  ;;  %v11081_v52 = vld [vmem:[#allocation19 + $0x2b8] ss:$12 sps:$4 sm:$0xff]  }
 0xbad   : > { %v6105_v62 = vmax.f32 %v5770_v59, 0.0  ;;  %8083 = vmatprep.subr.bf16.mxu1 %v11038_v57  ;;  %v11084_v57 = vld [vmem:[#allocation19 + $0x378] ss:$12 sps:$4 sm:$0xff]  }
 0xbaf   : > { %v12446_v0 = vpack.c.bf16 %v6105_v62, %v6105_v62  ;;  %8109 = vmatpush1.bf16.msra.mxu0 %v11033_v56  ;;  %v11092_v56 = vld [vmem:[#allocation19 + $0x364] ss:$12 sps:$4 sm:$0xff]   ;;  %v11090_v62 = vld [vmem:[#allocation19 + $0x360] ss:$12 sps:$4 sm:$0xff]  }
 0xbb0   : > { %8084 = vmatpush2.bf16.msra.mxu1 %v11036_v61  ;;  %8110 = vmatprep.subr.bf16.mxu0 %v11041_v38  ;;  %v11087_v61 = vld [vmem:[#allocation19 + $0x2a0] ss:$12 sps:$4 sm:$0xff]  }
 0xbb1   : > { %8136 = vmatprep.mubr.bf16.mxu0 %v12446_v0  ;;  %8085 = vmatprep.subr.bf16.mxu1 %v11044_v63  ;;  %v11095_v63 = vld [vmem:[#allocation19 + $0x28c] ss:$12 sps:$4 sm:$0xff]  }
 0xbb3   : > { %8111 = vmatpush1.bf16.msra.mxu0 %v11039_v51  ;;  %v11098_v51 = vld [vmem:[#allocation19 + $0x34c] ss:$12 sps:$4 sm:$0xff]  }
 0xbb4   : > { %8086 = vmatpush2.bf16.msra.mxu1 %v11042_v3  ;;  %8112 = vmatprep.subr.bf16.mxu0 %v11047_v4  ;;  %v11093_v3 = vld [vmem:[#allocation19 + $0x288] ss:$12 sps:$4 sm:$0xff]   ;;  %v4121_v4 = vrot.slane %v12418_v2, %v12165_v9 }
 0xbb5   : > { %8087 = vmatprep.subr.bf16.mxu1 %v11050_v7  ;;  %v11096_v7 = vld [vmem:[#allocation19 + $0x348] ss:$12 sps:$4 sm:$0xff]  }
 0xbb7   : > { %8113 = vmatpush1.bf16.msra.mxu0 %v11045_v11  ;;  %v11101_v11 = vld [vmem:[#allocation19 + $0x274] ss:$12 sps:$4 sm:$0xff]  }
 0xbb8   : > { %8088 = vmatpush2.bf16.msra.mxu1 %v11048_v12  ;;  %8114 = vmatprep.subr.bf16.mxu0 %v11053_v13  ;;  %v11104_v12 = vld [vmem:[#allocation19 + $0x334] ss:$12 sps:$4 sm:$0xff]   ;;  %v11099_v13 = vld [vmem:[#allocation19 + $0x270] ss:$12 sps:$4 sm:$0xff]  }
 0xbb9   : > { %8089 = vmatprep.subr.bf16.mxu1 %v11056_v14  ;;  %v5727_v14 = vadd.f32 %v12442_v47, %v4121_v4  ;;  %v11114_v47 = vld [vmem:[#allocation19 + $0x300] ss:$12 sps:$4 sm:$0xff]  }
 0xbbb   : > { %8115 = vmatpush1.bf16.msra.mxu0 %v11051_v18  ;;  %v11102_v18 = vld [vmem:[#allocation19 + $0x330] ss:$12 sps:$4 sm:$0xff]  }
 0xbbc   : > { %8090 = vmatpush2.bf16.msra.mxu1 %v11054_v28  ;;  %8116 = vmatprep.subr.bf16.mxu0 %v11059_v31  ;;  %v11107_v28 = vld [vmem:[#allocation19 + $0x25c] ss:$12 sps:$4 sm:$0xff]  }
 0xbbd   : > { %8091 = vmatprep.subr.bf16.mxu1 %v11062_v15  ;;  %v11110_v31 = vld [vmem:[#allocation19 + $0x31c] ss:$12 sps:$4 sm:$0xff]   ;;  %v11105_v15 = vld [vmem:[#allocation19 + $0x258] ss:$12 sps:$4 sm:$0xff]  }
 0xbbf   : > { %8117 = vmatpush1.bf16.msra.mxu0 %v11057_v16  ;;  %v5768_v16 = vadd.f32 %v12432_v1, %v5727_v14  ;;  %v11120_v1 = vld [vmem:[#allocation19 + $0x468] ss:$12 sps:$4 sm:$0xff]  }
 0xbc0   : > { %8092 = vmatpush2.bf16.msra.mxu1 %v11060_v17  ;;  %8118 = vmatprep.subr.bf16.mxu0 %v11065_v19  ;;  %v11108_v17 = vld [vmem:[#allocation19 + $0x318] ss:$12 sps:$4 sm:$0xff]  }
 0xbc1   : > { %8093 = vmatprep.subr.bf16.mxu1 %v11068_v20  ;;  %v11113_v19 = vld [vmem:[#allocation19 + $0x244] ss:$12 sps:$4 sm:$0xff]  }
 0xbc2   : > { %v11116_v20 = vld [vmem:[#allocation19 + $0x304] ss:$12 sps:$4 sm:$0xff]  }
 0xbc3   : > { %8119 = vmatpush1.bf16.msra.mxu0 %v11063_v23  ;;  %v11111_v23 = vld [vmem:[#allocation19 + $0x240] ss:$12 sps:$4 sm:$0xff]  }
 0xbc4   : > { %8094 = vmatpush2.bf16.msra.mxu1 %v11066_v24  ;;  %8120 = vmatprep.subr.bf16.mxu0 %v11071_v35  ;;  %v6104_v24 = vmax.f32 %v5768_v16, 0.0  ;;  %v11119_v35 = vld [vmem:[#allocation19 + $0x52c] ss:$12 sps:$4 sm:$0xff]  }
 0xbc5   : > { %8145 = vmatprep.subr.bf16.mxu1 %v11074_v33  ;;  %v11117_v33 = vld [vmem:[#allocation19 + $0x528] ss:$12 sps:$4 sm:$0xff]  }
 0xbc6   : > { %v12453_v21 = vpop.f32.mrf.mxu0  ;;  %v12466_v26 = vpack.c.bf16 %v6104_v24, %v6104_v24 }
 0xbc7   : > { %v12456_v40 = vpop.f32.mrf.mxu1  ;;  %8096 = vmatmul.mubr.bf16.vlgmr.msra.gmra.mxu1 %v12451_v27  ;;  %8121 = vmatpush2.bf16.msra.mxu0 %v11069_v37  ;;  %v11125_v37 = vld [vmem:[#allocation19 + $0x514] ss:$12 sps:$4 sm:$0xff]  }
 0xbc8   : > { %v5851_v42 = vpop.f32.mrf.mxu0  ;;  %8146 = vmatpush1.bf16.msra.mxu1 %v11072_v29  ;;  %8122 = vmatprep.subr.bf16.mxu0 %v11077_v32  ;;  %v11128_v29 = vld [vmem:[#allocation19 + $0x454] ss:$12 sps:$4 sm:$0xff]  }
 0xbc9   : > { %v5810_v45 = vpop.f32.mrf.mxu1  ;;  %8147 = vmatprep.subr.bf16.mxu1 %v11080_v39  ;;  %v11123_v39 = vld [vmem:[#allocation19 + $0x510] ss:$12 sps:$4 sm:$0xff]  }
 0xbca   : > { %v5811_v46 = vadd.f32 %v5810_v45, %v4133_v58  ;;  %v5853_v48 = vpop.f32.mrf.mxu0  ;;  %v11126_v58 = vld [vmem:[#allocation19 + $0x450] ss:$12 sps:$4 sm:$0xff]   ;;  %v11129_v45 = vld [vmem:[#allocation19 + $0x4f8] ss:$12 sps:$4 sm:$0xff]  }
 0xbcb   : > { %v5812_v49 = vpop.f32.mrf.mxu1  ;;  %8123 = vmatpush2.bf16.msra.mxu0 %v11075_v22  ;;  %v11131_v22 = vld [vmem:[#allocation19 + $0x4fc] ss:$12 sps:$4 sm:$0xff]  }
 0xbcc   : > { %v5852_v53 = vadd.f32 %v5851_v42, %v5811_v46  ;;  %v5854_v54 = vpop.f32.mrf.mxu0  ;;  %8148 = vmatpush1.bf16.msra.mxu1 %v11078_v43  ;;  %8124 = vmatprep.subr.bf16.mxu0 %v11083_v44  ;;  %v11134_v43 = vld [vmem:[#allocation19 + $0x43c] ss:$12 sps:$4 sm:$0xff]   ;;  %v11137_v46 = vld [vmem:[#allocation19 + $0x4e4] ss:$12 sps:$4 sm:$0xff]  }
 0xbcd   : > { %v5813_v59 = vpop.f32.mrf.mxu1  ;;  %8149 = vmatprep.subr.bf16.mxu1 %v11086_v5  ;;  %v11132_v5 = vld [vmem:[#allocation19 + $0x438] ss:$12 sps:$4 sm:$0xff]  }
 0xbce   : > { %v6107_v41 = vmax.f32 %v5852_v53, 0.0  ;;  %v11140_v49 = vld [vmem:[#allocation19 + $0x424] ss:$12 sps:$4 sm:$0xff]   ;;  %v11138_v53 = vld [vmem:[#allocation19 + $0x420] ss:$12 sps:$4 sm:$0xff]  }
 0xbcf   : > { %8125 = vmatpush2.bf16.msra.mxu0 %v11081_v52  ;;  %v11135_v52 = vld [vmem:[#allocation19 + $0x4e0] ss:$12 sps:$4 sm:$0xff]   ;;  %v11141_v59 = vld [vmem:[#allocation19 + $0x4c8] ss:$12 sps:$4 sm:$0xff]  }
 0xbd0   : > { %v12459_v38 = vpack.c.bf16 %v6107_v41, %v6107_v41  ;;  %8150 = vmatpush1.bf16.msra.mxu1 %v11084_v57  ;;  %8126 = vmatprep.subr.bf16.mxu0 %v11089_v36  ;;  %v11143_v54 = vld [vmem:[#allocation19 + $0x4cc] ss:$12 sps:$4 sm:$0xff]   ;;  %v4128_v57 = vsub.s32 4, %v12159_v6  ;;  %v11149_v41 = vld [vmem:[#allocation19 + $0x4b4] ss:$12 sps:$4 sm:$0xff]  }
 0xbd1   : > { %8151 = vmatprep.subr.bf16.mxu1 %v11092_v56  ;;  %v11146_v36 = vld [vmem:[#allocation19 + $0x40c] ss:$12 sps:$4 sm:$0xff]   ;;  %v11144_v56 = vld [vmem:[#allocation19 + $0x408] ss:$12 sps:$4 sm:$0xff]  }
 0xbd2   : > { %8177 = vmatprep.mubr.bf16.mxu1 %v12459_v38 }
 0xbd3   : > { %8127 = vmatpush2.bf16.msra.mxu0 %v11087_v61  ;;  %v4129_v61 = vrot.slane %v12418_v2, %v4128_v57  ;;  %v11194_v57 = vld [vmem:[#allocation19 + $0x64c] ss:$12 sps:$4 sm:$0xff]  }
 0xbd4   : > { %8152 = vmatpush1.bf16.msra.mxu1 %v11090_v62  ;;  %8128 = vmatprep.subr.bf16.mxu0 %v11095_v63  ;;  %v11152_v62 = vld [vmem:[#allocation19 + $0x3f4] ss:$12 sps:$4 sm:$0xff]   ;;  %v11147_v63 = vld [vmem:[#allocation19 + $0x4b0] ss:$12 sps:$4 sm:$0xff]  }
 0xbd5   : > { %8153 = vmatprep.subr.bf16.mxu1 %v11098_v51  ;;  %v11150_v51 = vld [vmem:[#allocation19 + $0x3f0] ss:$12 sps:$4 sm:$0xff]   ;;  %v5809_v4 = vadd.f32 %v12456_v40, %v4129_v61  ;;  %v11170_v40 = vld [vmem:[#allocation19 + $0x6ac] ss:$12 sps:$4 sm:$0xff]   ;;  %v11200_v61 = vld [vmem:[#allocation19 + $0x634] ss:$12 sps:$4 sm:$0xff]  }
 0xbd7   : > { %8129 = vmatpush2.bf16.msra.mxu0 %v11093_v3  ;;  %v11155_v3 = vld [vmem:[#allocation19 + $0x49c] ss:$12 sps:$4 sm:$0xff]   ;;  %v5850_v14 = vadd.f32 %v12453_v21, %v5809_v4 }
 0xbd8   : > { %8154 = vmatpush1.bf16.msra.mxu1 %v11096_v7  ;;  %8130 = vmatprep.subr.bf16.mxu0 %v11101_v11  ;;  %v11158_v7 = vld [vmem:[#allocation19 + $0x3dc] ss:$12 sps:$4 sm:$0xff]   ;;  %v11153_v11 = vld [vmem:[#allocation19 + $0x498] ss:$12 sps:$4 sm:$0xff]  }
 0xbd9   : > { %8155 = vmatprep.subr.bf16.mxu1 %v11104_v12  ;;  %v11156_v12 = vld [vmem:[#allocation19 + $0x3d8] ss:$12 sps:$4 sm:$0xff]   ;;  %v6106_v16 = vmax.f32 %v5850_v14, 0.0  ;;  %v11206_v4 = vld [vmem:[#allocation19 + $0x61c] ss:$12 sps:$4 sm:$0xff]  }
 0xbda   : > { %v11207_v14 = vld [vmem:[#allocation19 + $0x540] ss:$12 sps:$4 sm:$0xff]  }
 0xbdb   : > { %8131 = vmatpush2.bf16.msra.mxu0 %v11099_v13  ;;  %v11161_v13 = vld [vmem:[#allocation19 + $0x484] ss:$12 sps:$4 sm:$0xff]   ;;  %v12478_v21 = vpack.c.bf16 %v6106_v16, %v6106_v16  ;;  %v11222_v16 = vld [vmem:[#allocation19 + $0x828] ss:$12 sps:$4 sm:$0xff]  }
 0xbdc   : > { %8156 = vmatpush1.bf16.msra.mxu1 %v11102_v18  ;;  %8132 = vmatprep.subr.bf16.mxu0 %v11107_v28  ;;  %v11164_v18 = vld [vmem:[#allocation19 + $0x3c4] ss:$12 sps:$4 sm:$0xff]   ;;  %v11159_v28 = vld [vmem:[#allocation19 + $0x480] ss:$12 sps:$4 sm:$0xff]  }
 0xbdd   : > { %8157 = vmatprep.subr.bf16.mxu1 %v11110_v31  ;;  %v11162_v31 = vld [vmem:[#allocation19 + $0x3c0] ss:$12 sps:$4 sm:$0xff]  }
 0xbdf   : > { %8133 = vmatpush2.bf16.msra.mxu0 %v11105_v15  ;;  %v11167_v15 = vld [vmem:[#allocation19 + $0x5ec] ss:$12 sps:$4 sm:$0xff]  }
 0xbe0   : > { %8158 = vmatpush1.bf16.msra.mxu1 %v11108_v17  ;;  %8134 = vmatprep.subr.bf16.mxu0 %v11113_v19  ;;  %v4140_v17 = vsub.s32 7, %v12159_v6  ;;  %v11165_v19 = vld [vmem:[#allocation19 + $0x5e8] ss:$12 sps:$4 sm:$0xff]  }
 0xbe1   : > { %8159 = vmatprep.subr.bf16.mxu1 %v11116_v20  ;;  %v11168_v20 = vld [vmem:[#allocation19 + $0x6a8] ss:$12 sps:$4 sm:$0xff]  }
 0xbe2   : > { %v4141_v24 = vrot.slane %v12418_v2, %v4140_v17  ;;  %v11230_v17 = vld [vmem:[#allocation19 + $0x814] ss:$12 sps:$4 sm:$0xff]  }
 0xbe3   : > { %8135 = vmatpush2.bf16.msra.mxu0 %v11111_v23  ;;  %v11173_v23 = vld [vmem:[#allocation19 + $0x5d4] ss:$12 sps:$4 sm:$0xff]  }
 0xbe4   : > { %8160 = vmatpush1.bf16.msra.mxu1 %v11114_v47  ;;  %8186 = vmatprep.subr.bf16.mxu0 %v11119_v35  ;;  %v11176_v47 = vld [vmem:[#allocation19 + $0x694] ss:$12 sps:$4 sm:$0xff]  }
 0xbe5   : > { %8161 = vmatprep.subr.bf16.mxu1 %v11122_v25  ;;  %v11171_v25 = vld [vmem:[#allocation19 + $0x5d0] ss:$12 sps:$4 sm:$0xff]  }
 0xbe6   : > { %8137 = vmatmul.mubr.bf16.vlgmr.msra.gmra.mxu0 %v12466_v26 }
 0xbe7   : > { %v12469_v32 = vpop.f32.mrf.mxu1  ;;  %8187 = vmatpush1.bf16.msra.mxu0 %v11117_v33 }
 0xbe8   : > { %8162 = vmatpush2.bf16.msra.mxu1 %v11120_v1  ;;  %8188 = vmatprep.subr.bf16.mxu0 %v11125_v37  ;;  %v11174_v1 = vld [vmem:[#allocation19 + $0x690] ss:$12 sps:$4 sm:$0xff]  }
 0xbe9   : > { %v12471_v42 = vpop.f32.mrf.mxu1  ;;  %8163 = vmatprep.subr.bf16.mxu1 %v11128_v29  ;;  %v11179_v37 = vld [vmem:[#allocation19 + $0x5bc] ss:$12 sps:$4 sm:$0xff]  }
 0xbeb   : > { %v5935_v44 = vpop.f32.mrf.mxu1  ;;  %8189 = vmatpush1.bf16.msra.mxu0 %v11123_v39  ;;  %v11182_v39 = vld [vmem:[#allocation19 + $0x67c] ss:$12 sps:$4 sm:$0xff]  }
 0xbec   : > { %8164 = vmatpush2.bf16.msra.mxu1 %v11126_v58  ;;  %8190 = vmatprep.subr.bf16.mxu0 %v11131_v22 }
 0xbed   : > { %v5936_v48 = vpop.f32.mrf.mxu1  ;;  %8165 = vmatprep.subr.bf16.mxu1 %v11134_v43  ;;  %v11177_v43 = vld [vmem:[#allocation19 + $0x5b8] ss:$12 sps:$4 sm:$0xff]  }
 0xbee   : > { %v11188_v48 = vld [vmem:[#allocation19 + $0x664] ss:$12 sps:$4 sm:$0xff]  }
 0xbef   : > { %8191 = vmatpush1.bf16.msra.mxu0 %v11129_v45  ;;  %v11180_v45 = vld [vmem:[#allocation19 + $0x678] ss:$12 sps:$4 sm:$0xff]  }
 0xbf0   : > { %8166 = vmatpush2.bf16.msra.mxu1 %v11132_v5  ;;  %8192 = vmatprep.subr.bf16.mxu0 %v11137_v46  ;;  %v11185_v5 = vld [vmem:[#allocation19 + $0x5a4] ss:$12 sps:$4 sm:$0xff]  }
 0xbf1   : > { %8167 = vmatprep.subr.bf16.mxu1 %v11140_v49 }
 0xbf3   : > { %8193 = vmatpush1.bf16.msra.mxu0 %v11135_v52  ;;  %v11183_v52 = vld [vmem:[#allocation19 + $0x5a0] ss:$12 sps:$4 sm:$0xff]  }
 0xbf4   : > { %8168 = vmatpush2.bf16.msra.mxu1 %v11138_v53  ;;  %8194 = vmatprep.subr.bf16.mxu0 %v11143_v54  ;;  %v4136_v53 = vsub.s32 6, %v12159_v6  ;;  %v11186_v54 = vld [vmem:[#allocation19 + $0x660] ss:$12 sps:$4 sm:$0xff]  }
 0xbf5   : > { %8169 = vmatprep.subr.bf16.mxu1 %v11146_v36  ;;  %v11189_v36 = vld [vmem:[#allocation19 + $0x588] ss:$12 sps:$4 sm:$0xff]  }
 0xbf7   : > { %8195 = vmatpush1.bf16.msra.mxu0 %v11141_v59  ;;  %v4137_v59 = vrot.slane %v12418_v2, %v4136_v53  ;;  %v11204_v2 = vld [vmem:[#allocation19 + $0x618] ss:$12 sps:$4 sm:$0xff]  }
 0xbf8   : > { %8170 = vmatpush2.bf16.msra.mxu1 %v11144_v56  ;;  %8196 = vmatprep.subr.bf16.mxu0 %v11149_v41  ;;  %v11192_v56 = vld [vmem:[#allocation19 + $0x648] ss:$12 sps:$4 sm:$0xff]  }
 0xbf9   : > { %8171 = vmatprep.subr.bf16.mxu1 %v11152_v62  ;;  %v11197_v41 = vld [vmem:[#allocation19 + $0x574] ss:$12 sps:$4 sm:$0xff]   ;;  %v11195_v62 = vld [vmem:[#allocation19 + $0x570] ss:$12 sps:$4 sm:$0xff]  }
 0xbfb   : > { %8197 = vmatpush1.bf16.msra.mxu0 %v11147_v63 }
 0xbfc   : > { %8172 = vmatpush2.bf16.msra.mxu1 %v11150_v51  ;;  %8198 = vmatprep.subr.bf16.mxu0 %v11155_v3  ;;  %v11198_v51 = vld [vmem:[#allocation19 + $0x630] ss:$12 sps:$4 sm:$0xff]  }
 0xbfd   : > { %8173 = vmatprep.subr.bf16.mxu1 %v11158_v7  ;;  %v11203_v3 = vld [vmem:[#allocation19 + $0x55c] ss:$12 sps:$4 sm:$0xff]   ;;  %v11201_v7 = vld [vmem:[#allocation19 + $0x558] ss:$12 sps:$4 sm:$0xff]  }
 0xbff   : > { %8199 = vmatpush1.bf16.msra.mxu0 %v11153_v11 }
 0xc00   : > { %8174 = vmatpush2.bf16.msra.mxu1 %v11156_v12  ;;  %8200 = vmatprep.subr.bf16.mxu0 %v11161_v13  ;;  %v11209_v12 = vld [vmem:[#allocation19 + $0x544] ss:$12 sps:$4 sm:$0xff]  }
 0xc01   : > { %8175 = vmatprep.subr.bf16.mxu1 %v11164_v18  ;;  %v11212_v13 = vld [vmem:[#allocation19 + $0x604] ss:$12 sps:$4 sm:$0xff]  }
 0xc03   : > { %8201 = vmatpush1.bf16.msra.mxu0 %v11159_v28  ;;  %v11210_v28 = vld [vmem:[#allocation19 + $0x600] ss:$12 sps:$4 sm:$0xff]  }
 0xc04   : > { %8176 = vmatpush2.bf16.msra.mxu1 %v11162_v31  ;;  %8202 = vmatprep.subr.bf16.mxu0 %v11167_v15  ;;  %v11224_v31 = vld [vmem:[#allocation19 + $0x82c] ss:$12 sps:$4 sm:$0xff]  }
 0xc05   : > { %8227 = vmatprep.subr.bf16.mxu1 %v11170_v40  ;;  %v11215_v15 = vld [vmem:[#allocation19 + $0x76c] ss:$12 sps:$4 sm:$0xff]  }
 0xc06   : > { %v5890_v35 = vpop.f32.mrf.mxu0 }
 0xc07   : > { %8178 = vmatmul.mubr.bf16.vlgmr.msra.gmra.mxu1 %v12478_v21  ;;  %8203 = vmatpush2.bf16.msra.mxu0 %v11165_v19  ;;  %v5891_v63 = vadd.f32 %v5890_v35, %v4137_v59  ;;  %v12491_v19 = vld [vmem:[#allocation17 + $0x8] sm:$0xf]  ;;  %v11233_v59 = vld [vmem:[#allocation19 + $0x70c] ss:$12 sps:$4 sm:$0xff]  }
 0xc08   : > { %v5892_v33 = vpop.f32.mrf.mxu0  ;;  %8228 = vmatpush1.bf16.msra.mxu1 %v11168_v20  ;;  %8204 = vmatprep.subr.bf16.mxu0 %v11173_v23  ;;  %v11218_v20 = vld [vmem:[#allocation19 + $0x754] ss:$12 sps:$4 sm:$0xff]   ;;  %v11228_v35 = vld [vmem:[#allocation19 + $0x810] ss:$12 sps:$4 sm:$0xff]  }
 0xc09   : > { %v5893_v29 = vadd.f32 %v5892_v33, %v4141_v24  ;;  %8229 = vmatprep.subr.bf16.mxu1 %v11176_v47  ;;  %v5932_v11 = vadd.f32 %v12469_v32, %v5891_v63  ;;  %v11213_v32 = vld [vmem:[#allocation19 + $0x768] ss:$12 sps:$4 sm:$0xff]   ;;  %v4149_v24 = vrot.slane %v12491_v19, %v12162_v8  ;;  %v11216_v33 = vld [vmem:[#allocation19 + $0x750] ss:$12 sps:$4 sm:$0xff]  }
 0xc0a   : > { %v5894_v58 = vpop.f32.mrf.mxu0  ;;  %v11239_v63 = vld [vmem:[#allocation19 + $0x6f4] ss:$12 sps:$4 sm:$0xff]  }
 0xc0b   : > { %v5934_v22 = vadd.f32 %v12471_v42, %v5893_v29  ;;  %8205 = vmatpush2.bf16.msra.mxu0 %v11171_v25  ;;  %v11191_v42 = vld [vmem:[#allocation19 + $0x58c] ss:$12 sps:$4 sm:$0xff]   ;;  %v6108_v18 = vmax.f32 %v5932_v11, 0.0  ;;  %v11221_v29 = vld [vmem:[#allocation19 + $0x73c] ss:$12 sps:$4 sm:$0xff]  }
 0xc0c   : > { %v5895_v44 = vpop.f32.mrf.mxu0  ;;  %8230 = vmatpush1.bf16.msra.mxu1 %v11174_v1  ;;  %8206 = vmatprep.subr.bf16.mxu0 %v11179_v37  ;;  %v11236_v1 = vld [vmem:[#allocation19 + $0x7fc] ss:$12 sps:$4 sm:$0xff]  }
 0xc0d   : > { %v6109_v46 = vmax.f32 %v5934_v22, 0.0  ;;  %8231 = vmatprep.subr.bf16.mxu1 %v11182_v39  ;;  %v12489_v40 = vpack.c.bf16 %v6108_v18, %v6108_v18  ;;  %v11245_v11 = vld [vmem:[#allocation19 + $0x6dc] ss:$12 sps:$4 sm:$0xff]   ;;  %v11251_v18 = vld [vmem:[#allocation19 + $0x6c4] ss:$12 sps:$4 sm:$0xff]  }
 0xc0f   : > { %v12483_v49 = vpack.c.bf16 %v6109_v46, %v6109_v46  ;;  %8207 = vmatpush2.bf16.msra.mxu0 %v11177_v43  ;;  %v11234_v43 = vld [vmem:[#allocation19 + $0x7f8] ss:$12 sps:$4 sm:$0xff]  }
 0xc10   : > { %8232 = vmatpush1.bf16.msra.mxu1 %v11180_v45  ;;  %8208 = vmatprep.subr.bf16.mxu0 %v11185_v5  ;;  %v11219_v5 = vld [vmem:[#allocation19 + $0x738] ss:$12 sps:$4 sm:$0xff]  }
 0xc11   : > { %8218 = vmatprep.mubr.bf16.mxu0 %v12483_v49  ;;  %8233 = vmatprep.subr.bf16.mxu1 %v11188_v48  ;;  %v11242_v46 = vld [vmem:[#allocation19 + $0x7e4] ss:$12 sps:$4 sm:$0xff]  }
 0xc13   : > { %8209 = vmatpush2.bf16.msra.mxu0 %v11183_v52  ;;  %v11227_v52 = vld [vmem:[#allocation19 + $0x724] ss:$12 sps:$4 sm:$0xff]  }
 0xc14   : > { %8234 = vmatpush1.bf16.msra.mxu1 %v11186_v54  ;;  %8210 = vmatprep.subr.bf16.mxu0 %v11191_v42  ;;  %v11240_v54 = vld [vmem:[#allocation19 + $0x7e0] ss:$12 sps:$4 sm:$0xff]  }
 0xc15   : > { %8235 = vmatprep.subr.bf16.mxu1 %v11194_v57  ;;  %v11225_v57 = vld [vmem:[#allocation19 + $0x720] ss:$12 sps:$4 sm:$0xff]  }
 0xc17   : > { %8211 = vmatpush2.bf16.msra.mxu0 %v11189_v36  ;;  %v11248_v36 = vld [vmem:[#allocation19 + $0x7cc] ss:$12 sps:$4 sm:$0xff]  }
 0xc18   : > { %8236 = vmatpush1.bf16.msra.mxu1 %v11192_v56  ;;  %8212 = vmatprep.subr.bf16.mxu0 %v11197_v41  ;;  %v11246_v56 = vld [vmem:[#allocation19 + $0x7c8] ss:$12 sps:$4 sm:$0xff]  }
 0xc19   : > { %8237 = vmatprep.subr.bf16.mxu1 %v11200_v61  ;;  %v11231_v41 = vld [vmem:[#allocation19 + $0x708] ss:$12 sps:$4 sm:$0xff]  }
 0xc1a   : > { %v11254_v61 = vld [vmem:[#allocation19 + $0x7b4] ss:$12 sps:$4 sm:$0xff]  }
 0xc1b   : > { %8213 = vmatpush2.bf16.msra.mxu0 %v11195_v62  ;;  %v4145_v62 = vrot.slane %v12491_v19, %v12168_v10 }
 0xc1c   : > { %8238 = vmatpush1.bf16.msra.mxu1 %v11198_v51  ;;  %8214 = vmatprep.subr.bf16.mxu0 %v11203_v3  ;;  %v11252_v51 = vld [vmem:[#allocation19 + $0x7b0] ss:$12 sps:$4 sm:$0xff]  }
 0xc1d   : > { %8239 = vmatprep.subr.bf16.mxu1 %v11206_v4  ;;  %v11237_v3 = vld [vmem:[#allocation19 + $0x6f0] ss:$12 sps:$4 sm:$0xff]  }
 0xc1e   : > { %v11259_v4 = vld [vmem:[#allocation19 + $0x79c] ss:$12 sps:$4 sm:$0xff]  }
 0xc1f   : > { %8215 = vmatpush2.bf16.msra.mxu0 %v11201_v7 }
 0xc20   : > { %8240 = vmatpush1.bf16.msra.mxu1 %v11204_v2  ;;  %8216 = vmatprep.subr.bf16.mxu0 %v11209_v12  ;;  %v11257_v2 = vld [vmem:[#allocation19 + $0x798] ss:$12 sps:$4 sm:$0xff]  }
 0xc21   : > { %8241 = vmatprep.subr.bf16.mxu1 %v11212_v13  ;;  %v11243_v12 = vld [vmem:[#allocation19 + $0x6d8] ss:$12 sps:$4 sm:$0xff]  }
 0xc22   : > { %v11264_v13 = vld [vmem:[#allocation19 + $0x784] ss:$12 sps:$4 sm:$0xff]  }
 0xc23   : > { %8217 = vmatpush2.bf16.msra.mxu0 %v11207_v14 }
 0xc24   : > { %8242 = vmatpush1.bf16.msra.mxu1 %v11210_v28  ;;  %8268 = vmatprep.subr.bf16.mxu0 %v11224_v31  ;;  %v11262_v28 = vld [vmem:[#allocation19 + $0x780] ss:$12 sps:$4 sm:$0xff]  }
 0xc25   : > { %8243 = vmatprep.subr.bf16.mxu1 %v11215_v15  ;;  %v11249_v31 = vld [vmem:[#allocation19 + $0x6c0] ss:$12 sps:$4 sm:$0xff]  }
 0xc26   : > { %v12493_v23 = vpop.f32.mrf.mxu0  ;;  %8219 = vmatmul.mubr.bf16.vlgmr.msra.gmra.mxu0 %v12489_v40  ;;  %v11269_v15 = vld [vmem:[#allocation19 + $0x8ec] ss:$12 sps:$4 sm:$0xff]  }
 0xc27   : > { %v5972_v47 = vpop.f32.mrf.mxu1  ;;  %8269 = vmatpush1.bf16.msra.mxu0 %v11222_v16 }
 0xc28   : > { %v6015_v25 = vpop.f32.mrf.mxu0  ;;  %8244 = vmatpush2.bf16.msra.mxu1 %v11213_v32  ;;  %8270 = vmatprep.subr.bf16.mxu0 %v11230_v17  ;;  %v5973_v7 = vadd.f32 %v5972_v47, %v4145_v62  ;;  %v11255_v32 = vld [vmem:[#allocation19 + $0x170] ss:$12 sps:$4 sm:$0xff]   ;;  %v11267_v17 = vld [vmem:[#allocation19 + $0x8e8] ss:$12 sps:$4 sm:$0xff]   ;;  %v11286_v62 = vld [vmem:[#allocation19 + $0x20] ss:$12 sps:$4 sm:$0xff]  }
 0xc29   : > { %v5974_v37 = vpop.f32.mrf.mxu1  ;;  %8245 = vmatprep.subr.bf16.mxu1 %v11218_v20  ;;  %v11256_v20 = vld [vmem:[#allocation19 + $0xb0] ss:$12 sps:$4 sm:$0xff]   ;;  %v11274_v47 = vld [vmem:[#allocation19 + $0x8d4] ss:$12 sps:$4 sm:$0xff]  }
 0xc2a   : > { %v5975_v39 = vadd.f32 %v5974_v37, %v4149_v24  ;;  %v6017_v58 = vpop.f32.mrf.mxu0  ;;  %v6014_v14 = vadd.f32 %v12493_v23, %v5973_v7  ;;  %v11260_v23 = vld [vmem:[#allocation19 + $0x158] ss:$12 sps:$4 sm:$0xff]   ;;  %v11307_v7 = vld [vmem:[#allocation19 + $0x2f0] ss:$12 sps:$4 sm:$0xff]  }
 0xc2b   : > { %v5976_v22 = vpop.f32.mrf.mxu1  ;;  %8271 = vmatpush1.bf16.msra.mxu0 %v11228_v35  ;;  %v11277_v58 = vld [vmem:[#allocation19 + $0x8b8] ss:$12 sps:$4 sm:$0xff]  }
 0xc2c   : > { %v6016_v44 = vadd.f32 %v6015_v25, %v5975_v39  ;;  %v6018_v45 = vpop.f32.mrf.mxu0  ;;  %8246 = vmatpush2.bf16.msra.mxu1 %v11216_v33  ;;  %8272 = vmatprep.subr.bf16.mxu0 %v11236_v1  ;;  %v6110_v16 = vmax.f32 %v6014_v14, 0.0  ;;  %v11272_v25 = vld [vmem:[#allocation19 + $0x8d0] ss:$12 sps:$4 sm:$0xff]   ;;  %v11261_v33 = vld [vmem:[#allocation19 + $0x98] ss:$12 sps:$4 sm:$0xff]  }
 0xc2d   : > { %v5977_v48 = vpop.f32.mrf.mxu1  ;;  %8247 = vmatprep.subr.bf16.mxu1 %v11221_v29  ;;  %v11279_v1 = vld [vmem:[#allocation19 + $0x8bc] ss:$12 sps:$4 sm:$0xff]   ;;  %v11265_v29 = vld [vmem:[#allocation19 + $0x140] ss:$12 sps:$4 sm:$0xff]   ;;  %v11300_v14 = vld [vmem:[#allocation19 + $0x458] ss:$12 sps:$4 sm:$0xff]  }
 0xc2e   : > { %v6111_v53 = vmax.f32 %v6016_v44, 0.0  ;;  %v12504_v24 = vpack.c.bf16 %v6110_v16, %v6110_v16  ;;  %v11266_v22 = vld [vmem:[#allocation19 + $0x80] ss:$12 sps:$4 sm:$0xff]   ;;  %v11270_v45 = vld [vmem:[#allocation19 + $0x128] ss:$12 sps:$4 sm:$0xff]  }
 0xc2f   : > { %8273 = vmatpush1.bf16.msra.mxu0 %v11234_v43  ;;  %v11284_v43 = vld [vmem:[#allocation19 + $0x8a4] ss:$12 sps:$4 sm:$0xff]  }
 0xc30   : > { %v12498_v42 = vpack.c.bf16 %v6111_v53, %v6111_v53  ;;  %8248 = vmatpush2.bf16.msra.mxu1 %v11219_v5  ;;  %8274 = vmatprep.subr.bf16.mxu0 %v11242_v46  ;;  %v11282_v5 = vld [vmem:[#allocation19 + $0x8a0] ss:$12 sps:$4 sm:$0xff]   ;;  %v11275_v48 = vld [vmem:[#allocation19 + $0x110] ss:$12 sps:$4 sm:$0xff]  }
 0xc31   : > { %8249 = vmatprep.subr.bf16.mxu1 %v11227_v52  ;;  %v11289_v46 = vld [vmem:[#allocation19 + $0x88c] ss:$12 sps:$4 sm:$0xff]   ;;  %v11287_v52 = vld [vmem:[#allocation19 + $0x888] ss:$12 sps:$4 sm:$0xff]   ;;  %v11276_v53 = vld [vmem:[#allocation19 + $0x50] ss:$12 sps:$4 sm:$0xff]  }
 0xc32   : > { %8259 = vmatprep.mubr.bf16.mxu1 %v12498_v42 }
 0xc33   : > { %8275 = vmatpush1.bf16.msra.mxu0 %v11240_v54  ;;  %v11294_v54 = vld [vmem:[#allocation19 + $0x874] ss:$12 sps:$4 sm:$0xff]  }
 0xc34   : > { %8250 = vmatpush2.bf16.msra.mxu1 %v11225_v57  ;;  %8276 = vmatprep.subr.bf16.mxu0 %v11248_v36  ;;  %v11280_v57 = vld [vmem:[#allocation19 + $0xf8] ss:$12 sps:$4 sm:$0xff]   ;;  %v11292_v36 = vld [vmem:[#allocation19 + $0x870] ss:$12 sps:$4 sm:$0xff]  }
 0xc35   : > { %8251 = vmatprep.subr.bf16.mxu1 %v11233_v59  ;;  %v11281_v59 = vld [vmem:[#allocation19 + $0x38] ss:$12 sps:$4 sm:$0xff]  }
 0xc37   : > { %8277 = vmatpush1.bf16.msra.mxu0 %v11246_v56  ;;  %v11299_v56 = vld [vmem:[#allocation19 + $0x85c] ss:$12 sps:$4 sm:$0xff]  }
 0xc38   : > { %8252 = vmatpush2.bf16.msra.mxu1 %v11231_v41  ;;  %8278 = vmatprep.subr.bf16.mxu0 %v11254_v61  ;;  %v11285_v41 = vld [vmem:[#allocation19 + $0xe0] ss:$12 sps:$4 sm:$0xff]   ;;  %v11297_v61 = vld [vmem:[#allocation19 + $0x858] ss:$12 sps:$4 sm:$0xff]  }
 0xc39   : > { %8253 = vmatprep.subr.bf16.mxu1 %v11239_v63  ;;  %v11304_v63 = vld [vmem:[#allocation19 + $0x844] ss:$12 sps:$4 sm:$0xff]  }
 0xc3b   : > { %8279 = vmatpush1.bf16.msra.mxu0 %v11252_v51  ;;  %v11290_v51 = vld [vmem:[#allocation19 + $0xc8] ss:$12 sps:$4 sm:$0xff]  }
 0xc3c   : > { %8254 = vmatpush2.bf16.msra.mxu1 %v11237_v3  ;;  %8280 = vmatprep.subr.bf16.mxu0 %v11259_v4  ;;  %v11302_v3 = vld [vmem:[#allocation19 + $0x840] ss:$12 sps:$4 sm:$0xff]   ;;  %v11291_v4 = vld [vmem:[#allocation19 + $0x8] ss:$12 sps:$4 sm:$0xff]  }
 0xc3d   : > { %8255 = vmatprep.subr.bf16.mxu1 %v11245_v11  ;;  %v11295_v11 = vld [vmem:[#allocation19 + $0x470] ss:$12 sps:$4 sm:$0xff]  }
 0xc3f   : > { %8281 = vmatpush1.bf16.msra.mxu0 %v11257_v2  ;;  %v4153_v2 = vrot.slane %v12491_v19, %v12165_v9 }
 0xc40   : > { %8256 = vmatpush2.bf16.msra.mxu1 %v11243_v12  ;;  %8282 = vmatprep.subr.bf16.mxu0 %v11264_v13  ;;  %v11296_v12 = vld [vmem:[#allocation19 + $0x3b0] ss:$12 sps:$4 sm:$0xff]   ;;  %v4157_v13 = vrot.slane %v12491_v19, %v4124_v34  ;;  %v11306_v19 = vld [vmem:[#allocation19 + $0x380] ss:$12 sps:$4 sm:$0xff]  }
 0xc41   : > { %8257 = vmatprep.subr.bf16.mxu1 %v11251_v18 }
 0xc43   : > { %8283 = vmatpush1.bf16.msra.mxu0 %v11262_v28 }
 0xc44   : > { %8258 = vmatpush2.bf16.msra.mxu1 %v11249_v31  ;;  %8284 = vmatprep.subr.bf16.mxu0 %v11269_v15  ;;  %v11301_v15 = vld [vmem:[#allocation19 + $0x398] ss:$12 sps:$4 sm:$0xff]  }
 0xc45   : > { %9737 = vmatprep.subr.bf16.mxu1 %v11255_v32 }
 0xc47   : > { %v12506_v35 = vpop.f32.mrf.mxu1  ;;  %8260 = vmatmul.mubr.bf16.vlgmr.msra.gmra.mxu1 %v12504_v24  ;;  %8285 = vmatpush2.bf16.msra.mxu0 %v11267_v17  ;;  %v11305_v17 = vld [vmem:[#allocation19 + $0x440] ss:$12 sps:$4 sm:$0xff]  }
 0xc48   : > { %9738 = vmatpush3.bf16.msra.mxu1 %v11256_v20  ;;  %8341 = vmatprep.mubr.bf16.mxu1 %v12430_v30  ;;  %v11271_v30 = vld [vmem:[#allocation19 + $0x68] ss:$12 sps:$4 sm:$0xff]  }
 0xc49   : > { %v12510_v37 = vpop.f32.mrf.mxu1  ;;  %9739 = vmatprep.subr.bf16.mxu1 %v11260_v23  ;;  %8286 = vmatprep.subr.bf16.mxu0 %v11274_v47 }
 0xc4b   : > { %v6099_v39 = vpop.f32.mrf.mxu1  ;;  %8287 = vmatpush2.bf16.msra.mxu0 %v11272_v25 }
 0xc4c   : > { %9740 = vmatpush3.bf16.msra.mxu1 %v11261_v33  ;;  %8288 = vmatprep.subr.bf16.mxu0 %v11279_v1  ;;  %v11308_v33 = vld [vmem:[#allocation19 + $0x230] ss:$12 sps:$4 sm:$0xff]   ;;  %v11311_v1 = vld [vmem:[#allocation19 + $0x2d8] ss:$12 sps:$4 sm:$0xff]  }
 0xc4d   : > { %v6100_v44 = vpop.f32.mrf.mxu1  ;;  %9741 = vmatprep.subr.bf16.mxu1 %v11265_v29  ;;  %v11313_v29 = vld [vmem:[#allocation19 + $0x410] ss:$12 sps:$4 sm:$0xff]  }
 0xc4e   : > { %v11314_v39 = vld [vmem:[#allocation19 + $0x350] ss:$12 sps:$4 sm:$0xff]   ;;  %v11318_v44 = vld [vmem:[#allocation19 + $0x338] ss:$12 sps:$4 sm:$0xff]  }
 0xc4f   : > { %8289 = vmatpush2.bf16.msra.mxu0 %v11277_v58  ;;  %v11315_v58 = vld [vmem:[#allocation19 + $0x2c0] ss:$12 sps:$4 sm:$0xff]  }
 0xc50   : > { %9742 = vmatpush3.bf16.msra.mxu1 %v11266_v22  ;;  %8290 = vmatprep.subr.bf16.mxu0 %v11284_v43  ;;  %v11317_v22 = vld [vmem:[#allocation19 + $0x3f8] ss:$12 sps:$4 sm:$0xff]   ;;  %v11316_v43 = vld [vmem:[#allocation19 + $0x200] ss:$12 sps:$4 sm:$0xff]  }
 0xc51   : > { %9743 = vmatprep.subr.bf16.mxu1 %v11270_v45  ;;  %v11319_v45 = vld [vmem:[#allocation19 + $0x2a8] ss:$12 sps:$4 sm:$0xff]  }
 0xc53   : > { %8291 = vmatpush2.bf16.msra.mxu0 %v11282_v5  ;;  %v11321_v5 = vld [vmem:[#allocation19 + $0x3e0] ss:$12 sps:$4 sm:$0xff]  }
 0xc54   : > { %9744 = vmatpush3.bf16.msra.mxu1 %v11271_v30  ;;  %8292 = vmatprep.subr.bf16.mxu0 %v11289_v46  ;;  %v11320_v30 = vld [vmem:[#allocation19 + $0x1e8] ss:$12 sps:$4 sm:$0xff]   ;;  %v11323_v46 = vld [vmem:[#allocation19 + $0x290] ss:$12 sps:$4 sm:$0xff]  }
 0xc55   : > { %9745 = vmatprep.subr.bf16.mxu1 %v11275_v48  ;;  %v11325_v48 = vld [vmem:[#allocation19 + $0x3c8] ss:$12 sps:$4 sm:$0xff]  }
 0xc57   : > { %8293 = vmatpush2.bf16.msra.mxu0 %v11287_v52  ;;  %v11324_v52 = vld [vmem:[#allocation19 + $0x1d0] ss:$12 sps:$4 sm:$0xff]  }
 0xc58   : > { %9746 = vmatpush3.bf16.msra.mxu1 %v11276_v53  ;;  %8294 = vmatprep.subr.bf16.mxu0 %v11294_v54  ;;  %v11326_v53 = vld [vmem:[#allocation19 + $0x308] ss:$12 sps:$4 sm:$0xff]   ;;  %v11327_v54 = vld [vmem:[#allocation19 + $0x278] ss:$12 sps:$4 sm:$0xff]  }
 0xc59   : > { %9747 = vmatprep.subr.bf16.mxu1 %v11280_v57  ;;  %v11329_v57 = vld [vmem:[#allocation19 + $0x770] ss:$12 sps:$4 sm:$0xff]  }
 0xc5b   : > { %8295 = vmatpush2.bf16.msra.mxu0 %v11292_v36  ;;  %v11328_v36 = vld [vmem:[#allocation19 + $0x1b8] ss:$12 sps:$4 sm:$0xff]  }
 0xc5c   : > { %9748 = vmatpush3.bf16.msra.mxu1 %v11281_v59  ;;  %8296 = vmatprep.subr.bf16.mxu0 %v11299_v56  ;;  %v11330_v59 = vld [vmem:[#allocation19 + $0x6b0] ss:$12 sps:$4 sm:$0xff]   ;;  %v11331_v56 = vld [vmem:[#allocation19 + $0x260] ss:$12 sps:$4 sm:$0xff]  }
 0xc5d   : > { %9749 = vmatprep.subr.bf16.mxu1 %v11285_v41  ;;  %v11333_v41 = vld [vmem:[#allocation19 + $0x758] ss:$12 sps:$4 sm:$0xff]  }
 0xc5f   : > { %8297 = vmatpush2.bf16.msra.mxu0 %v11297_v61 }
 0xc60   : > { %9750 = vmatpush3.bf16.msra.mxu1 %v11286_v62  ;;  %8298 = vmatprep.subr.bf16.mxu0 %v11304_v63  ;;  %v11332_v62 = vld [vmem:[#allocation19 + $0x1a0] ss:$12 sps:$4 sm:$0xff]   ;;  %v11334_v63 = vld [vmem:[#allocation19 + $0x698] ss:$12 sps:$4 sm:$0xff]  }
 0xc61   : > { %9751 = vmatprep.subr.bf16.mxu1 %v11290_v51  ;;  %v11335_v51 = vld [vmem:[#allocation19 + $0x248] ss:$12 sps:$4 sm:$0xff]  }
 0xc63   : > { %8299 = vmatpush2.bf16.msra.mxu0 %v11302_v3 }
 0xc64   : > { %9752 = vmatpush3.bf16.msra.mxu1 %v11291_v4  ;;  %9759 = vmatprep.subr.bf16.mxu0 %v11307_v7  ;;  %v11337_v4 = vld [vmem:[#allocation19 + $0x740] ss:$12 sps:$4 sm:$0xff]  }
 0xc65   : > { %9781 = vmatprep.subr.bf16.mxu1 %v11295_v11  ;;  %v11336_v11 = vld [vmem:[#allocation19 + $0x188] ss:$12 sps:$4 sm:$0xff]  }
 0xc66   : > { %v6054_v18 = vpop.f32.mrf.mxu0 }
 0xc67   : > { %v6055_v28 = vadd.f32 %v6054_v18, %v4153_v2  ;;  %8342 = vmatmul.mubr.bf16.vlgmr.msra.gmra.mxu1 %v12451_v27  ;;  %v11309_v27 = vld [vmem:[#allocation19 + $0x428] ss:$12 sps:$4 sm:$0xff]   ;;  %v11338_v2 = vld [vmem:[#allocation19 + $0x680] ss:$12 sps:$4 sm:$0xff]   ;;  %v11343_v18 = vld [vmem:[#allocation19 + $0x5d8] ss:$12 sps:$4 sm:$0xff]  }
 0xc68   : > { %v6056_v31 = vpop.f32.mrf.mxu0  ;;  %9782 = vmatpush3.bf16.msra.mxu1 %v11296_v12  ;;  %8421 = vmatprep.mubr.bf16.mxu1 %v12459_v38  ;;  %v11339_v12 = vld [vmem:[#allocation19 + $0x5f0] ss:$12 sps:$4 sm:$0xff]  }
 0xc69   : > { %v6096_v16 = vadd.f32 %v12506_v35, %v6055_v28  ;;  %v6057_v32 = vadd.f32 %v6056_v31, %v4157_v13  ;;  %9783 = vmatprep.subr.bf16.mxu1 %v11300_v14  ;;  %v11310_v35 = vld [vmem:[#allocation19 + $0x368] ss:$12 sps:$4 sm:$0xff]   ;;  %v11340_v14 = vld [vmem:[#allocation19 + $0x530] ss:$12 sps:$4 sm:$0xff]   ;;  %v11344_v31 = vld [vmem:[#allocation19 + $0x518] ss:$12 sps:$4 sm:$0xff]  }
 0xc6a   : > { %v6058_v20 = vpop.f32.mrf.mxu0  ;;  %v11345_v28 = vld [vmem:[#allocation19 + $0x710] ss:$12 sps:$4 sm:$0xff]  }
 0xc6b   : > { %v6098_v6 = vadd.f32 %v12510_v37, %v6057_v32  ;;  %v6112_v23 = vmax.f32 %v6096_v16, 0.0  ;;  %v11312_v37 = vld [vmem:[#allocation19 + $0x218] ss:$12 sps:$4 sm:$0xff]   ;;  %v11347_v16 = vld [vmem:[#allocation19 + $0x5c0] ss:$12 sps:$4 sm:$0xff]  }
 0xc6c   : > { %v6059_v34 = vpop.f32.mrf.mxu0  ;;  %9784 = vmatpush3.bf16.msra.mxu1 %v11301_v15  ;;  %v11346_v15 = vld [vmem:[#allocation19 + $0x650] ss:$12 sps:$4 sm:$0xff]   ;;  %v11349_v32 = vld [vmem:[#allocation19 + $0x6f8] ss:$12 sps:$4 sm:$0xff]  }
 0xc6d   : > { %v6113_v47 = vmax.f32 %v6098_v6, 0.0  ;;  %9785 = vmatprep.subr.bf16.mxu1 %v11305_v17  ;;  %v12523_v38 = vpack.c.bf16 %v6112_v23, %v6112_v23  ;;  %v11348_v17 = vld [vmem:[#allocation19 + $0x500] ss:$12 sps:$4 sm:$0xff]   ;;  %v11350_v20 = vld [vmem:[#allocation19 + $0x638] ss:$12 sps:$4 sm:$0xff]  }
 0xc6e   : > { %v11351_v6 = vld [vmem:[#allocation19 + $0x5a8] ss:$12 sps:$4 sm:$0xff]   ;;  %v11353_v23 = vld [vmem:[#allocation19 + $0x6e0] ss:$12 sps:$4 sm:$0xff]   ;;  %v11355_v34 = vld [vmem:[#allocation19 + $0x590] ss:$12 sps:$4 sm:$0xff]  }
 0xc6f   : > { %v12521_v25 = vpack.c.bf16 %v6113_v47, %v6113_v47  ;;  %v12536_v47 = vld [vmem:[#allocation20] sm:$0x7] }
 0xc70   : > { %9786 = vmatpush3.bf16.msra.mxu1 %v11306_v19  ;;  %v11357_v19 = vld [vmem:[#allocation19 + $0x6c8] ss:$12 sps:$4 sm:$0xff]  }
 0xc71   : > { %8300 = vmatprep.mubr.bf16.mxu0 %v12521_v25  ;;  %9787 = vmatprep.subr.bf16.mxu1 %v11309_v27  ;;  %v11356_v27 = vld [vmem:[#allocation19 + $0x4d0] ss:$12 sps:$4 sm:$0xff]  }
 0xc72   : > { %8301 = vmatmul.mubr.bf16.vlgmr.msra.gmra.mxu0 %v12523_v38 }
 0xc73   : > { %9760 = vmatpush3.bf16.msra.mxu0 %v11308_v33  ;;  %8381 = vmatprep.mubr.bf16.mxu0 %v12446_v0  ;;  %v11322_v0 = vld [vmem:[#allocation19 + $0x320] ss:$12 sps:$4 sm:$0xff]   ;;  %v11358_v33 = vld [vmem:[#allocation19 + $0x608] ss:$12 sps:$4 sm:$0xff]  }
 0xc74   : > { %9788 = vmatpush3.bf16.msra.mxu1 %v11310_v35  ;;  %9761 = vmatprep.subr.bf16.mxu0 %v11311_v1  ;;  %v11359_v35 = vld [vmem:[#allocation19 + $0x578] ss:$12 sps:$4 sm:$0xff]   ;;  %v6515_v1 = vrot.slane %v12536_v47, %v12168_v10 }
 0xc75   : > { %9789 = vmatprep.subr.bf16.mxu1 %v11313_v29  ;;  %v6519_v29 = vrot.slane %v12536_v47, %v12162_v8 }
 0xc77   : > { %9762 = vmatpush3.bf16.msra.mxu0 %v11312_v37  ;;  %v11360_v37 = vld [vmem:[#allocation19 + $0x4b8] ss:$12 sps:$4 sm:$0xff]  }
 0xc78   : > { %9790 = vmatpush3.bf16.msra.mxu1 %v11314_v39  ;;  %9763 = vmatprep.subr.bf16.mxu0 %v11315_v58  ;;  %v11361_v39 = vld [vmem:[#allocation19 + $0x560] ss:$12 sps:$4 sm:$0xff]  }
 0xc79   : > { %9791 = vmatprep.subr.bf16.mxu1 %v11317_v22 }
 0xc7b   : > { %9764 = vmatpush3.bf16.msra.mxu0 %v11316_v43 }
 0xc7c   : > { %9792 = vmatpush3.bf16.msra.mxu1 %v11318_v44  ;;  %9765 = vmatprep.subr.bf16.mxu0 %v11319_v45  ;;  %v11362_v45 = vld [vmem:[#allocation19 + $0x4a0] ss:$12 sps:$4 sm:$0xff]  }
 0xc7d   : > { %9793 = vmatprep.subr.bf16.mxu1 %v11321_v5  ;;  %v11363_v5 = vld [vmem:[#allocation19 + $0x548] ss:$12 sps:$4 sm:$0xff]  }
 0xc7f   : > { %9766 = vmatpush3.bf16.msra.mxu0 %v11320_v30 }
 0xc80   : > { %9794 = vmatpush3.bf16.msra.mxu1 %v11322_v0  ;;  %9767 = vmatprep.subr.bf16.mxu0 %v11323_v46  ;;  %v11364_v0 = vld [vmem:[#allocation19 + $0x488] ss:$12 sps:$4 sm:$0xff]  }
 0xc81   : > { %9795 = vmatprep.subr.bf16.mxu1 %v11325_v48  ;;  %v11365_v48 = vld [vmem:[#allocation19 + $0x8f0] ss:$12 sps:$4 sm:$0xff]  }
 0xc83   : > { %9768 = vmatpush3.bf16.msra.mxu0 %v11324_v52  ;;  %v11366_v52 = vld [vmem:[#allocation19 + $0x830] ss:$12 sps:$4 sm:$0xff]  }
 0xc84   : > { %9796 = vmatpush3.bf16.msra.mxu1 %v11326_v53  ;;  %9769 = vmatprep.subr.bf16.mxu0 %v11327_v54  ;;  %v11367_v53 = vld [vmem:[#allocation19 + $0x8d8] ss:$12 sps:$4 sm:$0xff]   ;;  %v11369_v54 = vld [vmem:[#allocation19 + $0x8c0] ss:$12 sps:$4 sm:$0xff]  }
 0xc85   : > { %9825 = vmatprep.subr.bf16.mxu1 %v11329_v57  ;;  %v11370_v57 = vld [vmem:[#allocation19 + $0x800] ss:$12 sps:$4 sm:$0xff]  }
 0xc87   : > { %9770 = vmatpush3.bf16.msra.mxu0 %v11328_v36  ;;  %v12528_v61 = vpop.f32.mrf.mxu1  ;;  %8422 = vmatmul.mubr.bf16.vlgmr.msra.gmra.mxu1 %v12478_v21  ;;  %v11341_v21 = vld [vmem:[#allocation19 + $0x728] ss:$12 sps:$4 sm:$0xff]  }
 0xc88   : > { %9826 = vmatpush3.bf16.msra.mxu1 %v11330_v59  ;;  %8501 = vmatprep.mubr.bf16.mxu1 %v12498_v42  ;;  %v11342_v42 = vld [vmem:[#allocation19 + $0x668] ss:$12 sps:$4 sm:$0xff]   ;;  %v8098_v58 = vadd.f32 %v12528_v61, %v6515_v1  ;;  %v11375_v61 = vld [vmem:[#allocation19 + $0x878] ss:$12 sps:$4 sm:$0xff]  }
 0xc89   : > { %v12532_v3 = vpop.f32.mrf.mxu1  ;;  %9771 = vmatprep.subr.bf16.mxu0 %v11331_v56  ;;  %9827 = vmatprep.subr.bf16.mxu1 %v11333_v41  ;;  %v11371_v36 = vld [vmem:[#allocation19 + $0x8a8] ss:$12 sps:$4 sm:$0xff]   ;;  %v11373_v56 = vld [vmem:[#allocation19 + $0x890] ss:$12 sps:$4 sm:$0xff]  }
 0xc8a   : > { %v8100_v43 = vadd.f32 %v12532_v3, %v6519_v29  ;;  %v11372_v59 = vld [vmem:[#allocation19 + $0x7e8] ss:$12 sps:$4 sm:$0xff]   ;;  %v11374_v41 = vld [vmem:[#allocation19 + $0x7d0] ss:$12 sps:$4 sm:$0xff]  }
 0xc8b   : > { %9772 = vmatpush3.bf16.msra.mxu0 %v11332_v62  ;;  %v8101_v7 = vpop.f32.mrf.mxu1  ;;  %v11377_v62 = vld [vmem:[#allocation19 + $0x860] ss:$12 sps:$4 sm:$0xff]   ;;  %v11379_v3 = vld [vmem:[#allocation19 + $0x848] ss:$12 sps:$4 sm:$0xff]  }
 0xc8c   : > { %9828 = vmatpush3.bf16.msra.mxu1 %v11334_v63  ;;  %9773 = vmatprep.subr.bf16.mxu0 %v11335_v51  ;;  %v11378_v63 = vld [vmem:[#allocation19 + $0x7a0] ss:$12 sps:$4 sm:$0xff]  }
 0xc8d   : > { %v8102_v13 = vpop.f32.mrf.mxu1  ;;  %9829 = vmatprep.subr.bf16.mxu1 %v11337_v4 }
 0xc8f   : > { %9774 = vmatpush3.bf16.msra.mxu0 %v11336_v11 }
 0xc90   : > { %9830 = vmatpush3.bf16.msra.mxu1 %v11338_v2  ;;  %9803 = vmatprep.subr.bf16.mxu0 %v11339_v12  ;;  %v11380_v2 = vld [vmem:[#allocation19 + $0x788] ss:$12 sps:$4 sm:$0xff]  }
 0xc91   : > { %9831 = vmatprep.subr.bf16.mxu1 %v11341_v21 }
 0xc92   : > { %8382 = vmatmul.mubr.bf16.vlgmr.msra.gmra.mxu0 %v12466_v26  ;;  %v11352_v26 = vld [vmem:[#allocation19 + $0x4e8] ss:$12 sps:$4 sm:$0xff]  }
 0xc93   : > { %9804 = vmatpush3.bf16.msra.mxu0 %v11340_v14  ;;  %8461 = vmatprep.mubr.bf16.mxu0 %v12483_v49  ;;  %v11354_v49 = vld [vmem:[#allocation19 + $0x620] ss:$12 sps:$4 sm:$0xff]  }
 0xc94   : > { %9832 = vmatpush3.bf16.msra.mxu1 %v11342_v42  ;;  %9805 = vmatprep.subr.bf16.mxu0 %v11343_v18 }
 0xc95   : > { %9833 = vmatprep.subr.bf16.mxu1 %v11345_v28 }
 0xc97   : > { %9806 = vmatpush3.bf16.msra.mxu0 %v11344_v31 }
 0xc98   : > { %9834 = vmatpush3.bf16.msra.mxu1 %v11346_v15  ;;  %9807 = vmatprep.subr.bf16.mxu0 %v11347_v16 }
 0xc99   : > { %9835 = vmatprep.subr.bf16.mxu1 %v11349_v32 }
 0xc9b   : > { %9808 = vmatpush3.bf16.msra.mxu0 %v11348_v17 }
 0xc9c   : > { %9836 = vmatpush3.bf16.msra.mxu1 %v11350_v20  ;;  %9809 = vmatprep.subr.bf16.mxu0 %v11351_v6 }
 0xc9d   : > { %9837 = vmatprep.subr.bf16.mxu1 %v11353_v23 }
 0xc9f   : > { %9810 = vmatpush3.bf16.msra.mxu0 %v11352_v26 }
 0xca0   : > { %9838 = vmatpush3.bf16.msra.mxu1 %v11354_v49  ;;  %9811 = vmatprep.subr.bf16.mxu0 %v11355_v34 }
 0xca1   : > { %9839 = vmatprep.subr.bf16.mxu1 %v11357_v19 }
 0xca3   : > { %9812 = vmatpush3.bf16.msra.mxu0 %v11356_v27 }
 0xca4   : > { %9840 = vmatpush3.bf16.msra.mxu1 %v11358_v33  ;;  %9813 = vmatprep.subr.bf16.mxu0 %v11359_v35 }
 0xca6   : > { %v8138_v22 = vpop.f32.mrf.mxu0 }
 0xca7   : > { %v8139_v44 = vadd.f32 %v8138_v22, %v8098_v58  ;;  %9814 = vmatpush3.bf16.msra.mxu0 %v11360_v37  ;;  %8502 = vmatmul.mubr.bf16.vlgmr.msra.gmra.mxu1 %v12504_v24  ;;  %v11368_v24 = vld [vmem:[#allocation19 + $0x818] ss:$12 sps:$4 sm:$0xff]  }
 0xca8   : > { %v8140_v10 = vpop.f32.mrf.mxu0  ;;  %9815 = vmatprep.subr.bf16.mxu0 %v11361_v39 }
 0xca9   : > { %v8141_v30 = vadd.f32 %v8140_v10, %v8100_v43 }
 0xcaa   : > { %v8142_v8 = vpop.f32.mrf.mxu0 }
 0xcab   : > { %9816 = vmatpush3.bf16.msra.mxu0 %v11362_v45 }
 0xcac   : > { %v8143_v46 = vpop.f32.mrf.mxu0  ;;  %9817 = vmatprep.subr.bf16.mxu0 %v11363_v5 }
 0xcaf   : > { %9818 = vmatpush3.bf16.msra.mxu0 %v11364_v0 }
 0xcb0   : > { %9847 = vmatprep.subr.bf16.mxu0 %v11365_v48 }
 0xcb2   : > { %8462 = vmatmul.mubr.bf16.vlgmr.msra.gmra.mxu0 %v12489_v40  ;;  %v11376_v40 = vld [vmem:[#allocation19 + $0x7b8] ss:$12 sps:$4 sm:$0xff]  }
 0xcb3   : > { %9848 = vmatpush3.bf16.msra.mxu0 %v11366_v52  ;;  %8541 = vmatprep.mubr.bf16.mxu0 %v12521_v25 }
 0xcb4   : > { %9849 = vmatprep.subr.bf16.mxu0 %v11367_v53 }
 0xcb7   : > { %9850 = vmatpush3.bf16.msra.mxu0 %v11368_v24 }
 0xcb8   : > { %9851 = vmatprep.subr.bf16.mxu0 %v11369_v54 }
 0xcbb   : > { %9852 = vmatpush3.bf16.msra.mxu0 %v11370_v57 }
 0xcbc   : > { %9853 = vmatprep.subr.bf16.mxu0 %v11371_v36 }
 0xcbf   : > { %9854 = vmatpush3.bf16.msra.mxu0 %v11372_v59 }
 0xcc0   : > { %9855 = vmatprep.subr.bf16.mxu0 %v11373_v56 }
 0xcc3   : > { %9856 = vmatpush3.bf16.msra.mxu0 %v11374_v41 }
 0xcc4   : > { %9857 = vmatprep.subr.bf16.mxu0 %v11375_v61 }
 0xcc7   : > { %9858 = vmatpush3.bf16.msra.mxu0 %v11376_v40  ;;  %v8179_v25 = vpop.f32.mrf.mxu1 }
 0xcc8   : > { %v8180_v51 = vadd.f32 %v8179_v25, %v8139_v44  ;;  %9859 = vmatprep.subr.bf16.mxu0 %v11377_v62 }
 0xcc9   : > { %v8181_v4 = vpop.f32.mrf.mxu1 }
 0xcca   : > { %v8182_v7 = vadd.f32 %v8181_v4, %v8141_v30 }
 0xccb   : > { %9860 = vmatpush3.bf16.msra.mxu0 %v11378_v63  ;;  %v8183_v11 = vpop.f32.mrf.mxu1 }
 0xccc   : > { %9861 = vmatprep.subr.bf16.mxu0 %v11379_v3 }
 0xccd   : > { %v8184_v12 = vpop.f32.mrf.mxu1 }
 0xccf   : > { %9862 = vmatpush3.bf16.msra.mxu0 %v11380_v2 }
 0xcd2   : > { %8542 = vmatmul.mubr.bf16.vlgmr.msra.gmra.mxu0 %v12523_v38 }
 0xce6   : > { %v8220_v13 = vpop.f32.mrf.mxu0 }
 0xce7   : > { %v8221_v21 = vadd.f32 %v8220_v13, %v8180_v51 }
 0xce8   : > { %v8222_v14 = vpop.f32.mrf.mxu0 }
 0xce9   : > { %v8223_v42 = vadd.f32 %v8222_v14, %v8182_v7 }
 0xcea   : > { %v8224_v18 = vpop.f32.mrf.mxu0 }
 0xcec   : > { %v8225_v28 = vpop.f32.mrf.mxu0 }
 0xd07   : > { %v8261_v31 = vpop.f32.mrf.mxu1 }
 0xd08   : > { %v8262_v49 = vadd.f32 %v8261_v31, %v8221_v21 }
 0xd09   : > { %v8263_v15 = vpop.f32.mrf.mxu1 }
 0xd0a   : > { %v8264_v19 = vadd.f32 %v8263_v15, %v8223_v42 }
 0xd0b   : > { %v8265_v16 = vpop.f32.mrf.mxu1 }
 0xd0d   : > { %v8266_v32 = vpop.f32.mrf.mxu1 }
 0xd27   : > { %v9753_v17 = vpop.f32.mrf.mxu1 }
 0xd29   : > { %v9754_v20 = vpop.f32.mrf.mxu1 }
 0xd2a   : > { %v9755_v6 = vadd.f32 %v9754_v20, %v9753_v17 }
 0xd2b   : > { %v9756_v23 = vpop.f32.mrf.mxu1 }
 0xd2d   : > { %v9757_v26 = vpop.f32.mrf.mxu1 }
 0xd32   : > { %v8302_v34 = vpop.f32.mrf.mxu0 }
 0xd33   : > { %v8303_v38 = vadd.f32 %v8302_v34, %v8262_v49 }
 0xd34   : > { %v8304_v27 = vpop.f32.mrf.mxu0 }
 0xd35   : > { %v8549_v33 = vadd.f32 %v8303_v38, %v12363_v55  ;;  %v8305_v35 = vadd.f32 %v8304_v27, %v8264_v19  ;;  %v6523_v55 = vrot.slane %v12536_v47, %v12165_v9 }
 0xd36   : > { %v8306_v1 = vpop.f32.mrf.mxu0 }
 0xd37   : > { %8552 = vst [vmem:[%s12551_s3] sm:$0xff] %v8549_v33  ;;  %v8550_v29 = vadd.f32 %v8305_v35, %v12360_v50  ;;  %v8344_v5 = vadd.f32 %v9755_v6, %v6523_v55 }
 0xd38   : > { %v8307_v37 = vpop.f32.mrf.mxu0 }
 0xd39   : > { %8553 = vst [vmem:[%s12551_s3 + $0x8] sm:$0xff] %v8550_v29 }
 0xd47   : > { %v9797_v39 = vpop.f32.mrf.mxu1 }
 0xd49   : > { %v9798_v58 = vpop.f32.mrf.mxu1 }
 0xd4a   : > { %v9799_v22 = vadd.f32 %v9798_v58, %v9797_v39 }
 0xd4b   : > { %v9800_v43 = vpop.f32.mrf.mxu1 }
 0xd4d   : > { %v9801_v44 = vpop.f32.mrf.mxu1 }
 0xd52   : > { %v9775_v45 = vpop.f32.mrf.mxu0 }
 0xd54   : > { %v9776_v10 = vpop.f32.mrf.mxu0 }
 0xd55   : > { %v9777_v30 = vadd.f32 %v9776_v10, %v9775_v45 }
 0xd56   : > { %v9778_v8 = vpop.f32.mrf.mxu0 }
 0xd57   : > { %v8384_v0 = vadd.f32 %v9777_v30, %v8344_v5 }
 0xd58   : > { %v9779_v46 = vpop.f32.mrf.mxu0 }
 0xd59   : > { %v8424_v48 = vadd.f32 %v9799_v22, %v8384_v0 }
 0xd67   : > { %v9841_v50 = vpop.f32.mrf.mxu1 }
 0xd69   : > { %v9842_v52 = vpop.f32.mrf.mxu1 }
 0xd6a   : > { %v9843_v41 = vadd.f32 %v9842_v52, %v9841_v50 }
 0xd6b   : > { %v9844_v53 = vpop.f32.mrf.mxu1 }
 0xd6d   : > { %v9845_v24 = vpop.f32.mrf.mxu1 }
 0xd72   : > { %v9819_v54 = vpop.f32.mrf.mxu0 }
 0xd74   : > { %v9820_v57 = vpop.f32.mrf.mxu0 }
 0xd75   : > { %v9821_v9 = vadd.f32 %v9820_v57, %v9819_v54 }
 0xd76   : > { %v9822_v36 = vpop.f32.mrf.mxu0 }
 0xd77   : > { %v8464_v47 = vadd.f32 %v9821_v9, %v8424_v48 }
 0xd78   : > { %v9823_v59 = vpop.f32.mrf.mxu0 }
 0xd79   : > { %v8504_v40 = vadd.f32 %v9843_v41, %v8464_v47 }
 0xd92   : > { %v9863_v56 = vpop.f32.mrf.mxu0 }
 0xd94   : > { %v9864_v61 = vpop.f32.mrf.mxu0 }
 0xd95   : > { %v9865_v62 = vadd.f32 %v9864_v61, %v9863_v56 }
 0xd96   : > { %v9866_v25 = vpop.f32.mrf.mxu0 }
 0xd97   : > { %v8544_v63 = vadd.f32 %v9865_v62, %v8504_v40 }
 0xd98   : > { %v9867_v51 = vpop.f32.mrf.mxu0 }
 0xd99   : > { %v8551_v3 = vadd.f32 %v8544_v63, %v12366_v60 }
 0xd9b   : > { %8554 = vst [vmem:[%s12551_s3 + $0x10] sm:$0xff] %v8551_v3 }
 0xd9c   : > { %11739 = shalt.err (!%p11736_p11)
}
 0xd9d   : > { %s11740_s16 = scalar_lea.hbm %s8568_s15, 384  ;;  %s11744_s6 = scalar_lea.hbm %s12608_s12, 768 }
 0xd9e   : > { %p11741_p10 = scmp.ne.s32.totalorder %s8568_s15, %s11740_s16  ;;  %p11745_p2 = scmp.lt.s32.totalorder %s8568_s15, %s12608_s12 }
 0xd9f   : > { %p11746_p4 = scmp.lt.s32.totalorder %s11744_s6, %s11740_s16 }
 0xda0   : > { %p11742_p12 = pnand %p11741_p10, %p12655_p13 }
 0xda1   : > { %p11747_p5 = por %p11746_p4, %p11745_p2 }
 0xda2   : > { %p11743_p0 = pneg %p11742_p12 }
 0xda4   : > { %p11748_p8 = pnand %p11747_p5, %p11743_p0 }
 0xda6   : > { %11751 = shalt.err (!%p11748_p8)
}
 0xda7   : > { %10031 = dma.vmem_to_hbm [thread:$0]  (%p12655_p13), %s8571_s20, 384, %s8568_s15, %s8556_s25  }
 0xda8 PF: > { %s8582_s3 = sand.u32 1, %s11802_s21   ;;  %p12656_p6 = scmp.ne.s32.totalorder %s12637_s1, 0 }
 0xda9   : > { %p12657_p1 = scmp.ge.s32.totalorder %s11814_s24, 2  ;;  %s8583_s28 = scalar_lea.sflag [#allocation4], %s8582_s3 }
 0xdab   : > { %p10072_p3 = pnand %p12657_p1, %p12656_p6 }
 0xdad   : > { %p10073_p7 = pneg %p10072_p3 }
 0xdaf   : > { %11797 = dma.done.wait (%p10073_p7), %s8583_s28, 384  }
 0xdb0   : > { %11799 = vsyncadd (%p10073_p7), %s8583_s28, 4294966912  ;;  %p31_p9 = scmp.ge.s32.totalorder %s12049_s13, 4   ;;  %s12658_s21 = smov %s11806_s22 }
 0xdb1   : > { %s12659_s22 = smov %s11810_s23  ;;  %s12660_s23 = smov %s12061_s17 }
 0xdb2   : > { %s12661_s24 = smov %s12049_s13  ;;  %33 = sbr.rel (!%p31_p9) target bundleno = 19 (0x13), region = 157 }
 0xdb7   :  { %8588 = vsyncpa [#allocation3], 1 }
 0xdb8   :  { %8590 = vsyncpa [#allocation3 + $0x1], 1 }
 0xdb9   :  { %8591 = vsyncpa [#allocation6], 1 }
 0xdba   :  { %8592 = vsyncpa [#allocation9], 1 }
 0xdbb   :  { %8593 = vsyncpa [#allocation12], 1 }
 0xdbc   :  { %8594 = vsyncpa [#allocation15], 1 }
 0xdbd   :  { %8595 = vsyncpa [#allocation18], 1 }
 0xdbe   :  { %8596 = vsyncpa [#allocation21], 1 }
 0xdbf   :  { %8597 = vsyncpa [#allocation4], 1 }
 0xdc0   :  { %8599 = vsyncpa [#allocation4 + $0x1], 1 }

</bundles_post_ra>
